<compile_context>
chip_gen: v6e
topology: v6e:2x2x1
jax: 0.10.0
libtpu: 0.0.40
codegen_flags: <defaults>
</compile_context>

<pallas_src>
import jax
import jax.numpy as jnp
import numpy as np
from jax.experimental import pallas as pl
from jax.experimental.pallas import tpu as pltpu

EPS = 1e-5

# Matmul-operand (and gi/buf scratch) dtype.  Set to jnp.bfloat16 on
# v5e/v6e/v7x for ~2x MXU throughput and half the scratch footprint;
# accumulation (preferred_element_type) and all recurrent / gate math stay
# f32.  Kept f32 here so the self-check against the f32 reference is tight.
MATMUL_DTYPE = jnp.float32


def _round_up(x, m):
    return (x + m - 1) // m * m


def _qgru_kernel(x_ref, h0_ref, wih0_ref, wihr_ref, bih_ref, whh_ref,
                 bhhn_ref, wout_ref, bout_ref, out_ref,
                 buf_ref, gi_ref, h_ref, stat_ref, oacc_ref):
    # x_ref:    (S, Bb, 2)          full-seq IQ samples (resident across chunks)
    # h0_ref:   (L, Bb, Hp)         initial hidden state per layer (lane-padded)
    # wih0_ref: (4, 3Hp)            layer-0 input->hidden weights (gates r|z|n, lane-padded)
    # wihr_ref: (max(L-1,1), Hp, 3Hp) input->hidden weights for layers 1..L-1
    # bih_ref:  (L, 1, 3Hp)         folded gi bias: b_ih + [b_hh_r, b_hh_z, 0]
    # whh_ref:  (L, Hp, 3Hp)        fused hidden->hidden weights
    # bhhn_ref: (L, 1, Hp)          n-gate hidden bias (must stay inside r*(...))
    # wout_ref: (Hp, O), bout_ref: (1, O)
    # out_ref:  (S, Bb, O)          written once, on the last chunk
    # buf_ref:  (Sc, Bb, Hp)   VMEM — current layer activations for this chunk
    # gi_ref:   (Sc, Bb, 3Hp)  VMEM — hoisted gate pre-activations for this chunk
    # h_ref:    (L, Bb, Hp)    VMEM — hidden-state carry across chunks
    # stat_ref: (2, Bb, 1)     VMEM — bn_in mean / rstd per batch element
    # oacc_ref: (S, Bb, O)     VMEM — raw fc_out outputs (pre bn_out)
    S = x_ref.shape[0]
    Sc, Bb, Hp = buf_ref.shape
    L = h0_ref.shape[0]
    O = out_ref.shape[-1]

    c = pl.program_id(1)
    nc = pl.num_programs(1)
    t0 = pl.multiple_of(c * Sc, Sc)

    # ---- chunk 0: init hidden carry and full-sequence bn_in statistics ----
    @pl.when(c == 0)
    def _():
        h_ref[...] = h0_ref[...]
        xf = x_ref[...]
        i_x = xf[..., 0:1]
        q_x = xf[..., 1:2]
        amp = jnp.sqrt(i_x * i_x + q_x * q_x)
        feats = jnp.concatenate([i_x, q_x, amp, amp * amp * amp], axis=-1)
        mean = jnp.mean(feats, axis=(0, 2), keepdims=True)            # (1, Bb, 1)
        var = jnp.mean((feats - mean) ** 2, axis=(0, 2), keepdims=True)
        stat_ref[0] = mean[0]
        stat_ref[1] = jax.lax.rsqrt(var + EPS)[0]

    # ---- per-chunk amplitude features, normalized with full-seq stats ----
    xs = x_ref[pl.ds(t0, Sc)]                                          # (Sc, Bb, 2)
    i_x = xs[..., 0:1]
    q_x = xs[..., 1:2]
    amp = jnp.sqrt(i_x * i_x + q_x * q_x)
    feats = jnp.concatenate([i_x, q_x, amp, amp * amp * amp], axis=-1)  # (Sc, Bb, 4)
    feats = (feats - stat_ref[0]) * stat_ref[1]                         # bn_in
    feats2d = feats.reshape(Sc * Bb, 4)

    # ---- stacked GRU (PyTorch gate order r, z, n) over this chunk ----
    for l in range(L):
        # Hoisted input->hidden projection: one bulk MXU matmul per layer per
        # chunk, off the serial per-step path.  (Layer 0 has K=4 — MXU mostly
        # idle, accepted: it is tiny and off the critical path.)
        if l == 0:
            acts = feats2d                                             # (Sc*Bb, 4)
            w_in = wih0_ref[...]                                       # (4, 3Hp)
        else:
            acts = buf_ref[...].reshape(Sc * Bb, Hp)                   # layer l-1 outputs
            w_in = wihr_ref[l - 1]                                     # (Hp, 3Hp)
        gi = jnp.dot(acts.astype(w_in.dtype), w_in,
                     preferred_element_type=jnp.float32) + bih_ref[l]
        gi_ref[...] = gi.reshape(Sc, Bb, 3 * Hp).astype(gi_ref.dtype)

        w_hh = whh_ref[l]                                              # (Hp, 3Hp)
        b_hn = bhhn_ref[l]                                             # (1, Hp)

        def step(t, h, w_hh=w_hh, b_hn=b_hn):
            gi_t = gi_ref[t].astype(jnp.float32)                       # (Bb, 3Hp)
            gh = jnp.dot(h.astype(w_hh.dtype), w_hh,
                         preferred_element_type=jnp.float32)           # one fused matmul
            # All gate slices are at 128-lane boundaries -> whole-vreg views.
            rz = jax.nn.sigmoid(gi_t[:, :2 * Hp] + gh[:, :2 * Hp])     # r and z together
            r = rz[:, :Hp]
            z = rz[:, Hp:]
            n = jnp.tanh(gi_t[:, 2 * Hp:] + r * (gh[:, 2 * Hp:] + b_hn))
            h_new = (1.0 - z) * n + z * h
            buf_ref[t] = h_new.astype(buf_ref.dtype)                   # unmasked vst
            return h_new

        # unroll=4: lets gi loads / buf stores of adjacent steps hide under
        # the serial h-carry latency (reviewed sweep range 4-8).
        h_ref[l] = jax.lax.fori_loop(0, Sc, step, h_ref[l], unroll=4)

    # ---- fc_out on the chunk, accumulated into the raw-output scratch ----
    y = buf_ref[...].reshape(Sc * Bb, Hp)
    o = jnp.dot(y.astype(wout_ref.dtype), wout_ref[...],
                preferred_element_type=jnp.float32) + bout_ref[...]
    oacc_ref[pl.ds(t0, Sc)] = o.reshape(Sc, Bb, O)

    # ---- bn_out needs full-sequence statistics: finalize on the last chunk ----
    @pl.when(c == nc - 1)
    def _():
        oa = oacc_ref[...]                                             # (S, Bb, O)
        mean = jnp.mean(oa, axis=(0, 2), keepdims=True)
        var = jnp.mean((oa - mean) ** 2, axis=(0, 2), keepdims=True)
        out_ref[...] = (oa - mean) * jax.lax.rsqrt(var + EPS)


def _pick_seq_block(S, target=256):
    """Largest divisor of S that is <= target (chunk length)."""
    if S <= target:
        return S
    for cand in range(target, 0, -1):
        if S % cand == 0:
            return cand
    return S


def qgru_forward(x, h0, kernel_params, *, batch_block=None, seq_block=None,
                 vmem_limit_bytes=48 * 1024 * 1024):
    """x: (B, S, 2), h0: (L, B, H) -> (B, S, O), batch-first like the nn.Module."""
    B, S, _ = x.shape
    L, _, H = h0.shape
    wih0, wihr, bih, whh, bhhn, wout, bout = kernel_params
    Hp = whh.shape[1]
    O = wout.shape[1]

    # Batch sharding: default to two blocks when B allows, so the "parallel"
    # batch grid axis shards across the two v7x TensorCores.  Single-TC chips
    # (v5e/v6e) just run the blocks back-to-back (~0.35us/grid-step overhead).
    if batch_block is None:
        Bb = B // 2 if (B % 16 == 0) else B
    else:
        Bb = batch_block
    assert B % Bb == 0
    assert Bb == B or Bb % 8 == 0, "batch_block must be a multiple of 8"

    # Sequence chunking: gi/buf scratch is (Sc, Bb, 4*Hp) instead of (S, ...),
    # so kernel VMEM no longer scales with sequence length.
    Sc = _pick_seq_block(S) if seq_block is None else seq_block
    assert S % Sc == 0
    nc = S // Sc

    # pad h0's feature dim to the lane-padded hidden width (exact zeros)
    if Hp != H:
        h0 = jnp.pad(h0, ((0, 0), (0, 0), (0, Hp - H)))

    x_sb = jnp.transpose(x, (1, 0, 2))                                 # time-major (S, B, 2)

    out_sb = pl.pallas_call(
        _qgru_kernel,
        out_shape=jax.ShapeDtypeStruct((S, B, O), jnp.float32),
        grid=(B // Bb, nc),
        in_specs=[
            pl.BlockSpec((S, Bb, 2), lambda b, c: (0, b, 0)),          # x (full seq, resident)
            pl.BlockSpec((L, Bb, Hp), lambda b, c: (0, b, 0)),         # h0
            pl.BlockSpec(wih0.shape, lambda b, c: (0, 0)),             # W_ih layer 0 (4, 3Hp)
            pl.BlockSpec(wihr.shape, lambda b, c: (0, 0, 0)),          # W_ih layers 1..L-1
            pl.BlockSpec(bih.shape, lambda b, c: (0, 0, 0)),           # folded gi bias
            pl.BlockSpec(whh.shape, lambda b, c: (0, 0, 0)),           # fused W_hh
            pl.BlockSpec(bhhn.shape, lambda b, c: (0, 0, 0)),          # n-gate hidden bias
            pl.BlockSpec(wout.shape, lambda b, c: (0, 0)),             # fc_out weight
            pl.BlockSpec(bout.shape, lambda b, c: (0, 0)),             # fc_out bias
        ],
        out_specs=pl.BlockSpec((S, Bb, O), lambda b, c: (0, b, 0)),
        scratch_shapes=[
            pltpu.VMEM((Sc, Bb, Hp), MATMUL_DTYPE),                    # layer activations
            pltpu.VMEM((Sc, Bb, 3 * Hp), MATMUL_DTYPE),                # gate pre-activations
            pltpu.VMEM((L, Bb, Hp), jnp.float32),                      # hidden-state carry
            pltpu.VMEM((2, Bb, 1), jnp.float32),                       # bn_in mean / rstd
            pltpu.VMEM((S, Bb, O), jnp.float32),                       # raw fc_out (pre bn_out)
        ],
        compiler_params=pltpu.CompilerParams(
            dimension_semantics=("parallel", "arbitrary"),
            # Retune per generation: raise toward 64-100 MiB on v5e/v6e
            # (128 MiB physical) for larger Sc; keep <= 48 MiB on v7x (64 MiB).
            vmem_limit_bytes=vmem_limit_bytes,
        ),
    )(x_sb, h0, wih0, wihr, bih, whh, bhhn, wout, bout)

    return jnp.transpose(out_sb, (1, 0, 2))


# ------------------------ parameter construction ------------------------
def _pad_gate_cols(w, H, Hp):
    """(K, 3H) -> (K, 3Hp): each gate's columns zero-padded to a 128-lane block."""
    gates = [jnp.pad(w[:, g * H:(g + 1) * H], ((0, 0), (0, Hp - H))) for g in range(3)]
    return jnp.concatenate(gates, axis=1)


def init_params(key, H, O, L):
    """Deterministic synthetic GRU / Linear parameters.

    Returns (kernel_params, raw_params): kernel_params are repacked for the
    Pallas kernel (transposed, gates fused along a lane-padded Hp axis so every
    gate slice is a whole-vreg view, biases folded, matmul operands cast to
    MATMUL_DTYPE); raw_params keep the PyTorch layout for the reference.
    """
    Hp = _round_up(H, 128)
    keys = jax.random.split(key, 4 * L + 2)
    ki = 0
    raw_layers = []
    wih0 = None
    wihr, bih_fold, whh_t, bhh_n = [], [], [], []
    for l in range(L):
        in_l = 4 if l == 0 else H
        w_ih = jax.random.normal(keys[ki], (3 * H, in_l), jnp.float32) * 0.3; ki += 1
        w_hh = jax.random.normal(keys[ki], (3 * H, H), jnp.float32) * 0.3; ki += 1
        b_ih = jax.random.normal(keys[ki], (3 * H,), jnp.float32) * 0.1; ki += 1
        b_hh = jax.random.normal(keys[ki], (3 * H,), jnp.float32) * 0.1; ki += 1
        raw_layers.append((w_ih, w_hh, b_ih, b_hh))

        w_ih_t = _pad_gate_cols(w_ih.T, H, Hp)                  # (in_l, 3Hp)
        if l == 0:
            wih0 = w_ih_t                                       # keep K=4, no row padding
        else:
            wihr.append(jnp.pad(w_ih_t, ((0, Hp - H), (0, 0))))  # (Hp, 3Hp)
        whh_t.append(jnp.pad(_pad_gate_cols(w_hh.T, H, Hp), ((0, Hp - H), (0, 0))))
        # Fold b_ih and the r/z parts of b_hh into the hoisted gi bias; the
        # n-gate b_hh must stay inside the recurrence: tanh(gi_n + r*(gh_n+b_hn)).
        fold = jnp.concatenate([b_ih[:2 * H] + b_hh[:2 * H], b_ih[2 * H:]])
        bih_fold.append(_pad_gate_cols(fold[None, :], H, Hp))    # (1, 3Hp)
        bhh_n.append(jnp.pad(b_hh[2 * H:][None, :], ((0, 0), (0, Hp - H))))  # (1, Hp)

    w_out = jax.random.normal(keys[ki], (O, H), jnp.float32) * 0.3; ki += 1
    b_out = jax.random.normal(keys[ki], (O,), jnp.float32) * 0.1; ki += 1

    if len(wihr) == 0:                 # L == 1: small unused dummy block
        wihr = [jnp.zeros((Hp, 3 * Hp), jnp.float32)]

    kernel_params = (
        wih0.astype(MATMUL_DTYPE),
        jnp.stack(wihr).astype(MATMUL_DTYPE),
        jnp.stack(bih_fold),
        jnp.stack(whh_t).astype(MATMUL_DTYPE),
        jnp.stack(bhh_n),
        jnp.pad(w_out.T, ((0, Hp - H), (0, 0))).astype(MATMUL_DTYPE),  # (Hp, O)
        b_out[None, :],
    )
    return kernel_params, (raw_layers, w_out, b_out)


# ---------------- pure-JAX reference (mirrors the PyTorch forward) ----------------
def _instnorm(x):  # x: (B, S, F); InstanceNorm2d with C=batch on a 3-D tensor
    mean = jnp.mean(x, axis=(1, 2), keepdims=True)
    var = jnp.mean((x - mean) ** 2, axis=(1, 2), keepdims=True)
    return (x - mean) * jax.lax.rsqrt(var + EPS)


def ref_forward(x, h0, raw_layers, w_out, b_out):
    H = h0.shape[-1]
    i_x = x[..., 0:1]
    q_x = x[..., 1:2]
    amp = jnp.sqrt(i_x ** 2 + q_x ** 2)
    feats = jnp.concatenate([i_x, q_x, amp, amp ** 3], axis=-1)
    inp = _instnorm(feats)
    for l, (w_ih, w_hh, b_ih, b_hh) in enumerate(raw_layers):
        h = h0[l]
        outs = []
        for t in range(inp.shape[1]):
            x_t = inp[:, t, :]
            gi = x_t @ w_ih.T + b_ih
            gh = h @ w_hh.T + b_hh
            r = jax.nn.sigmoid(gi[:, :H] + gh[:, :H])
            z = jax.nn.sigmoid(gi[:, H:2 * H] + gh[:, H:2 * H])
            n = jnp.tanh(gi[:, 2 * H:] + r * gh[:, 2 * H:])
            h = (1.0 - z) * n + z * h
            outs.append(h)
        inp = jnp.stack(outs, axis=1)
    y = inp @ w_out.T + b_out
    return _instnorm(y)


if __name__ == "__main__":
    key = jax.random.PRNGKey(0)
    keys = jax.random.split(key, 6)

    # Config 1: multi-chunk sequence path (seq_block=4 -> 2 chunks), 2 layers.
    B, S, H, O, L = 2, 8, 32, 4, 2
    x = jax.random.normal(keys[0], (B, S, 2), jnp.float32)
    h0 = jax.random.normal(keys[1], (L, B, H), jnp.float32) * 0.1
    kernel_params, (raw_layers, w_out, b_out) = init_params(keys[2], H, O, L)
    out = jax.block_until_ready(qgru_forward(x, h0, kernel_params, seq_block=4))
    ref = ref_forward(x, h0, raw_layers, w_out, b_out)
    assert out.shape == (B, S, O)
    np.testing.assert_allclose(np.asarray(out), np.asarray(ref), atol=2e-3, rtol=2e-3)

    # Config 2: batch sharded into two blocks (v7x megacore path), single layer.
    B2, S2, H2, O2, L2 = 16, 8, 32, 4, 1
    x2 = jax.random.normal(keys[3], (B2, S2, 2), jnp.float32)
    h02 = jax.random.normal(keys[4], (L2, B2, H2), jnp.float32) * 0.1
    kparams2, (raw2, w_out2, b_out2) = init_params(keys[5], H2, O2, L2)
    out2 = jax.block_until_ready(qgru_forward(x2, h02, kparams2))
    ref2 = ref_forward(x2, h02, raw2, w_out2, b_out2)
    np.testing.assert_allclose(np.asarray(out2), np.asarray(ref2), atol=2e-3, rtol=2e-3)

    print("KERNEL_OK")
</pallas_src>

<mosaic_0001>
module attributes {stable_mosaic.version = 11 : i64} {
  func.func @_qgru_kernel(%arg0: i32, %arg1: i32, %arg2: memref<8x2x2xf32, #tpu.memory_space<vmem>>, %arg3: memref<2x2x128xf32, #tpu.memory_space<vmem>>, %arg4: memref<4x384xf32, #tpu.memory_space<vmem>>, %arg5: memref<1x128x384xf32, #tpu.memory_space<vmem>>, %arg6: memref<2x1x384xf32, #tpu.memory_space<vmem>>, %arg7: memref<2x128x384xf32, #tpu.memory_space<vmem>>, %arg8: memref<2x1x128xf32, #tpu.memory_space<vmem>>, %arg9: memref<128x4xf32, #tpu.memory_space<vmem>>, %arg10: memref<1x4xf32, #tpu.memory_space<vmem>>, %arg11: memref<8x2x4xf32, #tpu.memory_space<vmem>>, %arg12: memref<4x2x128xf32, #tpu.memory_space<vmem>>, %arg13: memref<4x2x384xf32, #tpu.memory_space<vmem>>, %arg14: memref<2x2x128xf32, #tpu.memory_space<vmem>>, %arg15: memref<2x2x1xf32, #tpu.memory_space<vmem>>, %arg16: memref<8x2x4xf32, #tpu.memory_space<vmem>>) attributes {dimension_semantics = [#tpu.dimension_semantics<parallel>, #tpu.dimension_semantics<arbitrary>], iteration_bounds = array<i64: 1, 2>, scalar_prefetch = 0 : i64, scratch_operands = 5 : i64, tpu.core_type = #tpu.core_type<tc>, window_params = [{transform_indices = @transform_0, window_bounds = array<i64: 8, 2, 2>}, {transform_indices = @transform_1, window_bounds = array<i64: 2, 2, 128>}, {pipeline_mode = #tpu.pipeline_mode<synchronous>, transform_indices = @transform_2, window_bounds = array<i64: 4, 384>}, {pipeline_mode = #tpu.pipeline_mode<synchronous>, transform_indices = @transform_3, window_bounds = array<i64: 1, 128, 384>}, {pipeline_mode = #tpu.pipeline_mode<synchronous>, transform_indices = @transform_4, window_bounds = array<i64: 2, 1, 384>}, {pipeline_mode = #tpu.pipeline_mode<synchronous>, transform_indices = @transform_5, window_bounds = array<i64: 2, 128, 384>}, {pipeline_mode = #tpu.pipeline_mode<synchronous>, transform_indices = @transform_6, window_bounds = array<i64: 2, 1, 128>}, {pipeline_mode = #tpu.pipeline_mode<synchronous>, transform_indices = @transform_7, window_bounds = array<i64: 128, 4>}, {pipeline_mode = #tpu.pipeline_mode<synchronous>, transform_indices = @transform_8, window_bounds = array<i64: 1, 4>}, {transform_indices = @transform_9, window_bounds = array<i64: 8, 2, 4>}]} {
    %c4_i32 = arith.constant 4 : i32
    %0 = arith.muli %arg1, %c4_i32 : i32
    %1 = tpu.assume_multiple %0, 4 : i32
    %c0_i32 = arith.constant 0 : i32
    %2 = arith.cmpi eq, %arg1, %c0_i32 : i32
    %3 = arith.extui %2 : i1 to i32
    %c0_i32_0 = arith.constant 0 : i32
    %4 = arith.cmpi ne, %3, %c0_i32_0 : i32
    scf.if %4 {
      %c0_127 = arith.constant 0 : index
      %c0_128 = arith.constant 0 : index
      %c0_129 = arith.constant 0 : index
      %317 = vector.load %arg3[%c0_127, %c0_128, %c0_129] : memref<2x2x128xf32, #tpu.memory_space<vmem>>, vector<2x2x128xf32>
      %c0_130 = arith.constant 0 : index
      %c0_131 = arith.constant 0 : index
      %c0_132 = arith.constant 0 : index
      %318 = vector.load %arg14[%c0_130, %c0_131, %c0_132] : memref<2x2x128xf32, #tpu.memory_space<vmem>>, vector<2x2x128xf32>
      tpu.vector_store %arg14[%c0_130, %c0_131, %c0_132], %317 {strides = array<i32>} : memref<2x2x128xf32, #tpu.memory_space<vmem>>, vector<2x2x128xf32>,
      %c0_133 = arith.constant 0 : index
      %c0_134 = arith.constant 0 : index
      %c0_135 = arith.constant 0 : index
      %319 = vector.load %arg2[%c0_133, %c0_134, %c0_135] : memref<8x2x2xf32, #tpu.memory_space<vmem>>, vector<8x2x2xf32>
      %320 = vector.extract_strided_slice %319 {offsets = [0, 0, 0], sizes = [8, 2, 1], strides = [1, 1, 1]} : vector<8x2x2xf32> to vector<8x2x1xf32>
      %321 = vector.extract_strided_slice %319 {offsets = [0, 0, 1], sizes = [8, 2, 1], strides = [1, 1, 1]} : vector<8x2x2xf32> to vector<8x2x1xf32>
      %322 = arith.mulf %320, %320 : vector<8x2x1xf32>
      %323 = arith.mulf %321, %321 : vector<8x2x1xf32>
      %324 = arith.addf %322, %323 : vector<8x2x1xf32>
      %325 = math.sqrt %324 : vector<8x2x1xf32>
      %326 = arith.mulf %325, %325 : vector<8x2x1xf32>
      %327 = arith.mulf %326, %325 : vector<8x2x1xf32>
      %328 = tpu.concatenate %320, %321, %325, %327 in 2 : vector<8x2x1xf32>, vector<8x2x1xf32>, vector<8x2x1xf32>, vector<8x2x1xf32> -> vector<8x2x4xf32>
      %cst_136 = arith.constant dense<0.000000e+00> : vector<2xf32>
      %329 = vector.multi_reduction <add>, %328, %cst_136 [0, 2] : vector<8x2x4xf32> to vector<2xf32>
      %330 = vector.shape_cast %329 : vector<2xf32> to vector<1x2x1xf32>
      %cst_137 = arith.constant 3.200000e+01 : f32
      %331 = vector.broadcast %cst_137 : f32 to vector<1x2x1xf32>
      %332 = arith.divf %330, %331 : vector<1x2x1xf32>
      %333 = vector.broadcast %332 : vector<1x2x1xf32> to vector<8x2x4xf32>
      %334 = arith.subf %328, %333 : vector<8x2x4xf32>
      %335 = arith.mulf %334, %334 : vector<8x2x4xf32>
      %cst_138 = arith.constant dense<0.000000e+00> : vector<2xf32>
      %336 = vector.multi_reduction <add>, %335, %cst_138 [0, 2] : vector<8x2x4xf32> to vector<2xf32>
      %337 = vector.shape_cast %336 : vector<2xf32> to vector<1x2x1xf32>
      %cst_139 = arith.constant 3.200000e+01 : f32
      %338 = vector.broadcast %cst_139 : f32 to vector<1x2x1xf32>
      %339 = arith.divf %337, %338 : vector<1x2x1xf32>
      %340 = vector.shape_cast %332 : vector<1x2x1xf32> to vector<2x1xf32>
      %c0_140 = arith.constant 0 : index
      %c0_141 = arith.constant 0 : index
      %c0_142 = arith.constant 0 : index
      %341 = vector.load %arg15[%c0_140, %c0_141, %c0_142] : memref<2x2x1xf32, #tpu.memory_space<vmem>>, vector<1x2x1xf32>
      %342 = vector.shape_cast %341 : vector<1x2x1xf32> to vector<2x1xf32>
      %343 = vector.shape_cast %340 : vector<2x1xf32> to vector<1x2x1xf32>
      tpu.vector_store %arg15[%c0_140, %c0_141, %c0_142], %343 {strides = array<i32>} : memref<2x2x1xf32, #tpu.memory_space<vmem>>, vector<1x2x1xf32>,
      %cst_143 = arith.constant 9.99999974E-6 : f32
      %344 = vector.broadcast %cst_143 : f32 to vector<1x2x1xf32>
      %345 = arith.addf %339, %344 : vector<1x2x1xf32>
      %346 = math.rsqrt %345 : vector<1x2x1xf32>
      %347 = vector.shape_cast %346 : vector<1x2x1xf32> to vector<2x1xf32>
      %c1_144 = arith.constant 1 : index
      %c0_145 = arith.constant 0 : index
      %c0_146 = arith.constant 0 : index
      %348 = vector.load %arg15[%c1_144, %c0_145, %c0_146] : memref<2x2x1xf32, #tpu.memory_space<vmem>>, vector<1x2x1xf32>
      %349 = vector.shape_cast %348 : vector<1x2x1xf32> to vector<2x1xf32>
      %350 = vector.shape_cast %347 : vector<2x1xf32> to vector<1x2x1xf32>
      tpu.vector_store %arg15[%c1_144, %c0_145, %c0_146], %350 {strides = array<i32>} : memref<2x2x1xf32, #tpu.memory_space<vmem>>, vector<1x2x1xf32>,
    } else {
    }
    %5 = arith.index_cast %1 : i32 to index
    %c0 = arith.constant 0 : index
    %c0_1 = arith.constant 0 : index
    %6 = vector.load %arg2[%5, %c0, %c0_1] : memref<8x2x2xf32, #tpu.memory_space<vmem>>, vector<4x2x2xf32>
    %7 = vector.extract_strided_slice %6 {offsets = [0, 0, 0], sizes = [4, 2, 1], strides = [1, 1, 1]} : vector<4x2x2xf32> to vector<4x2x1xf32>
    %8 = vector.extract_strided_slice %6 {offsets = [0, 0, 1], sizes = [4, 2, 1], strides = [1, 1, 1]} : vector<4x2x2xf32> to vector<4x2x1xf32>
    %9 = arith.mulf %7, %7 : vector<4x2x1xf32>
    %10 = arith.mulf %8, %8 : vector<4x2x1xf32>
    %11 = arith.addf %9, %10 : vector<4x2x1xf32>
    %12 = math.sqrt %11 : vector<4x2x1xf32>
    %13 = arith.mulf %12, %12 : vector<4x2x1xf32>
    %14 = arith.mulf %13, %12 : vector<4x2x1xf32>
    %15 = tpu.concatenate %7, %8, %12, %14 in 2 : vector<4x2x1xf32>, vector<4x2x1xf32>, vector<4x2x1xf32>, vector<4x2x1xf32> -> vector<4x2x4xf32>
    %c0_2 = arith.constant 0 : index
    %c0_3 = arith.constant 0 : index
    %c0_4 = arith.constant 0 : index
    %16 = vector.load %arg15[%c0_2, %c0_3, %c0_4] : memref<2x2x1xf32, #tpu.memory_space<vmem>>, vector<1x2x1xf32>
    %17 = vector.shape_cast %16 : vector<1x2x1xf32> to vector<2x1xf32>
    %18 = vector.shape_cast %17 : vector<2x1xf32> to vector<1x2x1xf32>
    %19 = vector.broadcast %18 : vector<1x2x1xf32> to vector<4x2x4xf32>
    %20 = arith.subf %15, %19 : vector<4x2x4xf32>
    %c1 = arith.constant 1 : index
    %c0_5 = arith.constant 0 : index
    %c0_6 = arith.constant 0 : index
    %21 = vector.load %arg15[%c1, %c0_5, %c0_6] : memref<2x2x1xf32, #tpu.memory_space<vmem>>, vector<1x2x1xf32>
    %22 = vector.shape_cast %21 : vector<1x2x1xf32> to vector<2x1xf32>
    %23 = vector.shape_cast %22 : vector<2x1xf32> to vector<1x2x1xf32>
    %24 = vector.broadcast %23 : vector<1x2x1xf32> to vector<4x2x4xf32>
    %25 = arith.mulf %20, %24 : vector<4x2x4xf32>
    %26 = vector.shape_cast %25 : vector<4x2x4xf32> to vector<8x4xf32>
    %c0_7 = arith.constant 0 : index
    %c0_8 = arith.constant 0 : index
    %27 = vector.load %arg4[%c0_7, %c0_8] : memref<4x384xf32, #tpu.memory_space<vmem>>, vector<4x384xf32>
    %cst = arith.constant dense<0.000000e+00> : vector<8x384xf32>
    %28 = tpu.matmul %26, %27, %cst {dimension_numbers = #tpu.dot_dimension_numbers<[1], [0], [0], [1], [0, 0, 1, 1], [], []>} : vector<8x4xf32>, vector<4x384xf32>, vector<8x384xf32> -> vector<8x384xf32>
    %c0_9 = arith.constant 0 : index
    %c0_10 = arith.constant 0 : index
    %c0_11 = arith.constant 0 : index
    %29 = vector.load %arg6[%c0_9, %c0_10, %c0_11] : memref<2x1x384xf32, #tpu.memory_space<vmem>>, vector<1x1x384xf32>
    %30 = vector.shape_cast %29 : vector<1x1x384xf32> to vector<1x384xf32>
    %31 = vector.broadcast %30 : vector<1x384xf32> to vector<8x384xf32>
    %32 = arith.addf %28, %31 : vector<8x384xf32>
    %33 = vector.shape_cast %32 : vector<8x384xf32> to vector<4x2x384xf32>
    %c0_12 = arith.constant 0 : index
    %c0_13 = arith.constant 0 : index
    %c0_14 = arith.constant 0 : index
    %34 = vector.load %arg13[%c0_12, %c0_13, %c0_14] : memref<4x2x384xf32, #tpu.memory_space<vmem>>, vector<4x2x384xf32>
    tpu.vector_store %arg13[%c0_12, %c0_13, %c0_14], %33 {strides = array<i32>} : memref<4x2x384xf32, #tpu.memory_space<vmem>>, vector<4x2x384xf32>,
    %c0_15 = arith.constant 0 : index
    %c0_16 = arith.constant 0 : index
    %c0_17 = arith.constant 0 : index
    %35 = vector.load %arg7[%c0_15, %c0_16, %c0_17] : memref<2x128x384xf32, #tpu.memory_space<vmem>>, vector<1x128x384xf32>
    %36 = vector.shape_cast %35 : vector<1x128x384xf32> to vector<128x384xf32>
    %c0_18 = arith.constant 0 : index
    %c0_19 = arith.constant 0 : index
    %c0_20 = arith.constant 0 : index
    %37 = vector.load %arg8[%c0_18, %c0_19, %c0_20] : memref<2x1x128xf32, #tpu.memory_space<vmem>>, vector<1x1x128xf32>
    %38 = vector.shape_cast %37 : vector<1x1x128xf32> to vector<1x128xf32>
    %c0_21 = arith.constant 0 : index
    %c0_22 = arith.constant 0 : index
    %c0_23 = arith.constant 0 : index
    %39 = vector.load %arg14[%c0_21, %c0_22, %c0_23] : memref<2x2x128xf32, #tpu.memory_space<vmem>>, vector<1x2x128xf32>
    %40 = vector.shape_cast %39 : vector<1x2x128xf32> to vector<2x128xf32>
    %c0_i32_24 = arith.constant 0 : i32
    %41 = arith.index_cast %c0_i32_24 : i32 to index
    %c0_25 = arith.constant 0 : index
    %c0_26 = arith.constant 0 : index
    %42 = vector.load %arg13[%41, %c0_25, %c0_26] : memref<4x2x384xf32, #tpu.memory_space<vmem>>, vector<1x2x384xf32>
    %43 = vector.shape_cast %42 : vector<1x2x384xf32> to vector<2x384xf32>
    %cst_27 = arith.constant dense<0.000000e+00> : vector<2x384xf32>
    %44 = tpu.matmul %40, %36, %cst_27 {dimension_numbers = #tpu.dot_dimension_numbers<[1], [0], [0], [1], [0, 0, 1, 1], [], []>} : vector<2x128xf32>, vector<128x384xf32>, vector<2x384xf32> -> vector<2x384xf32>
    %45 = vector.extract_strided_slice %43 {offsets = [0, 0], sizes = [2, 256], strides = [1, 1]} : vector<2x384xf32> to vector<2x256xf32>
    %46 = vector.extract_strided_slice %44 {offsets = [0, 0], sizes = [2, 256], strides = [1, 1]} : vector<2x384xf32> to vector<2x256xf32>
    %47 = arith.addf %45, %46 : vector<2x256xf32>
    %48 = arith.negf %47 : vector<2x256xf32>
    %49 = math.exp %48 : vector<2x256xf32>
    %cst_28 = arith.constant 1.000000e+00 : f32
    %50 = vector.broadcast %cst_28 : f32 to vector<2x256xf32>
    %51 = arith.addf %50, %49 : vector<2x256xf32>
    %52 = arith.divf %50, %51 : vector<2x256xf32>
    %53 = vector.extract_strided_slice %52 {offsets = [0, 0], sizes = [2, 128], strides = [1, 1]} : vector<2x256xf32> to vector<2x128xf32>
    %54 = vector.extract_strided_slice %52 {offsets = [0, 128], sizes = [2, 128], strides = [1, 1]} : vector<2x256xf32> to vector<2x128xf32>
    %55 = vector.extract_strided_slice %43 {offsets = [0, 256], sizes = [2, 128], strides = [1, 1]} : vector<2x384xf32> to vector<2x128xf32>
    %56 = vector.extract_strided_slice %44 {offsets = [0, 256], sizes = [2, 128], strides = [1, 1]} : vector<2x384xf32> to vector<2x128xf32>
    %57 = vector.broadcast %38 : vector<1x128xf32> to vector<2x128xf32>
    %58 = arith.addf %56, %57 : vector<2x128xf32>
    %59 = arith.mulf %53, %58 : vector<2x128xf32>
    %60 = arith.addf %55, %59 : vector<2x128xf32>
    %61 = math.tanh %60 : vector<2x128xf32>
    %cst_29 = arith.constant 1.000000e+00 : f32
    %62 = vector.broadcast %cst_29 : f32 to vector<2x128xf32>
    %63 = arith.subf %62, %54 : vector<2x128xf32>
    %64 = arith.mulf %63, %61 : vector<2x128xf32>
    %65 = arith.mulf %54, %40 : vector<2x128xf32>
    %66 = arith.addf %64, %65 : vector<2x128xf32>
    %67 = arith.index_cast %c0_i32_24 : i32 to index
    %c0_30 = arith.constant 0 : index
    %c0_31 = arith.constant 0 : index
    %68 = vector.load %arg12[%67, %c0_30, %c0_31] : memref<4x2x128xf32, #tpu.memory_space<vmem>>, vector<1x2x128xf32>
    %69 = vector.shape_cast %68 : vector<1x2x128xf32> to vector<2x128xf32>
    %70 = vector.shape_cast %66 : vector<2x128xf32> to vector<1x2x128xf32>
    tpu.vector_store %arg12[%67, %c0_30, %c0_31], %70 {strides = array<i32>} : memref<4x2x128xf32, #tpu.memory_space<vmem>>, vector<1x2x128xf32>,
    %c1_i32 = arith.constant 1 : i32
    %71 = arith.index_cast %c1_i32 : i32 to index
    %c0_32 = arith.constant 0 : index
    %c0_33 = arith.constant 0 : index
    %72 = vector.load %arg13[%71, %c0_32, %c0_33] : memref<4x2x384xf32, #tpu.memory_space<vmem>>, vector<1x2x384xf32>
    %73 = vector.shape_cast %72 : vector<1x2x384xf32> to vector<2x384xf32>
    %cst_34 = arith.constant dense<0.000000e+00> : vector<2x384xf32>
    %74 = tpu.matmul %66, %36, %cst_34 {dimension_numbers = #tpu.dot_dimension_numbers<[1], [0], [0], [1], [0, 0, 1, 1], [], []>} : vector<2x128xf32>, vector<128x384xf32>, vector<2x384xf32> -> vector<2x384xf32>
    %75 = vector.extract_strided_slice %73 {offsets = [0, 0], sizes = [2, 256], strides = [1, 1]} : vector<2x384xf32> to vector<2x256xf32>
    %76 = vector.extract_strided_slice %74 {offsets = [0, 0], sizes = [2, 256], strides = [1, 1]} : vector<2x384xf32> to vector<2x256xf32>
    %77 = arith.addf %75, %76 : vector<2x256xf32>
    %78 = arith.negf %77 : vector<2x256xf32>
    %79 = math.exp %78 : vector<2x256xf32>
    %cst_35 = arith.constant 1.000000e+00 : f32
    %80 = vector.broadcast %cst_35 : f32 to vector<2x256xf32>
    %81 = arith.addf %80, %79 : vector<2x256xf32>
    %82 = arith.divf %80, %81 : vector<2x256xf32>
    %83 = vector.extract_strided_slice %82 {offsets = [0, 0], sizes = [2, 128], strides = [1, 1]} : vector<2x256xf32> to vector<2x128xf32>
    %84 = vector.extract_strided_slice %82 {offsets = [0, 128], sizes = [2, 128], strides = [1, 1]} : vector<2x256xf32> to vector<2x128xf32>
    %85 = vector.extract_strided_slice %73 {offsets = [0, 256], sizes = [2, 128], strides = [1, 1]} : vector<2x384xf32> to vector<2x128xf32>
    %86 = vector.extract_strided_slice %74 {offsets = [0, 256], sizes = [2, 128], strides = [1, 1]} : vector<2x384xf32> to vector<2x128xf32>
    %87 = vector.broadcast %38 : vector<1x128xf32> to vector<2x128xf32>
    %88 = arith.addf %86, %87 : vector<2x128xf32>
    %89 = arith.mulf %83, %88 : vector<2x128xf32>
    %90 = arith.addf %85, %89 : vector<2x128xf32>
    %91 = math.tanh %90 : vector<2x128xf32>
    %cst_36 = arith.constant 1.000000e+00 : f32
    %92 = vector.broadcast %cst_36 : f32 to vector<2x128xf32>
    %93 = arith.subf %92, %84 : vector<2x128xf32>
    %94 = arith.mulf %93, %91 : vector<2x128xf32>
    %95 = arith.mulf %84, %66 : vector<2x128xf32>
    %96 = arith.addf %94, %95 : vector<2x128xf32>
    %97 = arith.index_cast %c1_i32 : i32 to index
    %c0_37 = arith.constant 0 : index
    %c0_38 = arith.constant 0 : index
    %98 = vector.load %arg12[%97, %c0_37, %c0_38] : memref<4x2x128xf32, #tpu.memory_space<vmem>>, vector<1x2x128xf32>
    %99 = vector.shape_cast %98 : vector<1x2x128xf32> to vector<2x128xf32>
    %100 = vector.shape_cast %96 : vector<2x128xf32> to vector<1x2x128xf32>
    tpu.vector_store %arg12[%97, %c0_37, %c0_38], %100 {strides = array<i32>} : memref<4x2x128xf32, #tpu.memory_space<vmem>>, vector<1x2x128xf32>,
    %c2_i32 = arith.constant 2 : i32
    %101 = arith.index_cast %c2_i32 : i32 to index
    %c0_39 = arith.constant 0 : index
    %c0_40 = arith.constant 0 : index
    %102 = vector.load %arg13[%101, %c0_39, %c0_40] : memref<4x2x384xf32, #tpu.memory_space<vmem>>, vector<1x2x384xf32>
    %103 = vector.shape_cast %102 : vector<1x2x384xf32> to vector<2x384xf32>
    %cst_41 = arith.constant dense<0.000000e+00> : vector<2x384xf32>
    %104 = tpu.matmul %96, %36, %cst_41 {dimension_numbers = #tpu.dot_dimension_numbers<[1], [0], [0], [1], [0, 0, 1, 1], [], []>} : vector<2x128xf32>, vector<128x384xf32>, vector<2x384xf32> -> vector<2x384xf32>
    %105 = vector.extract_strided_slice %103 {offsets = [0, 0], sizes = [2, 256], strides = [1, 1]} : vector<2x384xf32> to vector<2x256xf32>
    %106 = vector.extract_strided_slice %104 {offsets = [0, 0], sizes = [2, 256], strides = [1, 1]} : vector<2x384xf32> to vector<2x256xf32>
    %107 = arith.addf %105, %106 : vector<2x256xf32>
    %108 = arith.negf %107 : vector<2x256xf32>
    %109 = math.exp %108 : vector<2x256xf32>
    %cst_42 = arith.constant 1.000000e+00 : f32
    %110 = vector.broadcast %cst_42 : f32 to vector<2x256xf32>
    %111 = arith.addf %110, %109 : vector<2x256xf32>
    %112 = arith.divf %110, %111 : vector<2x256xf32>
    %113 = vector.extract_strided_slice %112 {offsets = [0, 0], sizes = [2, 128], strides = [1, 1]} : vector<2x256xf32> to vector<2x128xf32>
    %114 = vector.extract_strided_slice %112 {offsets = [0, 128], sizes = [2, 128], strides = [1, 1]} : vector<2x256xf32> to vector<2x128xf32>
    %115 = vector.extract_strided_slice %103 {offsets = [0, 256], sizes = [2, 128], strides = [1, 1]} : vector<2x384xf32> to vector<2x128xf32>
    %116 = vector.extract_strided_slice %104 {offsets = [0, 256], sizes = [2, 128], strides = [1, 1]} : vector<2x384xf32> to vector<2x128xf32>
    %117 = vector.broadcast %38 : vector<1x128xf32> to vector<2x128xf32>
    %118 = arith.addf %116, %117 : vector<2x128xf32>
    %119 = arith.mulf %113, %118 : vector<2x128xf32>
    %120 = arith.addf %115, %119 : vector<2x128xf32>
    %121 = math.tanh %120 : vector<2x128xf32>
    %cst_43 = arith.constant 1.000000e+00 : f32
    %122 = vector.broadcast %cst_43 : f32 to vector<2x128xf32>
    %123 = arith.subf %122, %114 : vector<2x128xf32>
    %124 = arith.mulf %123, %121 : vector<2x128xf32>
    %125 = arith.mulf %114, %96 : vector<2x128xf32>
    %126 = arith.addf %124, %125 : vector<2x128xf32>
    %127 = arith.index_cast %c2_i32 : i32 to index
    %c0_44 = arith.constant 0 : index
    %c0_45 = arith.constant 0 : index
    %128 = vector.load %arg12[%127, %c0_44, %c0_45] : memref<4x2x128xf32, #tpu.memory_space<vmem>>, vector<1x2x128xf32>
    %129 = vector.shape_cast %128 : vector<1x2x128xf32> to vector<2x128xf32>
    %130 = vector.shape_cast %126 : vector<2x128xf32> to vector<1x2x128xf32>
    tpu.vector_store %arg12[%127, %c0_44, %c0_45], %130 {strides = array<i32>} : memref<4x2x128xf32, #tpu.memory_space<vmem>>, vector<1x2x128xf32>,
    %c3_i32 = arith.constant 3 : i32
    %131 = arith.index_cast %c3_i32 : i32 to index
    %c0_46 = arith.constant 0 : index
    %c0_47 = arith.constant 0 : index
    %132 = vector.load %arg13[%131, %c0_46, %c0_47] : memref<4x2x384xf32, #tpu.memory_space<vmem>>, vector<1x2x384xf32>
    %133 = vector.shape_cast %132 : vector<1x2x384xf32> to vector<2x384xf32>
    %cst_48 = arith.constant dense<0.000000e+00> : vector<2x384xf32>
    %134 = tpu.matmul %126, %36, %cst_48 {dimension_numbers = #tpu.dot_dimension_numbers<[1], [0], [0], [1], [0, 0, 1, 1], [], []>} : vector<2x128xf32>, vector<128x384xf32>, vector<2x384xf32> -> vector<2x384xf32>
    %135 = vector.extract_strided_slice %133 {offsets = [0, 0], sizes = [2, 256], strides = [1, 1]} : vector<2x384xf32> to vector<2x256xf32>
    %136 = vector.extract_strided_slice %134 {offsets = [0, 0], sizes = [2, 256], strides = [1, 1]} : vector<2x384xf32> to vector<2x256xf32>
    %137 = arith.addf %135, %136 : vector<2x256xf32>
    %138 = arith.negf %137 : vector<2x256xf32>
    %139 = math.exp %138 : vector<2x256xf32>
    %cst_49 = arith.constant 1.000000e+00 : f32
    %140 = vector.broadcast %cst_49 : f32 to vector<2x256xf32>
    %141 = arith.addf %140, %139 : vector<2x256xf32>
    %142 = arith.divf %140, %141 : vector<2x256xf32>
    %143 = vector.extract_strided_slice %142 {offsets = [0, 0], sizes = [2, 128], strides = [1, 1]} : vector<2x256xf32> to vector<2x128xf32>
    %144 = vector.extract_strided_slice %142 {offsets = [0, 128], sizes = [2, 128], strides = [1, 1]} : vector<2x256xf32> to vector<2x128xf32>
    %145 = vector.extract_strided_slice %133 {offsets = [0, 256], sizes = [2, 128], strides = [1, 1]} : vector<2x384xf32> to vector<2x128xf32>
    %146 = vector.extract_strided_slice %134 {offsets = [0, 256], sizes = [2, 128], strides = [1, 1]} : vector<2x384xf32> to vector<2x128xf32>
    %147 = vector.broadcast %38 : vector<1x128xf32> to vector<2x128xf32>
    %148 = arith.addf %146, %147 : vector<2x128xf32>
    %149 = arith.mulf %143, %148 : vector<2x128xf32>
    %150 = arith.addf %145, %149 : vector<2x128xf32>
    %151 = math.tanh %150 : vector<2x128xf32>
    %cst_50 = arith.constant 1.000000e+00 : f32
    %152 = vector.broadcast %cst_50 : f32 to vector<2x128xf32>
    %153 = arith.subf %152, %144 : vector<2x128xf32>
    %154 = arith.mulf %153, %151 : vector<2x128xf32>
    %155 = arith.mulf %144, %126 : vector<2x128xf32>
    %156 = arith.addf %154, %155 : vector<2x128xf32>
    %157 = arith.index_cast %c3_i32 : i32 to index
    %c0_51 = arith.constant 0 : index
    %c0_52 = arith.constant 0 : index
    %158 = vector.load %arg12[%157, %c0_51, %c0_52] : memref<4x2x128xf32, #tpu.memory_space<vmem>>, vector<1x2x128xf32>
    %159 = vector.shape_cast %158 : vector<1x2x128xf32> to vector<2x128xf32>
    %160 = vector.shape_cast %156 : vector<2x128xf32> to vector<1x2x128xf32>
    tpu.vector_store %arg12[%157, %c0_51, %c0_52], %160 {strides = array<i32>} : memref<4x2x128xf32, #tpu.memory_space<vmem>>, vector<1x2x128xf32>,
    %c4_i32_53 = arith.constant 4 : i32
    %c0_54 = arith.constant 0 : index
    %c0_55 = arith.constant 0 : index
    %c0_56 = arith.constant 0 : index
    %161 = vector.load %arg14[%c0_54, %c0_55, %c0_56] : memref<2x2x128xf32, #tpu.memory_space<vmem>>, vector<1x2x128xf32>
    %162 = vector.shape_cast %161 : vector<1x2x128xf32> to vector<2x128xf32>
    %163 = vector.shape_cast %156 : vector<2x128xf32> to vector<1x2x128xf32>
    tpu.vector_store %arg14[%c0_54, %c0_55, %c0_56], %163 {strides = array<i32>} : memref<2x2x128xf32, #tpu.memory_space<vmem>>, vector<1x2x128xf32>,
    %c0_57 = arith.constant 0 : index
    %c0_58 = arith.constant 0 : index
    %c0_59 = arith.constant 0 : index
    %164 = vector.load %arg12[%c0_57, %c0_58, %c0_59] : memref<4x2x128xf32, #tpu.memory_space<vmem>>, vector<4x2x128xf32>
    %165 = vector.shape_cast %164 : vector<4x2x128xf32> to vector<8x128xf32>
    %c0_60 = arith.constant 0 : index
    %c0_61 = arith.constant 0 : index
    %c0_62 = arith.constant 0 : index
    %166 = vector.load %arg5[%c0_60, %c0_61, %c0_62] : memref<1x128x384xf32, #tpu.memory_space<vmem>>, vector<1x128x384xf32>
    %167 = vector.shape_cast %166 : vector<1x128x384xf32> to vector<128x384xf32>
    %cst_63 = arith.constant dense<0.000000e+00> : vector<8x384xf32>
    %168 = tpu.matmul %165, %167, %cst_63 {dimension_numbers = #tpu.dot_dimension_numbers<[1], [0], [0], [1], [0, 0, 1, 1], [], []>} : vector<8x128xf32>, vector<128x384xf32>, vector<8x384xf32> -> vector<8x384xf32>
    %c1_64 = arith.constant 1 : index
    %c0_65 = arith.constant 0 : index
    %c0_66 = arith.constant 0 : index
    %169 = vector.load %arg6[%c1_64, %c0_65, %c0_66] : memref<2x1x384xf32, #tpu.memory_space<vmem>>, vector<1x1x384xf32>
    %170 = vector.shape_cast %169 : vector<1x1x384xf32> to vector<1x384xf32>
    %171 = vector.broadcast %170 : vector<1x384xf32> to vector<8x384xf32>
    %172 = arith.addf %168, %171 : vector<8x384xf32>
    %173 = vector.shape_cast %172 : vector<8x384xf32> to vector<4x2x384xf32>
    %c0_67 = arith.constant 0 : index
    %c0_68 = arith.constant 0 : index
    %c0_69 = arith.constant 0 : index
    %174 = vector.load %arg13[%c0_67, %c0_68, %c0_69] : memref<4x2x384xf32, #tpu.memory_space<vmem>>, vector<4x2x384xf32>
    tpu.vector_store %arg13[%c0_67, %c0_68, %c0_69], %173 {strides = array<i32>} : memref<4x2x384xf32, #tpu.memory_space<vmem>>, vector<4x2x384xf32>,
    %c1_70 = arith.constant 1 : index
    %c0_71 = arith.constant 0 : index
    %c0_72 = arith.constant 0 : index
    %175 = vector.load %arg7[%c1_70, %c0_71, %c0_72] : memref<2x128x384xf32, #tpu.memory_space<vmem>>, vector<1x128x384xf32>
    %176 = vector.shape_cast %175 : vector<1x128x384xf32> to vector<128x384xf32>
    %c1_73 = arith.constant 1 : index
    %c0_74 = arith.constant 0 : index
    %c0_75 = arith.constant 0 : index
    %177 = vector.load %arg8[%c1_73, %c0_74, %c0_75] : memref<2x1x128xf32, #tpu.memory_space<vmem>>, vector<1x1x128xf32>
    %178 = vector.shape_cast %177 : vector<1x1x128xf32> to vector<1x128xf32>
    %c1_76 = arith.constant 1 : index
    %c0_77 = arith.constant 0 : index
    %c0_78 = arith.constant 0 : index
    %179 = vector.load %arg14[%c1_76, %c0_77, %c0_78] : memref<2x2x128xf32, #tpu.memory_space<vmem>>, vector<1x2x128xf32>
    %180 = vector.shape_cast %179 : vector<1x2x128xf32> to vector<2x128xf32>
    %c0_i32_79 = arith.constant 0 : i32
    %181 = arith.index_cast %c0_i32_79 : i32 to index
    %c0_80 = arith.constant 0 : index
    %c0_81 = arith.constant 0 : index
    %182 = vector.load %arg13[%181, %c0_80, %c0_81] : memref<4x2x384xf32, #tpu.memory_space<vmem>>, vector<1x2x384xf32>
    %183 = vector.shape_cast %182 : vector<1x2x384xf32> to vector<2x384xf32>
    %cst_82 = arith.constant dense<0.000000e+00> : vector<2x384xf32>
    %184 = tpu.matmul %180, %176, %cst_82 {dimension_numbers = #tpu.dot_dimension_numbers<[1], [0], [0], [1], [0, 0, 1, 1], [], []>} : vector<2x128xf32>, vector<128x384xf32>, vector<2x384xf32> -> vector<2x384xf32>
    %185 = vector.extract_strided_slice %183 {offsets = [0, 0], sizes = [2, 256], strides = [1, 1]} : vector<2x384xf32> to vector<2x256xf32>
    %186 = vector.extract_strided_slice %184 {offsets = [0, 0], sizes = [2, 256], strides = [1, 1]} : vector<2x384xf32> to vector<2x256xf32>
    %187 = arith.addf %185, %186 : vector<2x256xf32>
    %188 = arith.negf %187 : vector<2x256xf32>
    %189 = math.exp %188 : vector<2x256xf32>
    %cst_83 = arith.constant 1.000000e+00 : f32
    %190 = vector.broadcast %cst_83 : f32 to vector<2x256xf32>
    %191 = arith.addf %190, %189 : vector<2x256xf32>
    %192 = arith.divf %190, %191 : vector<2x256xf32>
    %193 = vector.extract_strided_slice %192 {offsets = [0, 0], sizes = [2, 128], strides = [1, 1]} : vector<2x256xf32> to vector<2x128xf32>
    %194 = vector.extract_strided_slice %192 {offsets = [0, 128], sizes = [2, 128], strides = [1, 1]} : vector<2x256xf32> to vector<2x128xf32>
    %195 = vector.extract_strided_slice %183 {offsets = [0, 256], sizes = [2, 128], strides = [1, 1]} : vector<2x384xf32> to vector<2x128xf32>
    %196 = vector.extract_strided_slice %184 {offsets = [0, 256], sizes = [2, 128], strides = [1, 1]} : vector<2x384xf32> to vector<2x128xf32>
    %197 = vector.broadcast %178 : vector<1x128xf32> to vector<2x128xf32>
    %198 = arith.addf %196, %197 : vector<2x128xf32>
    %199 = arith.mulf %193, %198 : vector<2x128xf32>
    %200 = arith.addf %195, %199 : vector<2x128xf32>
    %201 = math.tanh %200 : vector<2x128xf32>
    %cst_84 = arith.constant 1.000000e+00 : f32
    %202 = vector.broadcast %cst_84 : f32 to vector<2x128xf32>
    %203 = arith.subf %202, %194 : vector<2x128xf32>
    %204 = arith.mulf %203, %201 : vector<2x128xf32>
    %205 = arith.mulf %194, %180 : vector<2x128xf32>
    %206 = arith.addf %204, %205 : vector<2x128xf32>
    %207 = arith.index_cast %c0_i32_79 : i32 to index
    %c0_85 = arith.constant 0 : index
    %c0_86 = arith.constant 0 : index
    %208 = vector.load %arg12[%207, %c0_85, %c0_86] : memref<4x2x128xf32, #tpu.memory_space<vmem>>, vector<1x2x128xf32>
    %209 = vector.shape_cast %208 : vector<1x2x128xf32> to vector<2x128xf32>
    %210 = vector.shape_cast %206 : vector<2x128xf32> to vector<1x2x128xf32>
    tpu.vector_store %arg12[%207, %c0_85, %c0_86], %210 {strides = array<i32>} : memref<4x2x128xf32, #tpu.memory_space<vmem>>, vector<1x2x128xf32>,
    %c1_i32_87 = arith.constant 1 : i32
    %211 = arith.index_cast %c1_i32_87 : i32 to index
    %c0_88 = arith.constant 0 : index
    %c0_89 = arith.constant 0 : index
    %212 = vector.load %arg13[%211, %c0_88, %c0_89] : memref<4x2x384xf32, #tpu.memory_space<vmem>>, vector<1x2x384xf32>
    %213 = vector.shape_cast %212 : vector<1x2x384xf32> to vector<2x384xf32>
    %cst_90 = arith.constant dense<0.000000e+00> : vector<2x384xf32>
    %214 = tpu.matmul %206, %176, %cst_90 {dimension_numbers = #tpu.dot_dimension_numbers<[1], [0], [0], [1], [0, 0, 1, 1], [], []>} : vector<2x128xf32>, vector<128x384xf32>, vector<2x384xf32> -> vector<2x384xf32>
    %215 = vector.extract_strided_slice %213 {offsets = [0, 0], sizes = [2, 256], strides = [1, 1]} : vector<2x384xf32> to vector<2x256xf32>
    %216 = vector.extract_strided_slice %214 {offsets = [0, 0], sizes = [2, 256], strides = [1, 1]} : vector<2x384xf32> to vector<2x256xf32>
    %217 = arith.addf %215, %216 : vector<2x256xf32>
    %218 = arith.negf %217 : vector<2x256xf32>
    %219 = math.exp %218 : vector<2x256xf32>
    %cst_91 = arith.constant 1.000000e+00 : f32
    %220 = vector.broadcast %cst_91 : f32 to vector<2x256xf32>
    %221 = arith.addf %220, %219 : vector<2x256xf32>
    %222 = arith.divf %220, %221 : vector<2x256xf32>
    %223 = vector.extract_strided_slice %222 {offsets = [0, 0], sizes = [2, 128], strides = [1, 1]} : vector<2x256xf32> to vector<2x128xf32>
    %224 = vector.extract_strided_slice %222 {offsets = [0, 128], sizes = [2, 128], strides = [1, 1]} : vector<2x256xf32> to vector<2x128xf32>
    %225 = vector.extract_strided_slice %213 {offsets = [0, 256], sizes = [2, 128], strides = [1, 1]} : vector<2x384xf32> to vector<2x128xf32>
    %226 = vector.extract_strided_slice %214 {offsets = [0, 256], sizes = [2, 128], strides = [1, 1]} : vector<2x384xf32> to vector<2x128xf32>
    %227 = vector.broadcast %178 : vector<1x128xf32> to vector<2x128xf32>
    %228 = arith.addf %226, %227 : vector<2x128xf32>
    %229 = arith.mulf %223, %228 : vector<2x128xf32>
    %230 = arith.addf %225, %229 : vector<2x128xf32>
    %231 = math.tanh %230 : vector<2x128xf32>
    %cst_92 = arith.constant 1.000000e+00 : f32
    %232 = vector.broadcast %cst_92 : f32 to vector<2x128xf32>
    %233 = arith.subf %232, %224 : vector<2x128xf32>
    %234 = arith.mulf %233, %231 : vector<2x128xf32>
    %235 = arith.mulf %224, %206 : vector<2x128xf32>
    %236 = arith.addf %234, %235 : vector<2x128xf32>
    %237 = arith.index_cast %c1_i32_87 : i32 to index
    %c0_93 = arith.constant 0 : index
    %c0_94 = arith.constant 0 : index
    %238 = vector.load %arg12[%237, %c0_93, %c0_94] : memref<4x2x128xf32, #tpu.memory_space<vmem>>, vector<1x2x128xf32>
    %239 = vector.shape_cast %238 : vector<1x2x128xf32> to vector<2x128xf32>
    %240 = vector.shape_cast %236 : vector<2x128xf32> to vector<1x2x128xf32>
    tpu.vector_store %arg12[%237, %c0_93, %c0_94], %240 {strides = array<i32>} : memref<4x2x128xf32, #tpu.memory_space<vmem>>, vector<1x2x128xf32>,
    %c2_i32_95 = arith.constant 2 : i32
    %241 = arith.index_cast %c2_i32_95 : i32 to index
    %c0_96 = arith.constant 0 : index
    %c0_97 = arith.constant 0 : index
    %242 = vector.load %arg13[%241, %c0_96, %c0_97] : memref<4x2x384xf32, #tpu.memory_space<vmem>>, vector<1x2x384xf32>
    %243 = vector.shape_cast %242 : vector<1x2x384xf32> to vector<2x384xf32>
    %cst_98 = arith.constant dense<0.000000e+00> : vector<2x384xf32>
    %244 = tpu.matmul %236, %176, %cst_98 {dimension_numbers = #tpu.dot_dimension_numbers<[1], [0], [0], [1], [0, 0, 1, 1], [], []>} : vector<2x128xf32>, vector<128x384xf32>, vector<2x384xf32> -> vector<2x384xf32>
    %245 = vector.extract_strided_slice %243 {offsets = [0, 0], sizes = [2, 256], strides = [1, 1]} : vector<2x384xf32> to vector<2x256xf32>
    %246 = vector.extract_strided_slice %244 {offsets = [0, 0], sizes = [2, 256], strides = [1, 1]} : vector<2x384xf32> to vector<2x256xf32>
    %247 = arith.addf %245, %246 : vector<2x256xf32>
    %248 = arith.negf %247 : vector<2x256xf32>
    %249 = math.exp %248 : vector<2x256xf32>
    %cst_99 = arith.constant 1.000000e+00 : f32
    %250 = vector.broadcast %cst_99 : f32 to vector<2x256xf32>
    %251 = arith.addf %250, %249 : vector<2x256xf32>
    %252 = arith.divf %250, %251 : vector<2x256xf32>
    %253 = vector.extract_strided_slice %252 {offsets = [0, 0], sizes = [2, 128], strides = [1, 1]} : vector<2x256xf32> to vector<2x128xf32>
    %254 = vector.extract_strided_slice %252 {offsets = [0, 128], sizes = [2, 128], strides = [1, 1]} : vector<2x256xf32> to vector<2x128xf32>
    %255 = vector.extract_strided_slice %243 {offsets = [0, 256], sizes = [2, 128], strides = [1, 1]} : vector<2x384xf32> to vector<2x128xf32>
    %256 = vector.extract_strided_slice %244 {offsets = [0, 256], sizes = [2, 128], strides = [1, 1]} : vector<2x384xf32> to vector<2x128xf32>
    %257 = vector.broadcast %178 : vector<1x128xf32> to vector<2x128xf32>
    %258 = arith.addf %256, %257 : vector<2x128xf32>
    %259 = arith.mulf %253, %258 : vector<2x128xf32>
    %260 = arith.addf %255, %259 : vector<2x128xf32>
    %261 = math.tanh %260 : vector<2x128xf32>
    %cst_100 = arith.constant 1.000000e+00 : f32
    %262 = vector.broadcast %cst_100 : f32 to vector<2x128xf32>
    %263 = arith.subf %262, %254 : vector<2x128xf32>
    %264 = arith.mulf %263, %261 : vector<2x128xf32>
    %265 = arith.mulf %254, %236 : vector<2x128xf32>
    %266 = arith.addf %264, %265 : vector<2x128xf32>
    %267 = arith.index_cast %c2_i32_95 : i32 to index
    %c0_101 = arith.constant 0 : index
    %c0_102 = arith.constant 0 : index
    %268 = vector.load %arg12[%267, %c0_101, %c0_102] : memref<4x2x128xf32, #tpu.memory_space<vmem>>, vector<1x2x128xf32>
    %269 = vector.shape_cast %268 : vector<1x2x128xf32> to vector<2x128xf32>
    %270 = vector.shape_cast %266 : vector<2x128xf32> to vector<1x2x128xf32>
    tpu.vector_store %arg12[%267, %c0_101, %c0_102], %270 {strides = array<i32>} : memref<4x2x128xf32, #tpu.memory_space<vmem>>, vector<1x2x128xf32>,
    %c3_i32_103 = arith.constant 3 : i32
    %271 = arith.index_cast %c3_i32_103 : i32 to index
    %c0_104 = arith.constant 0 : index
    %c0_105 = arith.constant 0 : index
    %272 = vector.load %arg13[%271, %c0_104, %c0_105] : memref<4x2x384xf32, #tpu.memory_space<vmem>>, vector<1x2x384xf32>
    %273 = vector.shape_cast %272 : vector<1x2x384xf32> to vector<2x384xf32>
    %cst_106 = arith.constant dense<0.000000e+00> : vector<2x384xf32>
    %274 = tpu.matmul %266, %176, %cst_106 {dimension_numbers = #tpu.dot_dimension_numbers<[1], [0], [0], [1], [0, 0, 1, 1], [], []>} : vector<2x128xf32>, vector<128x384xf32>, vector<2x384xf32> -> vector<2x384xf32>
    %275 = vector.extract_strided_slice %273 {offsets = [0, 0], sizes = [2, 256], strides = [1, 1]} : vector<2x384xf32> to vector<2x256xf32>
    %276 = vector.extract_strided_slice %274 {offsets = [0, 0], sizes = [2, 256], strides = [1, 1]} : vector<2x384xf32> to vector<2x256xf32>
    %277 = arith.addf %275, %276 : vector<2x256xf32>
    %278 = arith.negf %277 : vector<2x256xf32>
    %279 = math.exp %278 : vector<2x256xf32>
    %cst_107 = arith.constant 1.000000e+00 : f32
    %280 = vector.broadcast %cst_107 : f32 to vector<2x256xf32>
    %281 = arith.addf %280, %279 : vector<2x256xf32>
    %282 = arith.divf %280, %281 : vector<2x256xf32>
    %283 = vector.extract_strided_slice %282 {offsets = [0, 0], sizes = [2, 128], strides = [1, 1]} : vector<2x256xf32> to vector<2x128xf32>
    %284 = vector.extract_strided_slice %282 {offsets = [0, 128], sizes = [2, 128], strides = [1, 1]} : vector<2x256xf32> to vector<2x128xf32>
    %285 = vector.extract_strided_slice %273 {offsets = [0, 256], sizes = [2, 128], strides = [1, 1]} : vector<2x384xf32> to vector<2x128xf32>
    %286 = vector.extract_strided_slice %274 {offsets = [0, 256], sizes = [2, 128], strides = [1, 1]} : vector<2x384xf32> to vector<2x128xf32>
    %287 = vector.broadcast %178 : vector<1x128xf32> to vector<2x128xf32>
    %288 = arith.addf %286, %287 : vector<2x128xf32>
    %289 = arith.mulf %283, %288 : vector<2x128xf32>
    %290 = arith.addf %285, %289 : vector<2x128xf32>
    %291 = math.tanh %290 : vector<2x128xf32>
    %cst_108 = arith.constant 1.000000e+00 : f32
    %292 = vector.broadcast %cst_108 : f32 to vector<2x128xf32>
    %293 = arith.subf %292, %284 : vector<2x128xf32>
    %294 = arith.mulf %293, %291 : vector<2x128xf32>
    %295 = arith.mulf %284, %266 : vector<2x128xf32>
    %296 = arith.addf %294, %295 : vector<2x128xf32>
    %297 = arith.index_cast %c3_i32_103 : i32 to index
    %c0_109 = arith.constant 0 : index
    %c0_110 = arith.constant 0 : index
    %298 = vector.load %arg12[%297, %c0_109, %c0_110] : memref<4x2x128xf32, #tpu.memory_space<vmem>>, vector<1x2x128xf32>
    %299 = vector.shape_cast %298 : vector<1x2x128xf32> to vector<2x128xf32>
    %300 = vector.shape_cast %296 : vector<2x128xf32> to vector<1x2x128xf32>
    tpu.vector_store %arg12[%297, %c0_109, %c0_110], %300 {strides = array<i32>} : memref<4x2x128xf32, #tpu.memory_space<vmem>>, vector<1x2x128xf32>,
    %c4_i32_111 = arith.constant 4 : i32
    %c1_112 = arith.constant 1 : index
    %c0_113 = arith.constant 0 : index
    %c0_114 = arith.constant 0 : index
    %301 = vector.load %arg14[%c1_112, %c0_113, %c0_114] : memref<2x2x128xf32, #tpu.memory_space<vmem>>, vector<1x2x128xf32>
    %302 = vector.shape_cast %301 : vector<1x2x128xf32> to vector<2x128xf32>
    %303 = vector.shape_cast %296 : vector<2x128xf32> to vector<1x2x128xf32>
    tpu.vector_store %arg14[%c1_112, %c0_113, %c0_114], %303 {strides = array<i32>} : memref<2x2x128xf32, #tpu.memory_space<vmem>>, vector<1x2x128xf32>,
    %c0_115 = arith.constant 0 : index
    %c0_116 = arith.constant 0 : index
    %c0_117 = arith.constant 0 : index
    %304 = vector.load %arg12[%c0_115, %c0_116, %c0_117] : memref<4x2x128xf32, #tpu.memory_space<vmem>>, vector<4x2x128xf32>
    %305 = vector.shape_cast %304 : vector<4x2x128xf32> to vector<8x128xf32>
    %c0_118 = arith.constant 0 : index
    %c0_119 = arith.constant 0 : index
    %306 = vector.load %arg9[%c0_118, %c0_119] : memref<128x4xf32, #tpu.memory_space<vmem>>, vector<128x4xf32>
    %cst_120 = arith.constant dense<0.000000e+00> : vector<8x4xf32>
    %307 = tpu.matmul %305, %306, %cst_120 {dimension_numbers = #tpu.dot_dimension_numbers<[1], [0], [0], [1], [0, 0, 1, 1], [], []>} : vector<8x128xf32>, vector<128x4xf32>, vector<8x4xf32> -> vector<8x4xf32>
    %c0_121 = arith.constant 0 : index
    %c0_122 = arith.constant 0 : index
    %308 = vector.load %arg10[%c0_121, %c0_122] : memref<1x4xf32, #tpu.memory_space<vmem>>, vector<1x4xf32>
    %309 = vector.broadcast %308 : vector<1x4xf32> to vector<8x4xf32>
    %310 = arith.addf %307, %309 : vector<8x4xf32>
    %311 = vector.shape_cast %310 : vector<8x4xf32> to vector<4x2x4xf32>
    %312 = arith.index_cast %1 : i32 to index
    %c0_123 = arith.constant 0 : index
    %c0_124 = arith.constant 0 : index
    %313 = vector.load %arg16[%312, %c0_123, %c0_124] : memref<8x2x4xf32, #tpu.memory_space<vmem>>, vector<4x2x4xf32>
    tpu.vector_store %arg16[%312, %c0_123, %c0_124], %311 {strides = array<i32>} : memref<8x2x4xf32, #tpu.memory_space<vmem>>, vector<4x2x4xf32>,
    %c1_i32_125 = arith.constant 1 : i32
    %314 = arith.cmpi eq, %arg1, %c1_i32_125 : i32
    %315 = arith.extui %314 : i1 to i32
    %c0_i32_126 = arith.constant 0 : i32
    %316 = arith.cmpi ne, %315, %c0_i32_126 : i32
    scf.if %316 {
      %c0_127 = arith.constant 0 : index
      %c0_128 = arith.constant 0 : index
      %c0_129 = arith.constant 0 : index
      %317 = vector.load %arg16[%c0_127, %c0_128, %c0_129] : memref<8x2x4xf32, #tpu.memory_space<vmem>>, vector<8x2x4xf32>
      %cst_130 = arith.constant dense<0.000000e+00> : vector<2xf32>
      %318 = vector.multi_reduction <add>, %317, %cst_130 [0, 2] : vector<8x2x4xf32> to vector<2xf32>
      %319 = vector.shape_cast %318 : vector<2xf32> to vector<1x2x1xf32>
      %cst_131 = arith.constant 3.200000e+01 : f32
      %320 = vector.broadcast %cst_131 : f32 to vector<1x2x1xf32>
      %321 = arith.divf %319, %320 : vector<1x2x1xf32>
      %322 = vector.broadcast %321 : vector<1x2x1xf32> to vector<8x2x4xf32>
      %323 = arith.subf %317, %322 : vector<8x2x4xf32>
      %324 = arith.mulf %323, %323 : vector<8x2x4xf32>
      %cst_132 = arith.constant dense<0.000000e+00> : vector<2xf32>
      %325 = vector.multi_reduction <add>, %324, %cst_132 [0, 2] : vector<8x2x4xf32> to vector<2xf32>
      %326 = vector.shape_cast %325 : vector<2xf32> to vector<1x2x1xf32>
      %cst_133 = arith.constant 3.200000e+01 : f32
      %327 = vector.broadcast %cst_133 : f32 to vector<1x2x1xf32>
      %328 = arith.divf %326, %327 : vector<1x2x1xf32>
      %329 = vector.broadcast %321 : vector<1x2x1xf32> to vector<8x2x4xf32>
      %330 = arith.subf %317, %329 : vector<8x2x4xf32>
      %cst_134 = arith.constant 9.99999974E-6 : f32
      %331 = vector.broadcast %cst_134 : f32 to vector<1x2x1xf32>
      %332 = arith.addf %328, %331 : vector<1x2x1xf32>
      %333 = math.rsqrt %332 : vector<1x2x1xf32>
      %334 = vector.broadcast %333 : vector<1x2x1xf32> to vector<8x2x4xf32>
      %335 = arith.mulf %330, %334 : vector<8x2x4xf32>
      %c0_135 = arith.constant 0 : index
      %c0_136 = arith.constant 0 : index
      %c0_137 = arith.constant 0 : index
      %336 = vector.load %arg11[%c0_135, %c0_136, %c0_137] : memref<8x2x4xf32, #tpu.memory_space<vmem>>, vector<8x2x4xf32>
      tpu.vector_store %arg11[%c0_135, %c0_136, %c0_137], %335 {strides = array<i32>} : memref<8x2x4xf32, #tpu.memory_space<vmem>>, vector<8x2x4xf32>,
    } else {
    }
    return
  }
  func.func @transform_0(%arg0: i32, %arg1: i32) -> (i32, i32, i32) {
    %c0_i32 = arith.constant 0 : i32
    %c0_i32_0 = arith.constant 0 : i32
    %c0_i32_1 = arith.constant 0 : i32
    return %c0_i32, %arg0, %c0_i32_0 : i32, i32, i32
  }
  func.func @transform_1(%arg0: i32, %arg1: i32) -> (i32, i32, i32) {
    %c0_i32 = arith.constant 0 : i32
    %c0_i32_0 = arith.constant 0 : i32
    %c0_i32_1 = arith.constant 0 : i32
    return %c0_i32, %arg0, %c0_i32_0 : i32, i32, i32
  }
  func.func @transform_2(%arg0: i32, %arg1: i32) -> (i32, i32) {
    %c0_i32 = arith.constant 0 : i32
    %c0_i32_0 = arith.constant 0 : i32
    %c0_i32_1 = arith.constant 0 : i32
    return %c0_i32, %c0_i32_0 : i32, i32
  }
  func.func @transform_3(%arg0: i32, %arg1: i32) -> (i32, i32, i32) {
    %c0_i32 = arith.constant 0 : i32
    %c0_i32_0 = arith.constant 0 : i32
    %c0_i32_1 = arith.constant 0 : i32
    %c0_i32_2 = arith.constant 0 : i32
    return %c0_i32, %c0_i32_0, %c0_i32_1 : i32, i32, i32
  }
  func.func @transform_4(%arg0: i32, %arg1: i32) -> (i32, i32, i32) {
    %c0_i32 = arith.constant 0 : i32
    %c0_i32_0 = arith.constant 0 : i32
    %c0_i32_1 = arith.constant 0 : i32
    %c0_i32_2 = arith.constant 0 : i32
    return %c0_i32, %c0_i32_0, %c0_i32_1 : i32, i32, i32
  }
  func.func @transform_5(%arg0: i32, %arg1: i32) -> (i32, i32, i32) {
    %c0_i32 = arith.constant 0 : i32
    %c0_i32_0 = arith.constant 0 : i32
    %c0_i32_1 = arith.constant 0 : i32
    %c0_i32_2 = arith.constant 0 : i32
    return %c0_i32, %c0_i32_0, %c0_i32_1 : i32, i32, i32
  }
  func.func @transform_6(%arg0: i32, %arg1: i32) -> (i32, i32, i32) {
    %c0_i32 = arith.constant 0 : i32
    %c0_i32_0 = arith.constant 0 : i32
    %c0_i32_1 = arith.constant 0 : i32
    %c0_i32_2 = arith.constant 0 : i32
    return %c0_i32, %c0_i32_0, %c0_i32_1 : i32, i32, i32
  }
  func.func @transform_7(%arg0: i32, %arg1: i32) -> (i32, i32) {
    %c0_i32 = arith.constant 0 : i32
    %c0_i32_0 = arith.constant 0 : i32
    %c0_i32_1 = arith.constant 0 : i32
    return %c0_i32, %c0_i32_0 : i32, i32
  }
  func.func @transform_8(%arg0: i32, %arg1: i32) -> (i32, i32) {
    %c0_i32 = arith.constant 0 : i32
    %c0_i32_0 = arith.constant 0 : i32
    %c0_i32_1 = arith.constant 0 : i32
    return %c0_i32, %c0_i32_0 : i32, i32
  }
  func.func @transform_9(%arg0: i32, %arg1: i32) -> (i32, i32, i32) {
    %c0_i32 = arith.constant 0 : i32
    %c0_i32_0 = arith.constant 0 : i32
    %c0_i32_1 = arith.constant 0 : i32
    return %c0_i32, %arg0, %c0_i32_0 : i32, i32, i32
  }
}

</mosaic_0001>

<bundles_post_ra>
// kernel: tpu_custom_call.1
= control target key start
LH: loop header
LB: loop body
LE: loop exit
PB: predicated region body
PF: predicated region fallthrough
CT: control target
= control target key end

     0   :  { %14 = vsyncpa [#allocation8], 0  ;;  %s5276_s0 = inlined_call_operand.vmem [shape: f32[8,2,2], index: 0, kind: input, shape index: {}]   ;;  %s5277_s1 = inlined_call_operand.vmem [shape: f32[2,2,128], index: 1, kind: input, shape index: {}]   ;;  %s5278_s2 = inlined_call_operand.vmem [shape: f32[4,384], index: 2, kind: input, shape index: {}]   ;;  %s5279_s3 = inlined_call_operand.hbm [shape: f32[1,128,384], index: 3, kind: input, shape index: {}]   ;;  %s5280_s4 = inlined_call_operand.vmem [shape: f32[2,1,384], index: 4, kind: input, shape index: {}]   ;;  %s5281_s5 = inlined_call_operand.hbm [shape: f32[2,128,384], index: 5, kind: input, shape index: {}]   ;;  %s5282_s6 = inlined_call_operand.vmem [shape: f32[2,1,128], index: 6, kind: input, shape index: {}]   ;;  %s5283_s7 = inlined_call_operand.vmem [shape: f32[128,4], index: 7, kind: input, shape index: {}]   ;;  %s5284_s8 = inlined_call_operand.vmem [shape: f32[1,4], index: 8, kind: input, shape index: {}]   ;;  %s5285_s9 = inlined_call_operand.vmem [shape: f32[8,2,4], index: 9, kind: output, shape index: {}]  }
   0x1   :  { %15 = vsyncpa [#allocation10], 0  ;;  %s4016_s30 = smov 0   ;;  %s4018_s10 = smov 0  }
   0x2   :  { %s4020_s11 = smov 0  }
   0x3 LB: > { %s3170_s12 = sadd.s32 4294967295, %s3950_s11   ;;  %s30_s13 = sadd.s32 1, %s3946_s10  ;;  %s3950_s11 = sphi %s4020_s11, %s21_s11   ;;  %s3946_s10 = sphi %s4018_s10, %s5371_s10   ;;  %s3942_s30 = sphi %s4016_s30, %s5370_s30  }
   0x4   : > { %p31_p0 = scmp.ge.s32.totalorder %s30_s13, 2  ;;  %p3171_p1 = scmp.ge.s32.totalorder %s3950_s11, 1 }
   0x5   : > { %p263_p2 = scmp.lt.s32.totalorder %s3950_s11, 3  ;;  %p4041_p4 = scmp.eq.s32.totalorder %s3170_s12, 0 }
   0x6   : > { %s5373_s13 = smov (%p31_p0, %s30_s13), 0  ;;  %s3952_s16 = smov [#allocation7]  }
   0x7   : > { %p4037_p3 = pnand %p3171_p1, %p263_p2  ;;  %s292_s17 = sshll.u32 %s3952_s16, 4  ;;  %s293_s17 = int_to_ptr.vmem [resolvable:$true] %s292_s17 }
   0x8   : > { %s3953_s19 = smov [#allocation9]   ;;  %s3879_s21 = scalar_lea.vmem %s293_s17, 6144 }
   0x9   : > { %p3740_p5 = pneg %p4037_p3  ;;  %s308_s20 = sshll.u32 %s3953_s19, 4  ;;  %s309_s20 = int_to_ptr.vmem [resolvable:$true] %s308_s20 }
   0xa   : > { %p3880_p8 = scmp.ne.s32.totalorder %s293_s17, %s3879_s21  ;;  %p3887_p11 = scmp.lt.s32.totalorder %s293_s17, %s293_s17 }
   0xb   : > { %p4049_p6 = pnand %p4041_p4, %p3740_p5  ;;  %p3888_p12 = scmp.lt.s32.totalorder %s3879_s21, %s3879_s21 }
   0xd   : > { %p3870_p7 = pneg %p4049_p6  ;;  %p3889_p13 = por %p3888_p12, %p3887_p11 }
   0xf   : > { %p3882_p9 = pnand %p3880_p8, %p3870_p7 }
  0x11   : > { %p3883_p10 = pneg %p3882_p9 }
  0x13   : > { %p3890_p0 = pnand %p3889_p13, %p3883_p10 }
  0x15   : > { %3893 = shalt.err (!%p3890_p0)
}
  0x16   : > { %s3954_s22 = smov 384   ;;  %s3955_s23 = smov 24  }
  0x17   : > { %3743 = dma.hbm_to_vmem [thread:$0]  (!%p4049_p6), %s5279_s3, 6144, %s293_s17, [#allocation8], %s3954_s22, %s3954_s22, %s3955_s23  }
  0x18   : > { %s3905_s26 = scalar_lea.vmem %s309_s20, 12288  ;;  %p3913_p8 = scmp.lt.s32.totalorder %s309_s20, %s309_s20 }
  0x19   : > { %p3906_p1 = scmp.ne.s32.totalorder %s309_s20, %s3905_s26  ;;  %p3914_p9 = scmp.lt.s32.totalorder %s3905_s26, %s3905_s26 }
  0x1b   : > { %p3908_p2 = pnand %p3906_p1, %p3870_p7  ;;  %p3915_p11 = por %p3914_p9, %p3913_p8 }
  0x1d   : > { %p3909_p5 = pneg %p3908_p2 }
  0x1f   : > { %p3916_p10 = pnand %p3915_p11, %p3909_p5 }
  0x21   : > { %3919 = shalt.err (!%p3916_p10)
}
  0x22   : > { %3746 = dma.hbm_to_vmem [thread:$0]  (!%p4049_p6), %s5281_s5, 12288, %s309_s20, [#allocation10], %s3954_s22, %s3954_s22, %s3955_s23  }
  0x23   : > { %333 = sbr.rel (%p4037_p3) target bundleno = 3596 (0xe0c), region = 56 }
  0x28   : > { %3933 = dma.done.wait (%p4041_p4), [#allocation8], 6144  }
  0x29   : > { %3935 = vsyncadd (%p4041_p4), [#allocation8], 4294961152 }
  0x2a   : > { %3937 = dma.done.wait (%p4041_p4), [#allocation10], 12288  }
  0x2b   : > { %3939 = vsyncadd (%p4041_p4), [#allocation10], 4294955008  ;;  %p3180_p7 = scmp.ne.s32.totalorder %s3942_s30, 0 }
  0x2c   : > { %s3956_s20 = smov (!%p3180_p7), 127   ;;  %s3957_s29 = smov (!%p3180_p7), 2  }
  0x2d   : > { %391 = sbr.rel (%p3180_p7) target bundleno = 656 (0x290), region = 68  ;;  %s3958_s12 = smov (!%p3180_p7), 3  }
  0x32   : > { %v4085_v0 = vld [vmem:[%s5276_s0 + $0x4] sm:$0x3]  ;;  %v4090_v1 = vld [vmem:[%s5276_s0] sm:$0x3]  ;;  %v4099_v4 = vld [vmem:[%s5276_s0 + $0x6] sm:$0x3] }
  0x33   : > { %v406_v2 = vmul.f32 %v4085_v0, %v4085_v0  ;;  %v404_v3 = vmul.f32 %v4090_v1, %v4090_v1  ;;  %v4104_v5 = vld [vmem:[%s5276_s0 + $0x2] sm:$0x3]  ;;  %v407_v6 = vmul.f32 %v4099_v4, %v4099_v4  ;;  %v4113_v8 = vld [vmem:[%s5276_s0 + $0xa] sm:$0x3]  ;;  %v4118_v9 = vld [vmem:[%s5276_s0 + $0x8] sm:$0x3] }
  0x34   : > { %v405_v7 = vmul.f32 %v4104_v5, %v4104_v5  ;;  %v409_v10 = vmul.f32 %v4113_v8, %v4113_v8  ;;  %v408_v11 = vmul.f32 %v4118_v9, %v4118_v9  ;;  %v4127_v12 = vld [vmem:[%s5276_s0 + $0xe] sm:$0x3]  ;;  %v4132_v13 = vld [vmem:[%s5276_s0 + $0xc] sm:$0x3] }
  0x35   : > { %424 = vrot.lane.b32.xlu1 %v406_v2, %s3956_s20  ;;  %420 = vrot.lane.b32.xlu0 %v404_v3, %s3956_s20  ;;  %v411_v14 = vmul.f32 %v4127_v12, %v4127_v12  ;;  %v410_v15 = vmul.f32 %v4132_v13, %v4132_v13 }
  0x39   : > { %426 = vrot.lane.b32.xlu1 %v407_v6, %s3956_s20  ;;  %422 = vrot.lane.b32.xlu0 %v405_v7, %s3956_s20 }
  0x3d   : > { %430 = vrot.lane.b32.xlu1 %v409_v10, %s3956_s20  ;;  %428 = vrot.lane.b32.xlu0 %v408_v11, %s3956_s20 }
  0x41   : > { %434 = vrot.lane.b32.xlu1 %v411_v14, %s3956_s20  ;;  %432 = vrot.lane.b32.xlu0 %v410_v15, %s3956_s20 }
  0xa7   : > { %v425_v16 = vpop.permute.xlu1 %424  ;;  %v421_v17 = vpop.permute.xlu0 %420 }
  0xa8   : > { %v446_v18 = vadd.f32 %v425_v16, %v406_v2  ;;  %v444_v19 = vadd.f32 %v421_v17, %v404_v3 }
  0xaa   : > { %3789 = vrsqrt.f32 %v446_v18  ;;  %vm454_vm0 = vcmp.eq.f32.partialorder %v444_v19, inf  ;;  %v457_v36 = vand.u32 2147483648, %v444_v19  ;;  %vm456_vm1 = vcmp.eq.f32.partialorder %v444_v19, 0.0 }
  0xab   : > { %3791 = vrsqrt.f32 %v444_v19  ;;  %v427_v20 = vpop.permute.xlu1 %426  ;;  %v423_v21 = vpop.permute.xlu0 %422  ;;  %vm468_vm2 = vcmp.eq.f32.partialorder %v446_v18, inf  ;;  %v471_v44 = vand.u32 2147483648, %v446_v18  ;;  %vm470_vm4 = vcmp.eq.f32.partialorder %v446_v18, 0.0 }
  0xac   : > { %v447_v22 = vadd.f32 %v427_v20, %v407_v6  ;;  %v445_v23 = vadd.f32 %v423_v21, %v405_v7 }
  0xae   : > { %3793 = vrsqrt.f32 %v447_v22  ;;  %vm461_vm3 = vcmp.eq.f32.partialorder %v445_v23, inf  ;;  %v464_v45 = vand.u32 2147483648, %v445_v23  ;;  %vm463_vm5 = vcmp.eq.f32.partialorder %v445_v23, 0.0 }
  0xaf   : > { %3795 = vrsqrt.f32 %v445_v23  ;;  %v431_v24 = vpop.permute.xlu1 %430  ;;  %v429_v25 = vpop.permute.xlu0 %428  ;;  %vm475_vm6 = vcmp.eq.f32.partialorder %v447_v22, inf  ;;  %v478_v54 = vand.u32 2147483648, %v447_v22  ;;  %vm477_vm7 = vcmp.eq.f32.partialorder %v447_v22, 0.0 }
  0xb0   : > { %v448_v26 = vadd.f32 %v429_v25, %v408_v11  ;;  %v4138_v27 = vadd.f32 %v431_v24, %v409_v10 }
  0xb2   : > { %3797 = vrsqrt.f32 %v448_v26  ;;  %vm482_vm8 = vcmp.eq.f32.partialorder %v448_v26, inf  ;;  %v485_v61 = vand.u32 2147483648, %v448_v26  ;;  %vm484_vm9 = vcmp.eq.f32.partialorder %v448_v26, 0.0 }
  0xb3   : > { %v433_v28 = vpop.permute.xlu0 %432  ;;  %3799 = vrsqrt.f32 %v4138_v27  ;;  %v435_v30 = vpop.permute.xlu1 %434  ;;  %vm489_vm10 = vcmp.eq.f32.partialorder %v4138_v27, inf  ;;  %v492_v11 = vand.u32 2147483648, %v4138_v27  ;;  %vm491_vm11 = vcmp.eq.f32.partialorder %v4138_v27, 0.0 }
  0xb4   : > { %v4141_v29 = vadd.f32 %v433_v28, %v410_v15  ;;  %v4143_v33 = vadd.f32 %v435_v30, %v411_v14 }
  0xb6   : > { %3801 = vrsqrt.f32 %v4141_v29  ;;  %vm496_vm12 = vcmp.eq.f32.partialorder %v4141_v29, inf  ;;  %v499_v20 = vand.u32 2147483648, %v4141_v29  ;;  %vm503_vm13 = vcmp.eq.f32.partialorder %v4143_v33, inf }
  0xb7   : > { %v3790_v31 = vpop.eup %3789  ;;  %3803 = vrsqrt.f32 %v4143_v33  ;;  %vm498_vm14 = vcmp.eq.f32.partialorder %v4141_v29, 0.0  ;;  %v506_v24 = vand.u32 2147483648, %v4143_v33  ;;  %vm505_vm15 = vcmp.eq.f32.partialorder %v4143_v33, 0.0 }
  0xb8   : > { %v3792_v32 = vpop.eup %3791  ;;  %v467_v35 = vmul.f32 %v3790_v31, %v446_v18 }
  0xb9   : > { %v453_v34 = vmul.f32 %v3792_v32, %v444_v19 }
  0xba   : > { %v469_v41 = vsel %vm468_vm2, %v446_v18, %v467_v35  ;;  %vm606_vm2 = vcmask 25600  }
  0xbb   : > { %v3794_v37 = vpop.eup %3793  ;;  %v455_v38 = vsel %vm454_vm0, %v444_v19, %v453_v34  ;;  %v472_v48 = vsel %vm470_vm4, %v471_v44, %v469_v41  ;;  %vm597_vm0 = vcmask 23552  }
  0xbc   : > { %v3796_v39 = vpop.eup %3795  ;;  %v458_v40 = vsel %vm456_vm1, %v457_v36, %v455_v38  ;;  %v474_v43 = vmul.f32 %v3794_v37, %v447_v22  ;;  %v510_v55 = vmul.f32 %v472_v48, %v472_v48  ;;  %vm588_vm1 = vcmask 15360  }
  0xbd   : > { %532 = vrot.lane.b32.xlu0 %v458_v40, %s3957_s29  ;;  %v460_v42 = vmul.f32 %v3796_v39, %v445_v23  ;;  %v508_v62 = vmul.f32 %v458_v40, %v458_v40 }
  0xbe   : > { %v476_v51 = vsel %vm475_vm6, %v447_v22, %v474_v43  ;;  %v518_v2 = vmul.f32 %v510_v55, %v472_v48 }
  0xbf   : > { %v462_v46 = vsel %vm461_vm3, %v445_v23, %v460_v42  ;;  %v3798_v47 = vpop.eup %3797  ;;  %v479_v57 = vsel %vm477_vm7, %v478_v54, %v476_v51  ;;  %v516_v16 = vmul.f32 %v508_v62, %v458_v40  ;;  %vm660_vm3 = vcmask 1024  }
  0xc0   : > { %v465_v49 = vsel %vm463_vm5, %v464_v45, %v462_v46  ;;  %v481_v52 = vmul.f32 %v3798_v47, %v448_v26  ;;  %v3800_v53 = vpop.eup %3799  ;;  %v511_v63 = vmul.f32 %v479_v57, %v479_v57 }
  0xc1   : > { %536 = vrot.lane.b32.xlu0 %v472_v48, %s3957_s29  ;;  %534 = vrot.lane.b32.xlu1 %v465_v49, %s3957_s29  ;;  %v509_v50 = vmul.f32 %v465_v49, %v465_v49  ;;  %v488_v59 = vmul.f32 %v3800_v53, %v4138_v27 }
  0xc2   : > { %v483_v58 = vsel %vm482_vm8, %v448_v26, %v481_v52  ;;  %v519_v15 = vmul.f32 %v511_v63, %v479_v57 }
  0xc3   : > { %v517_v56 = vmul.f32 %v509_v50, %v465_v49  ;;  %v3802_v60 = vpop.eup %3801  ;;  %v486_v3 = vsel %vm484_vm9, %v485_v61, %v483_v58  ;;  %v490_v6 = vsel %vm489_vm10, %v4138_v27, %v488_v59 }
  0xc4   : > { %v495_v7 = vmul.f32 %v3802_v60, %v4141_v29  ;;  %v3804_v10 = vpop.eup %3803  ;;  %v512_v14 = vmul.f32 %v486_v3, %v486_v3  ;;  %v493_v17 = vsel %vm491_vm11, %v492_v11, %v490_v6 }
  0xc5   : > { %538 = vrot.lane.b32.xlu0 %v479_v57, %s3957_s29  ;;  %566 = vrot.lane.b32.xlu1 %v517_v56, %s3958_s12  ;;  %v502_v19 = vmul.f32 %v3804_v10, %v4143_v33  ;;  %v513_v21 = vmul.f32 %v493_v17, %v493_v17 }
  0xc6   : > { %v497_v18 = vsel %vm496_vm12, %v4141_v29, %v495_v7  ;;  %v520_v22 = vmul.f32 %v512_v14, %v486_v3 }
  0xc7   : > { %v500_v23 = vsel %vm498_vm14, %v499_v20, %v497_v18  ;;  %v504_v25 = vsel %vm503_vm13, %v4143_v33, %v502_v19  ;;  %v521_v26 = vmul.f32 %v513_v21, %v493_v17 }
  0xc8   : > { %v514_v27 = vmul.f32 %v500_v23, %v500_v23  ;;  %v507_v28 = vsel %vm505_vm15, %v506_v24, %v504_v25 }
  0xc9   : > { %568 = vrot.lane.b32.xlu1 %v518_v2, %s3958_s12  ;;  %540 = vrot.lane.b32.xlu0 %v486_v3, %s3957_s29  ;;  %v515_v30 = vmul.f32 %v507_v28, %v507_v28 }
  0xca   : > { %v522_v29 = vmul.f32 %v514_v27, %v500_v23 }
  0xcb   : > { %v523_v31 = vmul.f32 %v515_v30, %v507_v28 }
  0xcd   : > { %570 = vrot.lane.b32.xlu1 %v519_v15, %s3958_s12  ;;  %564 = vrot.lane.b32.xlu0 %v516_v16, %s3958_s12 }
  0xd1   : > { %542 = vrot.lane.b32.xlu0 %v493_v17, %s3957_s29  ;;  %572 = vrot.lane.b32.xlu1 %v520_v22, %s3958_s12 }
  0xd5   : > { %574 = vrot.lane.b32.xlu1 %v521_v26, %s3958_s12  ;;  %544 = vrot.lane.b32.xlu0 %v500_v23, %s3957_s29 }
  0xd9   : > { %546 = vrot.lane.b32.xlu0 %v507_v28, %s3957_s29  ;;  %576 = vrot.lane.b32.xlu1 %v522_v29, %s3958_s12 }
  0xdd   : > { %578 = vrot.lane.b32.xlu1 %v523_v31, %s3958_s12 }
 0x12f   : > { %v533_v32 = vpop.permute.xlu0 %532 }
 0x130   : > { %v589_v41 = vsel %vm588_vm1, %v4090_v1, %v533_v32 }
 0x133   : > { %v535_v34 = vpop.permute.xlu1 %534  ;;  %v537_v35 = vpop.permute.xlu0 %536 }
 0x134   : > { %v590_v39 = vsel %vm588_vm1, %v4104_v5, %v535_v34  ;;  %v591_v42 = vsel %vm588_vm1, %v4085_v0, %v537_v35 }
 0x137   : > { %v567_v33 = vpop.permute.xlu1 %566  ;;  %v539_v36 = vpop.permute.xlu0 %538 }
 0x138   : > { %v599_v40 = vsel %vm597_vm0, %v590_v39, %v567_v33  ;;  %v592_v5 = vsel %vm588_vm1, %v4099_v4, %v539_v36 }
 0x139   : > { %v608_v47 = vsel %vm606_vm2, %v599_v40, 0.0 }
 0x13b   : > { %v569_v37 = vpop.permute.xlu1 %568  ;;  %v541_v38 = vpop.permute.xlu0 %540 }
 0x13c   : > { %v600_v45 = vsel %vm597_vm0, %v591_v42, %v569_v37  ;;  %v593_v53 = vsel %vm588_vm1, %v4118_v9, %v541_v38 }
 0x13d   : > { %v610_v1 = vsel %vm606_vm2, %v600_v45, 0.0 }
 0x13f   : > { %v571_v43 = vpop.permute.xlu1 %570  ;;  %v565_v44 = vpop.permute.xlu0 %564 }
 0x140   : > { %v598_v46 = vsel %vm597_vm0, %v589_v41, %v565_v44  ;;  %v601_v49 = vsel %vm597_vm0, %v592_v5, %v571_v43  ;;  %v392_v5 = vld [vmem:[%s5277_s1] sm:$0xf]  }
 0x141   : > { %v607_v48 = vsel %vm606_vm2, %v598_v46, 0.0  ;;  %v612_v54 = vsel %vm606_vm2, %v601_v49, 0.0  ;;  %394 = vst [vmem:[#allocation4] sm:$0xf] %v392_v5  }
 0x142   : > { %v609_v50 = vadd.f32 %v608_v47, %v607_v48 }
 0x143   : > { %v573_v51 = vpop.permute.xlu1 %572  ;;  %v543_v0 = vpop.permute.xlu0 %542 }
 0x144   : > { %v611_v52 = vadd.f32 %v610_v1, %v609_v50  ;;  %v602_v55 = vsel %vm597_vm0, %v593_v53, %v573_v51  ;;  %v594_v4 = vsel %vm588_vm1, %v4113_v8, %v543_v0 }
 0x145   : > { %v614_v60 = vsel %vm606_vm2, %v602_v55, 0.0 }
 0x146   : > { %v613_v56 = vadd.f32 %v612_v54, %v611_v52 }
 0x147   : > { %v575_v57 = vpop.permute.xlu1 %574  ;;  %v545_v58 = vpop.permute.xlu0 %544 }
 0x148   : > { %v603_v59 = vsel %vm597_vm0, %v594_v4, %v575_v57  ;;  %v615_v61 = vadd.f32 %v614_v60, %v613_v56  ;;  %v595_v9 = vsel %vm588_vm1, %v4132_v13, %v545_v58 }
 0x149   : > { %v616_v62 = vsel %vm606_vm2, %v603_v59, 0.0 }
 0x14a   : > { %v617_v7 = vadd.f32 %v616_v62, %v615_v61 }
 0x14b   : > { %v577_v63 = vpop.permute.xlu1 %576  ;;  %v547_v3 = vpop.permute.xlu0 %546 }
 0x14c   : > { %v604_v2 = vsel %vm597_vm0, %v595_v9, %v577_v63  ;;  %v596_v8 = vsel %vm588_vm1, %v4127_v12, %v547_v3 }
 0x14d   : > { %v618_v6 = vsel %vm606_vm2, %v604_v2, 0.0 }
 0x14e   : > { %v619_v14 = vadd.f32 %v618_v6, %v617_v7 }
 0x14f   : > { %v579_v10 = vpop.permute.xlu1 %578 }
 0x150   : > { %v605_v11 = vsel %vm597_vm0, %v596_v8, %v579_v10 }
 0x151   : > { %v620_v15 = vsel %vm606_vm2, %v605_v11, 0.0 }
 0x152   : > { %v621_v16 = vadd.f32 %v620_v15, %v619_v14 }
 0x154   : > { %622 = vadd.xlane.f32.xlu0 %v621_v16 }
 0x1dd   : > { %v623_v17 = vpop.xlane.xlu0 %622 }
 0x1de   : > { %v625_v13 = vmul.f32 0.03125, %v623_v17 }
 0x1e0   : > { %v626_v18 = vsub.f32 %v598_v46, %v625_v13  ;;  %v627_v19 = vsub.f32 %v599_v40, %v625_v13  ;;  %v628_v20 = vsub.f32 %v600_v45, %v625_v13  ;;  %v629_v21 = vsub.f32 %v601_v49, %v625_v13  ;;  %661 = vst.msk [vmem:[#allocation5] sm:$0x3] %vm660_vm3, %v625_v13 }
 0x1e1   : > { %v630_v22 = vsub.f32 %v602_v55, %v625_v13  ;;  %v631_v25 = vsub.f32 %v603_v59, %v625_v13  ;;  %v632_v29 = vsub.f32 %v604_v2, %v625_v13  ;;  %v633_v35 = vsub.f32 %v605_v11, %v625_v13 }
 0x1e2   : > { %v634_v23 = vmul.f32 %v626_v18, %v626_v18  ;;  %v635_v12 = vmul.f32 %v627_v19, %v627_v19  ;;  %v636_v24 = vmul.f32 %v628_v20, %v628_v20  ;;  %v637_v26 = vmul.f32 %v629_v21, %v629_v21 }
 0x1e3   : > { %v638_v31 = vmul.f32 %v630_v22, %v630_v22  ;;  %v639_v33 = vmul.f32 %v631_v25, %v631_v25  ;;  %v640_v38 = vmul.f32 %v632_v29, %v632_v29  ;;  %v641_v41 = vmul.f32 %v633_v35, %v633_v35 }
 0x1e4   : > { %v642_v27 = vsel %vm606_vm2, %v634_v23, 0.0  ;;  %v643_v28 = vsel %vm606_vm2, %v635_v12, 0.0  ;;  %v645_v32 = vsel %vm606_vm2, %v636_v24, 0.0  ;;  %v647_v36 = vsel %vm606_vm2, %v637_v26, 0.0 }
 0x1e5   : > { %v644_v30 = vadd.f32 %v643_v28, %v642_v27  ;;  %v649_v39 = vsel %vm606_vm2, %v638_v31, 0.0  ;;  %v651_v42 = vsel %vm606_vm2, %v639_v33, 0.0  ;;  %v653_v44 = vsel %vm606_vm2, %v640_v38, 0.0 }
 0x1e6   : > { %v655_v46 = vsel %vm606_vm2, %v641_v41, 0.0 }
 0x1e7   : > { %v646_v34 = vadd.f32 %v645_v32, %v644_v30 }
 0x1e9   : > { %v648_v37 = vadd.f32 %v647_v36, %v646_v34 }
 0x1eb   : > { %v650_v40 = vadd.f32 %v649_v39, %v648_v37 }
 0x1ed   : > { %v652_v43 = vadd.f32 %v651_v42, %v650_v40 }
 0x1ef   : > { %v654_v45 = vadd.f32 %v653_v44, %v652_v43 }
 0x1f1   : > { %v656_v47 = vadd.f32 %v655_v46, %v654_v45 }
 0x1f3   : > { %657 = vadd.xlane.f32.xlu1 %v656_v47 }
 0x27c   : > { %v658_v48 = vpop.xlane.xlu1 %657 }
 0x27d   : > { %v659_v49 = vmul.f32 0.03125, %v658_v48 }
 0x27f   : > { %v662_v50 = vadd.f32 1e-05, %v659_v49 }
 0x281   : > { %3805 = vrsqrt.f32 %v662_v50 }
 0x28e   : > { %v3806_v1 = vpop.eup %3805 }
 0x28f   : > { %665 = vst.msk [vmem:[#allocation5 + $0x2] sm:$0x3] %vm660_vm3, %v3806_v1 }
 0x290 PF: > { %s3204_s15 = sshll.u32 %s3942_s30, 3  ;;  %v3959_v51 = vmov 0   ;;  %s3960_s20 = smov 127   ;;  %v774_v59 = vld [vmem:[#allocation5] sm:$0x3]  ;;  %v4248_v7 = vld [vmem:[#allocation9 + $0x170] sm:$0xff] }
 0x291   : > { %s667_s19 = scalar_lea.vmem %s5276_s0, %s3204_s15  ;;  %3808 = vset.pattern.permute.xlu1 %v3959_v51  ;;  %3807 = vset.pattern.permute.xlu0 %v3959_v51  ;;  %5324 = vst [vmem:[#allocation13_spill] sm:$0xff] %v4248_v7  ;;  %v4250_v8 = vld [vmem:[#allocation9 + $0x168] sm:$0xff]  ;;  %v4252_v10 = vld [vmem:[#allocation9 + $0x158] sm:$0xff]  ;;  %v4257_v14 = vld [vmem:[#allocation9 + $0x150] sm:$0xff]  ;;  %s3961_s21 = smov 2   ;;  %vm841_vm12 = vcmask 1043456  }
 0x292   : > { %v4229_v0 = vld [vmem:[%s667_s19 + $0x4] sm:$0x3]  ;;  %v4231_v52 = vld [vmem:[%s667_s19] sm:$0x3]  ;;  %v4233_v53 = vld [vmem:[%s667_s19 + $0x6] sm:$0x3]  ;;  %1086 = vmatprep.subr.mxu0 %v4248_v7 }
 0x293   : > { %v674_v54 = vmul.f32 %v4229_v0, %v4229_v0  ;;  %v672_v55 = vmul.f32 %v4231_v52, %v4231_v52  ;;  %v4239_v56 = vld [vmem:[%s667_s19 + $0x2] sm:$0x3]  ;;  %v675_v4 = vmul.f32 %v4233_v53, %v4233_v53  ;;  %1087 = vmatpush1.msra.mxu0 %v4250_v8  ;;  %v4260_v17 = vld [vmem:[#allocation9 + $0x140] sm:$0xff]  ;;  %v4263_v18 = vld [vmem:[#allocation9 + $0x138] sm:$0xff]  ;;  %s3962_s22 = smov 3   ;;  %vm764_vm13 = vcmask 15360  }
 0x294   : > { %v673_v57 = vmul.f32 %v4239_v56, %v4239_v56  ;;  %1088 = vmatprep.subr.mxu0 %v4252_v10  ;;  %v4266_v20 = vld [vmem:[#allocation9 + $0x128] sm:$0xff]  ;;  %v4269_v23 = vld [vmem:[#allocation9 + $0x120] sm:$0xff]  ;;  %v4273_v27 = vld [vmem:[#allocation9 + $0x110] sm:$0xff]  ;;  %vm769_vm14 = vcmask 23552   ;;  %vm838_vm15 = vcmask 31744   ;;  %vm3965_vm0 = vmmov 0  }
 0x295   : > { %684 = vrot.lane.b32.xlu1 %v674_v54, %s3960_s20  ;;  %680 = vrot.lane.b32.xlu0 %v672_v55, %s3960_s20  ;;  %v4277_v29 = vld [vmem:[#allocation9 + $0x108] sm:$0xff]  ;;  %v4280_v32 = vld [vmem:[#allocation9 + $0xf8] sm:$0xff]  ;;  %v4284_v36 = vld [vmem:[#allocation9 + $0xf0] sm:$0xff]  ;;  %vm2979_vm1 = vcmask 25600   ;;  %p3200_p3 = scmp.ne.s32.totalorder %s3942_s30, 1 }
 0x296   : > { %v785_v58 = vld [vmem:[#allocation5 + $0x2] sm:$0x3]  ;;  %1089 = vmatpush1.msra.mxu0 %v4257_v14  ;;  %v4288_v39 = vld [vmem:[#allocation9 + $0xe0] sm:$0xff]  ;;  %v4293_v41 = vld [vmem:[#allocation9 + $0xd8] sm:$0xff] }
 0x297   : > { %1090 = vmatprep.subr.mxu0 %v4260_v17  ;;  %v4297_v43 = vld [vmem:[#allocation9 + $0xc8] sm:$0xff]  ;;  %v4300_v47 = vld [vmem:[#allocation9 + $0xc0] sm:$0xff]  ;;  %v4303_v5 = vld [vmem:[#allocation9 + $0xb0] sm:$0xff] }
 0x298   : > { %1091 = vmatpush1.msra.mxu0 %v4263_v18  ;;  %v4306_v48 = vld [vmem:[#allocation9 + $0xa8] sm:$0xff] }
 0x299   : > { %686 = vrot.lane.b32.xlu1 %v675_v4, %s3960_s20  ;;  %682 = vrot.lane.b32.xlu0 %v673_v57, %s3960_s20  ;;  %v795_v1 = vld [vmem:[%s5278_s2] sm:$0xff] }
 0x29a   : > { %1092 = vmatprep.subr.mxu0 %v4266_v20 }
 0x29b   : > { %1093 = vmatpush1.msra.mxu0 %v4269_v23 }
 0x29c   : > { %1094 = vmatprep.subr.mxu0 %v4273_v27 }
 0x29d   : > { %788 = vperm.xlu1 %3808, %v785_v58   ;;  %777 = vperm.xlu0 %3807, %v774_v59   ;;  %v4319_v58 = vld [vmem:[#allocation9 + $0x80] sm:$0xff]  ;;  %v4323_v59 = vld [vmem:[#allocation9 + $0x78] sm:$0xff] }
 0x29e   : > { %1095 = vmatpush1.msra.mxu0 %v4277_v29 }
 0x29f   : > { %1096 = vmatprep.subr.mxu0 %v4280_v32 }
 0x2a0   : > { %1097 = vmatpush1.msra.mxu0 %v4284_v36 }
 0x2a1   : > { %1098 = vmatprep.subr.mxu0 %v4288_v39 }
 0x2a2   : > { %1099 = vmatpush1.msra.mxu0 %v4293_v41 }
 0x2a3   : > { %1100 = vmatprep.subr.mxu0 %v4297_v43 }
 0x2a4   : > { %1101 = vmatpush1.msra.mxu0 %v4300_v47 }
 0x2a5   : > { %1102 = vmatprep.subr.mxu0 %v4303_v5 }
 0x2a6   : > { %1103 = vmatpush1.msra.mxu0 %v4306_v48 }
 0x307   : > { %v685_v60 = vpop.permute.xlu1 %684  ;;  %v681_v61 = vpop.permute.xlu0 %680 }
 0x308   : > { %v694_v62 = vadd.f32 %v685_v60, %v674_v54  ;;  %v692_v9 = vadd.f32 %v681_v61, %v672_v55  ;;  %v4313_v54 = vld [vmem:[#allocation9 + $0x98] sm:$0xff]  ;;  %v837_v55 = vcombine.high %v795_v1, %v795_v1  ;;  %v4327_v61 = vld [vmem:[#allocation9 + $0x68] sm:$0xff] }
 0x309   : > { %1104 = vmatprep.subr.mxu0 %v4313_v54 }
 0x30a   : > { %3810 = vrsqrt.f32 %v694_v62  ;;  %vm698_vm4 = vcmp.eq.f32.partialorder %v692_v9, inf  ;;  %v701_v19 = vand.u32 2147483648, %v692_v9  ;;  %vm700_vm5 = vcmp.eq.f32.partialorder %v692_v9, 0.0  ;;  %3182 = vmatprep.subr.msk.mxu1 %vm841_vm12, %v837_v55 }
 0x30b   : > { %3812 = vrsqrt.f32 %v692_v9  ;;  %v687_v63 = vpop.permute.xlu1 %686  ;;  %v683_v2 = vpop.permute.xlu0 %682  ;;  %vm712_vm6 = vcmp.eq.f32.partialorder %v694_v62, inf  ;;  %v715_v28 = vand.u32 2147483648, %v694_v62  ;;  %vm714_vm7 = vcmp.eq.f32.partialorder %v694_v62, 0.0  ;;  %3183 = vmatpush1.msk.msra.mxu1 %vm841_vm12, %v795_v1 }
 0x30c   : > { %v4245_v3 = vadd.f32 %v687_v63, %v675_v4  ;;  %v693_v6 = vadd.f32 %v683_v2, %v673_v57  ;;  %v4316_v4 = vld [vmem:[#allocation9 + $0x90] sm:$0xff]  ;;  %v5286_v57 = vmov 0.0   ;;  %v4337_v63 = vld [vmem:[#allocation9 + $0x48] sm:$0xff]  ;;  %v4341_v2 = vld [vmem:[#allocation9 + $0x38] sm:$0xff] }
 0x30d   : > { %912 = vmatprep.mubr.f32.mxu1 %v5286_v57  ;;  %1105 = vmatpush1.msra.mxu0 %v4316_v4 }
 0x30e   : > { %3814 = vrsqrt.f32 %v4245_v3  ;;  %vm705_vm8 = vcmp.eq.f32.partialorder %v693_v6, inf  ;;  %vm707_vm9 = vcmp.eq.f32.partialorder %v693_v6, 0.0  ;;  %v708_v31 = vand.u32 2147483648, %v693_v6  ;;  %1106 = vmatprep.subr.mxu0 %v4319_v58  ;;  %3377 = vmatprep.subr.mxu1 %v5286_v57 }
 0x30f   : > { %3816 = vrsqrt.f32 %v693_v6  ;;  %vm719_vm10 = vcmp.eq.f32.partialorder %v4245_v3, inf  ;;  %v722_v40 = vand.u32 2147483648, %v4245_v3  ;;  %vm721_vm11 = vcmp.eq.f32.partialorder %v4245_v3, 0.0  ;;  %1107 = vmatpush1.msra.mxu0 %v4323_v59  ;;  %1150 = vmatprep.mubr.f32.mxu0 %v5286_v57 }
 0x310   : > { %1108 = vmatprep.subr.mxu0 %v4327_v61 }
 0x317   : > { %v3811_v11 = vpop.eup %3810 }
 0x318   : > { %v3813_v15 = vpop.eup %3812  ;;  %v711_v16 = vmul.f32 %v3811_v11, %v694_v62  ;;  %v4350_v11 = vld [vmem:[#allocation9 + $0x18] sm:$0xff] }
 0x319   : > { %v697_v13 = vmul.f32 %v3813_v15, %v692_v9  ;;  %5326 = vst [vmem:[#allocation15_spill] sm:$0xff] %v4350_v11  ;;  %v4353_v15 = vld [vmem:[#allocation9 + $0x8] sm:$0xff] }
 0x31a   : > { %v713_v25 = vsel %vm712_vm6, %v694_v62, %v711_v16  ;;  %v4331_v62 = vld [vmem:[#allocation9 + $0x60] sm:$0xff]  ;;  %5327 = vst [vmem:[#allocation16_spill] sm:$0xff] %v4353_v15 }
 0x31b   : > { %v3815_v21 = vpop.eup %3814  ;;  %v699_v22 = vsel %vm698_vm4, %v692_v9, %v697_v13  ;;  %v716_v35 = vsel %vm714_vm7, %v715_v28, %v713_v25  ;;  %v4334_v9 = vld [vmem:[#allocation9 + $0x50] sm:$0xff]  ;;  %1109 = vmatpush1.msra.mxu0 %v4331_v62  ;;  %v4356_v16 = vld [vmem:[#allocation9] sm:$0xff]  ;;  %v4359_v13 = vld [vmem:[#allocation4] sm:$0x3] }
 0x31c   : > { %v3817_v12 = vpop.eup %3816  ;;  %v702_v24 = vsel %vm700_vm5, %v701_v19, %v699_v22  ;;  %v718_v26 = vmul.f32 %v3815_v21, %v4245_v3  ;;  %v726_v42 = vmul.f32 %v716_v35, %v716_v35  ;;  %1110 = vmatprep.subr.mxu0 %v4334_v9  ;;  %5328 = vst [vmem:[#allocation17_spill] sm:$0xff] %v4356_v16  ;;  %v789_v19 = vpop.permute.xlu1 %788 }
 0x31d   : > { %736 = vrot.lane.b32.xlu1 %v702_v24, %s3961_s21  ;;  %v704_v30 = vmul.f32 %v3817_v12, %v693_v6  ;;  %v724_v34 = vmul.f32 %v702_v24, %v702_v24  ;;  %1111 = vmatpush1.msra.mxu0 %v4337_v63  ;;  %v778_v21 = vpop.permute.xlu0 %777 }
 0x31e   : > { %v720_v38 = vsel %vm719_vm10, %v4245_v3, %v718_v26  ;;  %v730_v50 = vmul.f32 %v726_v42, %v716_v35  ;;  %v4344_v3 = vld [vmem:[#allocation9 + $0x30] sm:$0xff]  ;;  %1112 = vmatprep.subr.mxu0 %v4341_v2 }
 0x31f   : > { %v706_v33 = vsel %vm705_vm8, %v693_v6, %v704_v30  ;;  %v728_v45 = vmul.f32 %v724_v34, %v702_v24  ;;  %v723_v46 = vsel %vm721_vm11, %v722_v40, %v720_v38  ;;  %v4347_v6 = vld [vmem:[#allocation9 + $0x20] sm:$0xff]  ;;  %1113 = vmatpush1.msra.mxu0 %v4344_v3 }
 0x320   : > { %v709_v37 = vsel %vm707_vm9, %v708_v31, %v706_v33  ;;  %v727_v49 = vmul.f32 %v723_v46, %v723_v46  ;;  %5325 = vst [vmem:[#allocation14_spill] sm:$0xff] %v4347_v6  ;;  %1114 = vmatprep.subr.mxu0 %v4347_v6  ;;  %v799_v31 = vlaneseq }
 0x321   : > { %740 = vrot.lane.b32.xlu1 %v716_v35, %s3961_s21  ;;  %738 = vrot.lane.b32.xlu0 %v709_v37, %s3961_s21  ;;  %v725_v44 = vmul.f32 %v709_v37, %v709_v37 }
 0x322   : > { %v731_v60 = vmul.f32 %v727_v49, %v723_v46  ;;  %1115 = vmatpush1.msra.mxu0 %v4350_v11 }
 0x323   : > { %v729_v51 = vmul.f32 %v725_v44, %v709_v37  ;;  %1116 = vmatprep.subr.mxu0 %v4353_v15  ;;  %v3964_v37 = vmov 1983009808  }
 0x324   : > { %1117 = vmatpush1.msra.mxu0 %v4356_v16  ;;  %v821_v38 = vunpack.c.l.s4 %v3964_v37  ;;  %v4444_v37 = vld [vmem:[#allocation9 + $0x100] sm:$0xff] }
 0x325   : > { %752 = vrot.lane.b32.xlu1 %v728_v45, %s3962_s22  ;;  %742 = vrot.lane.b32.xlu0 %v723_v46, %s3961_s21  ;;  %s2978_s21 = scalar_lea.vmem [#allocation6], %s3204_s15 }
 0x326   : > { %1151 = vmatmul.mubr.f32.vlgmr.msra.gmra.mxu0 %v4359_v13  ;;  %1268 = vmatprep.subr.mxu0 %v4248_v7 }
 0x327   : > { %1269 = vmatpush1.msra.mxu0 %v4250_v8  ;;  %1332 = vmatprep.mubr.f32.mxu0 %v5286_v57 }
 0x328   : > { %1270 = vmatprep.subr.mxu0 %v4252_v10 }
 0x329   : > { %756 = vrot.lane.b32.xlu1 %v730_v50, %s3962_s22  ;;  %754 = vrot.lane.b32.xlu0 %v729_v51, %s3962_s22 }
 0x32a   : > { %1271 = vmatpush1.msra.mxu0 %v4257_v14 }
 0x32b   : > { %1272 = vmatprep.subr.mxu0 %v4260_v17 }
 0x32c   : > { %1273 = vmatpush1.msra.mxu0 %v4263_v18 }
 0x32d   : > { %758 = vrot.lane.b32.xlu0 %v731_v60, %s3962_s22  ;;  %1274 = vmatprep.subr.mxu0 %v4266_v20 }
 0x32e   : > { %1275 = vmatpush1.msra.mxu0 %v4269_v23 }
 0x32f   : > { %1276 = vmatprep.subr.mxu0 %v4273_v27 }
 0x330   : > { %1277 = vmatpush1.msra.mxu0 %v4277_v29 }
 0x331   : > { %1278 = vmatprep.subr.mxu0 %v4280_v32 }
 0x332   : > { %1279 = vmatpush1.msra.mxu0 %v4284_v36 }
 0x333   : > { %1280 = vmatprep.subr.mxu0 %v4288_v39 }
 0x334   : > { %1281 = vmatpush1.msra.mxu0 %v4293_v41 }
 0x335   : > { %1282 = vmatprep.subr.mxu0 %v4297_v43 }
 0x336   : > { %1283 = vmatpush1.msra.mxu0 %v4300_v47 }
 0x337   : > { %1284 = vmatprep.subr.mxu0 %v4303_v5 }
 0x338   : > { %1285 = vmatpush1.msra.mxu0 %v4306_v48 }
 0x339   : > { %1286 = vmatprep.subr.mxu0 %v4313_v54 }
 0x33a   : > { %1287 = vmatpush1.msra.mxu0 %v4316_v4 }
 0x33b   : > { %1288 = vmatprep.subr.mxu0 %v4319_v58 }
 0x33c   : > { %1289 = vmatpush1.msra.mxu0 %v4323_v59 }
 0x33d   : > { %1290 = vmatprep.subr.mxu0 %v4327_v61 }
 0x33e   : > { %1291 = vmatpush1.msra.mxu0 %v4331_v62 }
 0x33f   : > { %1292 = vmatprep.subr.mxu0 %v4334_v9 }
 0x340   : > { %1293 = vmatpush1.msra.mxu0 %v4337_v63 }
 0x341   : > { %1294 = vmatprep.subr.mxu0 %v4341_v2 }
 0x342   : > { %1295 = vmatpush1.msra.mxu0 %v4344_v3 }
 0x343   : > { %1296 = vmatprep.subr.mxu0 %v4347_v6 }
 0x344   : > { %1297 = vmatpush1.msra.mxu0 %v4350_v11 }
 0x345   : > { %1298 = vmatprep.subr.mxu0 %v4353_v15 }
 0x346   : > { %1299 = vmatpush1.msra.mxu0 %v4356_v16 }
 0x347   : > { %1445 = vmatprep.subr.mxu0 %v4248_v7 }
 0x38f   : > { %v737_v22 = vpop.permute.xlu1 %736 }
 0x390   : > { %v765_v28 = vsel %vm764_vm13, %v4231_v52, %v737_v22  ;;  %v4407_v52 = vshrl.u32 %v799_v31, 7 }
 0x392   : > { %5329 = vst [vmem:[#allocation18_spill] sm:$0xff] %v4407_v52 }
 0x393   : > { %v741_v12 = vpop.permute.xlu1 %740  ;;  %v739_v24 = vpop.permute.xlu0 %738 }
 0x394   : > { %v767_v34 = vsel %vm764_vm13, %v4229_v0, %v741_v12  ;;  %v766_v35 = vsel %vm764_vm13, %v4239_v56, %v739_v24  ;;  %v822_v0 = vunpack.c.0.s8 %v821_v38  ;;  %v4448_v38 = vld [vmem:[#allocation9 + $0xe8] sm:$0xff] }
 0x396   : > { %v4413_v12 = vsub.s32 %v822_v0, %v4407_v52  ;;  %v4480_v0 = vld [vmem:[#allocation9 + $0x28] sm:$0xff] }
 0x397   : > { %v753_v25 = vpop.permute.xlu1 %752  ;;  %v743_v26 = vpop.permute.xlu0 %742  ;;  %5330 = vst [vmem:[#allocation19_spill] sm:$0xff] %v4480_v0 }
 0x398   : > { %v770_v30 = vsel %vm769_vm14, %v765_v28, %v753_v25  ;;  %v768_v49 = vsel %vm764_vm13, %v4233_v53, %v743_v26  ;;  %v796_v26 = vld [vmem:[%s5278_s2 + $0x8] sm:$0xf] }
 0x399   : > { %v780_v45 = vsub.f32 %v770_v30, %v778_v21 }
 0x39b   : > { %v757_v33 = vpop.permute.xlu1 %756  ;;  %v755_v40 = vpop.permute.xlu0 %754  ;;  %v791_v55 = vmul.f32 %v789_v19, %v780_v45  ;;  %v4464_v45 = vld [vmem:[#allocation9 + $0x88] sm:$0xff] }
 0x39c   : > { %v772_v42 = vsel %vm769_vm14, %v767_v34, %v757_v33  ;;  %v771_v44 = vsel %vm769_vm14, %v766_v35, %v755_v40  ;;  %v4432_v34 = vld [vmem:[#allocation9 + $0x148] sm:$0xff]  ;;  %v4436_v35 = vld [vmem:[#allocation9 + $0x130] sm:$0xff]  ;;  %v4440_v33 = vld [vmem:[#allocation9 + $0x118] sm:$0xff] }
 0x39d   : > { %v781_v46 = vsub.f32 %v771_v44, %v778_v21  ;;  %v782_v50 = vsub.f32 %v772_v42, %v778_v21  ;;  %v4452_v40 = vld [vmem:[#allocation9 + $0xd0] sm:$0xff]  ;;  %v4456_v42 = vld [vmem:[#allocation9 + $0xb8] sm:$0xff]  ;;  %v4460_v44 = vld [vmem:[#allocation9 + $0xa0] sm:$0xff] }
 0x39f   : > { %v792_v1 = vmul.f32 %v789_v19, %v781_v46  ;;  %v759_v51 = vpop.permute.xlu0 %758  ;;  %v793_v22 = vmul.f32 %v789_v19, %v782_v50  ;;  %v4468_v46 = vld [vmem:[#allocation9 + $0x70] sm:$0xff]  ;;  %v4476_v50 = vld [vmem:[#allocation9 + $0x40] sm:$0xff] }
 0x3a0   : > { %v773_v56 = vsel %vm769_vm14, %v768_v49, %v759_v51  ;;  %v4472_v49 = vld [vmem:[#allocation9 + $0x58] sm:$0xff]  ;;  %v5299_v51 = vsub.s32 0, %v4407_v52 }
 0x3a1   : > { %v783_v60 = vsub.f32 %v773_v56, %v778_v21  ;;  %v818_v24 = vcombine.low %v791_v55, %v792_v1  ;;  %v4426_v21 = vld [vmem:[#allocation9 + $0x160] sm:$0xff]  ;;  %v4484_v1 = vld [vmem:[#allocation9 + $0x10] sm:$0xff]  ;;  %v5300_v56 = vsub.s32 1, %v4407_v52  ;;  %v797_v55 = vld [vmem:[%s5280_s4] sm:$0x7] }
 0x3a2   : > { %5331 = vst [vmem:[#allocation20_spill] sm:$0xff] %v4484_v1 }
 0x3a3   : > { %v794_v25 = vmul.f32 %v789_v19, %v783_v60  ;;  %v826_v30 = vrot.slane %v818_v24, %v4413_v12  ;;  %v4424_v19 = vld [vmem:[#allocation9 + $0x178] sm:$0xff]  ;;  %v5305_v60 = vsub.s32 2, %v4407_v52  ;;  %v806_v24 = vrot.slane %v797_v55, %v5300_v56 }
 0x3a5   : > { %v819_v28 = vcombine.low %v793_v22, %v794_v25  ;;  %v802_v22 = vrot.slane %v797_v55, %v5299_v51 }
 0x3a7   : > { %v833_v31 = vrot.slane %v819_v28, %v4413_v12  ;;  %v810_v28 = vrot.slane %v797_v55, %v5305_v60 }
 0x3a9   : > { %v834_v53 = vcombine.low %v826_v30, %v833_v31 }
 0x3ab   : > { %3184 = vmatmul.mubr.msk.f32.vlgmr.msra.gmra.mxu1 %vm838_vm15, %v834_v53 }
 0x3ac   : > { %3378 = vmatpush3.msk.msra.mxu1 %vm841_vm12, %v796_v26  ;;  %3379 = vmatprep.mubr.msk.f32.mxu1 %vm3965_vm0, %v5286_v57 }
 0x3ad   : > { %3382 = vmatprep.subr.mxu1 %v5286_v57 }
 0x3af   : > { %3380 = vmatmul.mubr.msk.f32.vlgmr.msra.gmra.mxu1 %vm838_vm15, %v834_v53 }
 0x3b0   : > { %3383 = vmatpush3.msra.mxu1 %v4424_v19  ;;  %3414 = vmatprep.mubr.msk.f32.mxu1 %vm3965_vm0, %v5286_v57 }
 0x3b1   : > { %3384 = vmatprep.subr.mxu1 %v5286_v57 }
 0x3b2   : > { %3385 = vmatpush3.msra.mxu1 %v4426_v21 }
 0x3b3   : > { %3386 = vmatprep.subr.mxu1 %v5286_v57 }
 0x3b4   : > { %3387 = vmatpush3.msra.mxu1 %v4432_v34 }
 0x3b5   : > { %3388 = vmatprep.subr.mxu1 %v5286_v57 }
 0x3b6   : > { %3389 = vmatpush3.msra.mxu1 %v4436_v35 }
 0x3b7   : > { %3390 = vmatprep.subr.mxu1 %v5286_v57 }
 0x3b8   : > { %3391 = vmatpush3.msra.mxu1 %v4440_v33 }
 0x3b9   : > { %3392 = vmatprep.subr.mxu1 %v5286_v57 }
 0x3ba   : > { %3393 = vmatpush3.msra.mxu1 %v4444_v37 }
 0x3bb   : > { %3394 = vmatprep.subr.mxu1 %v5286_v57 }
 0x3bc   : > { %3395 = vmatpush3.msra.mxu1 %v4448_v38 }
 0x3bd   : > { %3396 = vmatprep.subr.mxu1 %v5286_v57 }
 0x3be   : > { %3397 = vmatpush3.msra.mxu1 %v4452_v40 }
 0x3bf   : > { %3398 = vmatprep.subr.mxu1 %v5286_v57 }
 0x3c0   : > { %3399 = vmatpush3.msra.mxu1 %v4456_v42 }
 0x3c1   : > { %3400 = vmatprep.subr.mxu1 %v5286_v57 }
 0x3c2   : > { %3401 = vmatpush3.msra.mxu1 %v4460_v44 }
 0x3c3   : > { %3402 = vmatprep.subr.mxu1 %v5286_v57 }
 0x3c4   : > { %3403 = vmatpush3.msra.mxu1 %v4464_v45 }
 0x3c5   : > { %3404 = vmatprep.subr.mxu1 %v5286_v57 }
 0x3c6   : > { %3405 = vmatpush3.msra.mxu1 %v4468_v46 }
 0x3c7   : > { %3406 = vmatprep.subr.mxu1 %v5286_v57 }
 0x3c8   : > { %3407 = vmatpush3.msra.mxu1 %v4472_v49 }
 0x3c9   : > { %3408 = vmatprep.subr.mxu1 %v5286_v57 }
 0x3ca   : > { %3409 = vmatpush3.msra.mxu1 %v4476_v50 }
 0x3cb   : > { %3410 = vmatprep.subr.mxu1 %v5286_v57 }
 0x3cc   : > { %3411 = vmatpush3.msra.mxu1 %v4480_v0 }
 0x3cd   : > { %3412 = vmatprep.subr.mxu1 %v5286_v57 }
 0x3ce   : > { %3413 = vmatpush3.msra.mxu1 %v4484_v1 }
 0x3cf   : > { %3415 = vmatmul.mubr.f32.vlgmr.msra.gmra.mxu1 %v4359_v13  ;;  %3417 = vmatprep.subr.mxu1 %v5286_v57 }
 0x3d0   : > { %3418 = vmatpush3.msra.mxu1 %v4424_v19  ;;  %3449 = vmatprep.mubr.msk.f32.mxu1 %vm3965_vm0, %v5286_v57 }
 0x3d1   : > { %3419 = vmatprep.subr.mxu1 %v5286_v57 }
 0x3d2   : > { %3420 = vmatpush3.msra.mxu1 %v4426_v21 }
 0x3d3   : > { %3421 = vmatprep.subr.mxu1 %v5286_v57 }
 0x3d4   : > { %3422 = vmatpush3.msra.mxu1 %v4432_v34 }
 0x3d5   : > { %3423 = vmatprep.subr.mxu1 %v5286_v57 }
 0x3d6   : > { %3424 = vmatpush3.msra.mxu1 %v4436_v35 }
 0x3d7   : > { %3425 = vmatprep.subr.mxu1 %v5286_v57 }
 0x3d8   : > { %3426 = vmatpush3.msra.mxu1 %v4440_v33 }
 0x3d9   : > { %3427 = vmatprep.subr.mxu1 %v5286_v57 }
 0x3da   : > { %3428 = vmatpush3.msra.mxu1 %v4444_v37 }
 0x3db   : > { %3429 = vmatprep.subr.mxu1 %v5286_v57 }
 0x3dc   : > { %3430 = vmatpush3.msra.mxu1 %v4448_v38 }
 0x3dd   : > { %3431 = vmatprep.subr.mxu1 %v5286_v57 }
 0x3de   : > { %3432 = vmatpush3.msra.mxu1 %v4452_v40 }
 0x3df   : > { %3433 = vmatprep.subr.mxu1 %v5286_v57 }
 0x3e0   : > { %3434 = vmatpush3.msra.mxu1 %v4456_v42 }
 0x3e1   : > { %3435 = vmatprep.subr.mxu1 %v5286_v57 }
 0x3e2   : > { %3436 = vmatpush3.msra.mxu1 %v4460_v44 }
 0x3e3   : > { %3437 = vmatprep.subr.mxu1 %v5286_v57 }
 0x3e4   : > { %3438 = vmatpush3.msra.mxu1 %v4464_v45 }
 0x3e5   : > { %3439 = vmatprep.subr.mxu1 %v5286_v57 }
 0x3e6   : > { %3440 = vmatpush3.msra.mxu1 %v4468_v46  ;;  %v1152_v15 = vpop.f32.mrf.mxu0 }
 0x3e7   : > { %3441 = vmatprep.subr.mxu1 %v5286_v57 }
 0x3e8   : > { %3442 = vmatpush3.msra.mxu1 %v4472_v49  ;;  %v1154_v60 = vpop.f32.mrf.mxu0 }
 0x3e9   : > { %3443 = vmatprep.subr.mxu1 %v5286_v57 }
 0x3ea   : > { %3444 = vmatpush3.msra.mxu1 %v4476_v50 }
 0x3eb   : > { %3445 = vmatprep.subr.mxu1 %v5286_v57 }
 0x3ec   : > { %3446 = vmatpush3.msra.mxu1 %v4480_v0 }
 0x3ed   : > { %3447 = vmatprep.subr.mxu1 %v5286_v57 }
 0x3ee   : > { %3448 = vmatpush3.msra.mxu1 %v4484_v1 }
 0x3ef   : > { %3452 = vmatprep.subr.mxu1 %v5286_v57 }
 0x46b   : > { %v914_v25 = vpop.f32.mrf.mxu1 }
 0x46c   : > { %v915_v31 = vadd.f32 %v914_v25, %v802_v22 }
 0x46d   : > { %v916_v30 = vpop.f32.mrf.mxu1 }
 0x46e   : > { %v917_v53 = vadd.f32 %v916_v30, %v806_v24 }
 0x46f   : > { %v985_v26 = vpop.f32.mrf.mxu1 }
 0x470   : > { %v992_v57 = vcombine.low %v915_v31, %v917_v53  ;;  %v993_v7 = vcombine.high %v915_v31, %v917_v53  ;;  %v986_v1 = vadd.f32 %v985_v26, %v810_v28 }
 0x471   : > { %v3381_v16 = vpop.f32.mrf.mxu1 }
 0x472   : > { %v1001_v0 = vrot.slane %v992_v57, %v4413_v12  ;;  %v994_v11 = vcombine.high %v986_v1, %v986_v1  ;;  %v1015_v51 = vrot.slane %v986_v1, %v4413_v12  ;;  %v1008_v56 = vrot.slane %v993_v7, %v4413_v12 }
 0x473   : > { %v1229_v16 = vcombine.low %v1152_v15, %v1154_v60 }
 0x474   : > { %v1022_v6 = vrot.slane %v994_v11, %v4413_v12  ;;  %v1023_v52 = vcombine.low %v1001_v0, %v1015_v51  ;;  %v1024_v55 = vcombine.high %v1001_v0, %v1015_v51 }
 0x475   : > { %v1236_v25 = vrot.slane %v1229_v16, %v4413_v12  ;;  %v5332_v16 = vmov 0.0  }
 0x476   : > { %v1025_v22 = vcombine.low %v1008_v56, %v1022_v6  ;;  %v1026_v24 = vcombine.high %v1008_v56, %v1022_v6  ;;  %1031 = vst [vmem:[#allocation3] sm:$0x3f] %v1023_v52  ;;  %1032 = vst [vmem:[#allocation3 + $0x6] sm:$0x3f] %v1024_v55  ;;  %v4545_v6 = vld [vmem:[%s5282_s6] ss:$0 sm:$0xff] }
 0x478   : > { %1033 = vst [vmem:[#allocation3 + $0xc] sm:$0x3f] %v1025_v22  ;;  %1034 = vst [vmem:[#allocation3 + $0x12] sm:$0x3f] %v1026_v24 }
 0x47d   : > { %v1085_v57 = vld [vmem:[#allocation3] sm:$0x3f] }
 0x47e   : > { %v1238_v28 = vadd.f32 %v1236_v25, %v1085_v57  ;;  %v1254_v51 = vrot.slane %v1085_v57, 4  ;;  %v5334_v25 = vld [vmem:[#allocation15_spill] sm:$0xff] }
 0x47f   : > { %v5335_v57 = vld [vmem:[#allocation19_spill] sm:$0xff] }
 0x480   : > { %v3187_v30 = vmul.f32 -1.442695, %v1238_v28  ;;  %v5336_v28 = vld [vmem:[#allocation16_spill] sm:$0xff] }
 0x482   : > { %3818 = vpow2.f32 %v3187_v30  ;;  %v5337_v30 = vld [vmem:[#allocation17_spill] sm:$0xff] }
 0x48f   : > { %v3819_v1 = vpop.eup %3818  ;;  %v1223_v7 = vpop.f32.mrf.mxu1 }
 0x490   : > { %v1242_v31 = vadd.f32 1.0, %v3819_v1  ;;  %v1251_v52 = vadd.f32 %v4545_v6, %v1223_v7  ;;  %v5338_v1 = vld [vmem:[#allocation20_spill] sm:$0xff]  ;;  %v5339_v7 = vld [vmem:[#allocation13_spill] sm:$0xff] }
 0x491   : > { %v3416_v11 = vpop.f32.mrf.mxu1 }
 0x492   : > { %3820 = vrcp.f32 %v1242_v31 }
 0x49f   : > { %v3821_v0 = vpop.eup %3820 }
 0x4a0   : > { %v1252_v15 = vmul.f32 %v3821_v0, %v1251_v52  ;;  %v1259_v60 = vrot.slane %v3821_v0, 2 }
 0x4a2   : > { %v1256_v56 = vadd.f32 %v1254_v51, %v1252_v15  ;;  %v1261_v53 = vsub.f32 1.0, %v1259_v60  ;;  %v1263_v22 = vmul.f32 %v1259_v60, %v4359_v13  ;;  %v5333_v13 = vld [vmem:[#allocation14_spill] sm:$0xff] }
 0x4a4   : > { %3822 = vtanh.f32 %v1256_v56  ;;  %v1267_v56 = vld [vmem:[#allocation3 + $0x6] sm:$0x3f] }
 0x4b1   : > { %v3823_v26 = vpop.eup %3822 }
 0x4b2   : > { %v1262_v55 = vmul.f32 %v3823_v26, %v1261_v53 }
 0x4b4   : > { %v4549_v24 = vadd.f32 %v1263_v22, %v1262_v55 }
 0x4b6   : > { %1265 = vst [vmem:[#allocation2] sm:$0x3] %v4549_v24  ;;  %1333 = vmatmul.mubr.f32.vlgmr.msra.gmra.mxu0 %v4549_v24  ;;  %3450 = vmatmul.mubr.f32.vlgmr.msra.gmra.mxu1 %v4549_v24 }
 0x4b7   : > { %1446 = vmatpush1.msra.mxu0 %v4250_v8  ;;  %3453 = vmatpush3.msra.mxu1 %v4424_v19 }
 0x4b8   : > { %1447 = vmatprep.subr.mxu0 %v4252_v10  ;;  %3454 = vmatprep.subr.mxu1 %v5332_v16 }
 0x4b9   : > { %1448 = vmatpush1.msra.mxu0 %v4257_v14  ;;  %3455 = vmatpush3.msra.mxu1 %v4426_v21 }
 0x4ba   : > { %1449 = vmatprep.subr.mxu0 %v4260_v17  ;;  %3456 = vmatprep.subr.mxu1 %v5332_v16 }
 0x4bb   : > { %1450 = vmatpush1.msra.mxu0 %v4263_v18  ;;  %3457 = vmatpush3.msra.mxu1 %v4432_v34 }
 0x4bc   : > { %1451 = vmatprep.subr.mxu0 %v4266_v20  ;;  %3458 = vmatprep.subr.mxu1 %v5332_v16 }
 0x4bd   : > { %1452 = vmatpush1.msra.mxu0 %v4269_v23  ;;  %3459 = vmatpush3.msra.mxu1 %v4436_v35 }
 0x4be   : > { %1453 = vmatprep.subr.mxu0 %v4273_v27  ;;  %3460 = vmatprep.subr.mxu1 %v5332_v16 }
 0x4bf   : > { %1454 = vmatpush1.msra.mxu0 %v4277_v29  ;;  %3461 = vmatpush3.msra.mxu1 %v4440_v33 }
 0x4c0   : > { %1455 = vmatprep.subr.mxu0 %v4280_v32  ;;  %3462 = vmatprep.subr.mxu1 %v5332_v16 }
 0x4c1   : > { %1456 = vmatpush1.msra.mxu0 %v4284_v36  ;;  %3463 = vmatpush3.msra.mxu1 %v4444_v37 }
 0x4c2   : > { %1457 = vmatprep.subr.mxu0 %v4288_v39  ;;  %3464 = vmatprep.subr.mxu1 %v5332_v16 }
 0x4c3   : > { %1458 = vmatpush1.msra.mxu0 %v4293_v41  ;;  %3465 = vmatpush3.msra.mxu1 %v4448_v38 }
 0x4c4   : > { %1459 = vmatprep.subr.mxu0 %v4297_v43  ;;  %3466 = vmatprep.subr.mxu1 %v5332_v16 }
 0x4c5   : > { %1460 = vmatpush1.msra.mxu0 %v4300_v47  ;;  %3467 = vmatpush3.msra.mxu1 %v4452_v40 }
 0x4c6   : > { %1461 = vmatprep.subr.mxu0 %v4303_v5  ;;  %3468 = vmatprep.subr.mxu1 %v5332_v16 }
 0x4c7   : > { %1462 = vmatpush1.msra.mxu0 %v4306_v48  ;;  %3469 = vmatpush3.msra.mxu1 %v4456_v42 }
 0x4c8   : > { %1463 = vmatprep.subr.mxu0 %v4313_v54  ;;  %3470 = vmatprep.subr.mxu1 %v5332_v16 }
 0x4c9   : > { %1464 = vmatpush1.msra.mxu0 %v4316_v4  ;;  %3471 = vmatpush3.msra.mxu1 %v4460_v44 }
 0x4ca   : > { %1465 = vmatprep.subr.mxu0 %v4319_v58  ;;  %3472 = vmatprep.subr.mxu1 %v5332_v16 }
 0x4cb   : > { %1466 = vmatpush1.msra.mxu0 %v4323_v59  ;;  %3473 = vmatpush3.msra.mxu1 %v4464_v45 }
 0x4cc   : > { %1467 = vmatprep.subr.mxu0 %v4327_v61  ;;  %3474 = vmatprep.subr.mxu1 %v5332_v16 }
 0x4cd   : > { %1468 = vmatpush1.msra.mxu0 %v4331_v62  ;;  %3475 = vmatpush3.msra.mxu1 %v4468_v46 }
 0x4ce   : > { %1469 = vmatprep.subr.mxu0 %v4334_v9  ;;  %3476 = vmatprep.subr.mxu1 %v5332_v16 }
 0x4cf   : > { %1470 = vmatpush1.msra.mxu0 %v4337_v63  ;;  %3477 = vmatpush3.msra.mxu1 %v4472_v49 }
 0x4d0   : > { %1471 = vmatprep.subr.mxu0 %v4341_v2  ;;  %3478 = vmatprep.subr.mxu1 %v5332_v16 }
 0x4d1   : > { %1472 = vmatpush1.msra.mxu0 %v4344_v3  ;;  %3479 = vmatpush3.msra.mxu1 %v4476_v50 }
 0x4d2   : > { %1473 = vmatprep.subr.mxu0 %v5333_v13  ;;  %3480 = vmatprep.subr.mxu1 %v5332_v16 }
 0x4d3   : > { %1474 = vmatpush1.msra.mxu0 %v5334_v25  ;;  %3481 = vmatpush3.msra.mxu1 %v5335_v57 }
 0x4d4   : > { %1475 = vmatprep.subr.mxu0 %v5336_v28  ;;  %3482 = vmatprep.subr.mxu1 %v5332_v16 }
 0x4d5   : > { %1476 = vmatpush1.msra.mxu0 %v5337_v30  ;;  %1509 = vmatprep.mubr.f32.mxu0 %v5332_v16  ;;  %v1430_v30 = vrot.slane %v1267_v56, 4 }
 0x4d6   : > { %3483 = vmatpush3.msra.mxu1 %v5338_v1  ;;  %3484 = vmatprep.mubr.msk.f32.mxu1 %vm3965_vm0, %v5332_v16 }
 0x4d7   : > { %1622 = vmatprep.subr.mxu0 %v5339_v7  ;;  %3487 = vmatprep.subr.mxu1 %v5332_v16 }
 0x576   : > { %v1334_v31 = vpop.f32.mrf.mxu0  ;;  %v1405_v11 = vpop.f32.mrf.mxu1 }
 0x577   : > { %v1427_v22 = vadd.f32 %v4545_v6, %v1405_v11  ;;  %v1831_v11 = vld [vmem:[#allocation7 + $0xe8] sm:$0xff] }
 0x578   : > { %v1336_v52 = vpop.f32.mrf.mxu0  ;;  %v3451_v0 = vpop.f32.mrf.mxu1 }
 0x579   : > { %v1411_v15 = vcombine.low %v1334_v31, %v1336_v52 }
 0x57b   : > { %v1418_v51 = vrot.slane %v1411_v15, %v4413_v12 }
 0x57d   : > { %v1420_v60 = vadd.f32 %v1418_v51, %v1267_v56  ;;  %v1826_v51 = vld [vmem:[#allocation7 + $0xc0] sm:$0xff]  ;;  %v1824_v56 = vld [vmem:[#allocation7 + $0xb0] sm:$0xff] }
 0x57f   : > { %v3189_v53 = vmul.f32 -1.442695, %v1420_v60  ;;  %v1828_v60 = vld [vmem:[#allocation7 + $0xd0] sm:$0xff] }
 0x581   : > { %3824 = vpow2.f32 %v3189_v53  ;;  %v1823_v53 = vld [vmem:[#allocation7 + $0xa8] sm:$0xff] }
 0x58e   : > { %v3825_v26 = vpop.eup %3824 }
 0x58f   : > { %v1424_v55 = vadd.f32 1.0, %v3825_v26  ;;  %v1821_v26 = vld [vmem:[#allocation7 + $0x98] sm:$0xff] }
 0x591   : > { %3826 = vrcp.f32 %v1424_v55  ;;  %v1825_v55 = vld [vmem:[#allocation7 + $0xb8] sm:$0xff] }
 0x59e   : > { %v3827_v1 = vpop.eup %3826 }
 0x59f   : > { %v1428_v7 = vmul.f32 %v3827_v1, %v1427_v22  ;;  %v1435_v57 = vrot.slane %v3827_v1, 2  ;;  %v1827_v1 = vld [vmem:[#allocation7 + $0xc8] sm:$0xff]  ;;  %v1820_v22 = vld [vmem:[#allocation7 + $0x90] sm:$0xff] }
 0x5a1   : > { %v1432_v28 = vadd.f32 %v1430_v30, %v1428_v7  ;;  %v1437_v25 = vsub.f32 1.0, %v1435_v57  ;;  %v1439_v52 = vmul.f32 %v1435_v57, %v4549_v24  ;;  %v1833_v24 = vld [vmem:[#allocation7 + $0xf8] sm:$0xff]  ;;  %v1830_v57 = vld [vmem:[#allocation7 + $0xe0] sm:$0xff] }
 0x5a2   : > { %v1829_v30 = vld [vmem:[#allocation7 + $0xd8] sm:$0xff]  ;;  %v1818_v7 = vld [vmem:[#allocation7 + $0x80] sm:$0xff] }
 0x5a3   : > { %3828 = vtanh.f32 %v1432_v28  ;;  %v1834_v28 = vld [vmem:[#allocation7 + $0x100] sm:$0xff] }
 0x5b0   : > { %v3829_v0 = vpop.eup %3828 }
 0x5b1   : > { %v1438_v31 = vmul.f32 %v3829_v0, %v1437_v25  ;;  %v1832_v25 = vld [vmem:[#allocation7 + $0xf0] sm:$0xff]  ;;  %v1822_v0 = vld [vmem:[#allocation7 + $0xa0] sm:$0xff] }
 0x5b3   : > { %v4624_v15 = vadd.f32 %v1439_v52, %v1438_v31  ;;  %v1817_v31 = vld [vmem:[#allocation7 + $0x78] sm:$0xff]  ;;  %v1815_v52 = vld [vmem:[#allocation7 + $0x68] sm:$0xff] }
 0x5b5   : > { %1442 = vst [vmem:[#allocation2 + $0x2] sm:$0x3] %v4624_v15  ;;  %1510 = vmatmul.mubr.f32.vlgmr.msra.gmra.mxu0 %v4624_v15  ;;  %3485 = vmatmul.mubr.f32.vlgmr.msra.gmra.mxu1 %v4624_v15 }
 0x5b6   : > { %1623 = vmatpush1.msra.mxu0 %v4250_v8  ;;  %3488 = vmatpush3.msra.mxu1 %v4424_v19  ;;  %v5340_v8 = vld [vmem:[#allocation15_spill] sm:$0xff] }
 0x5b7   : > { %1624 = vmatprep.subr.mxu0 %v4252_v10  ;;  %3489 = vmatprep.subr.mxu1 %v5332_v16  ;;  %v5341_v10 = vld [vmem:[#allocation19_spill] sm:$0xff] }
 0x5b8   : > { %1625 = vmatpush1.msra.mxu0 %v4257_v14  ;;  %3490 = vmatpush3.msra.mxu1 %v4426_v21  ;;  %v5342_v14 = vld [vmem:[#allocation16_spill] sm:$0xff]  ;;  %v1848_v19 = vld [vmem:[#allocation7 + $0x170] sm:$0xff]  ;;  %v1847_v21 = vld [vmem:[#allocation7 + $0x168] sm:$0xff] }
 0x5b9   : > { %1626 = vmatprep.subr.mxu0 %v4260_v17  ;;  %3491 = vmatprep.subr.mxu1 %v5332_v16  ;;  %v5343_v17 = vld [vmem:[#allocation17_spill] sm:$0xff] }
 0x5ba   : > { %1627 = vmatpush1.msra.mxu0 %v4263_v18  ;;  %3492 = vmatpush3.msra.mxu1 %v4432_v34  ;;  %v5344_v18 = vld [vmem:[#allocation20_spill] sm:$0xff] }
 0x5bb   : > { %1628 = vmatprep.subr.mxu0 %v4266_v20  ;;  %3493 = vmatprep.subr.mxu1 %v5332_v16  ;;  %v1845_v34 = vld [vmem:[#allocation7 + $0x158] sm:$0xff] }
 0x5bc   : > { %1629 = vmatpush1.msra.mxu0 %v4269_v23  ;;  %3494 = vmatpush3.msra.mxu1 %v4436_v35  ;;  %v1849_v35 = vld [vmem:[#allocation7 + $0x178] sm:$0xff] }
 0x5bd   : > { %1630 = vmatprep.subr.mxu0 %v4273_v27  ;;  %3495 = vmatprep.subr.mxu1 %v5332_v16 }
 0x5be   : > { %1631 = vmatpush1.msra.mxu0 %v4277_v29  ;;  %3496 = vmatpush3.msra.mxu1 %v4440_v33  ;;  %v1844_v33 = vld [vmem:[#allocation7 + $0x150] sm:$0xff] }
 0x5bf   : > { %1632 = vmatprep.subr.mxu0 %v4280_v32  ;;  %3497 = vmatprep.subr.mxu1 %v5332_v16 }
 0x5c0   : > { %1633 = vmatpush1.msra.mxu0 %v4284_v36  ;;  %3498 = vmatpush3.msra.mxu1 %v4444_v37  ;;  %v1842_v37 = vld [vmem:[#allocation7 + $0x140] sm:$0xff] }
 0x5c1   : > { %1634 = vmatprep.subr.mxu0 %v4288_v39  ;;  %3499 = vmatprep.subr.mxu1 %v5332_v16  ;;  %v1444_v39 = vld [vmem:[#allocation3 + $0xc] sm:$0x3f] }
 0x5c2   : > { %1635 = vmatpush1.msra.mxu0 %v4293_v41  ;;  %3500 = vmatpush3.msra.mxu1 %v4448_v38  ;;  %v1846_v38 = vld [vmem:[#allocation7 + $0x160] sm:$0xff] }
 0x5c3   : > { %1636 = vmatprep.subr.mxu0 %v4297_v43  ;;  %3501 = vmatprep.subr.mxu1 %v5332_v16 }
 0x5c4   : > { %1637 = vmatpush1.msra.mxu0 %v4300_v47  ;;  %3502 = vmatpush3.msra.mxu1 %v4452_v40  ;;  %v1841_v40 = vld [vmem:[#allocation7 + $0x138] sm:$0xff] }
 0x5c5   : > { %1638 = vmatprep.subr.mxu0 %v4303_v5  ;;  %3503 = vmatprep.subr.mxu1 %v5332_v16 }
 0x5c6   : > { %1639 = vmatpush1.msra.mxu0 %v4306_v48  ;;  %3504 = vmatpush3.msra.mxu1 %v4456_v42  ;;  %v1839_v42 = vld [vmem:[#allocation7 + $0x128] sm:$0xff] }
 0x5c7   : > { %1640 = vmatprep.subr.mxu0 %v4313_v54  ;;  %3505 = vmatprep.subr.mxu1 %v5332_v16 }
 0x5c8   : > { %1641 = vmatpush1.msra.mxu0 %v4316_v4  ;;  %3506 = vmatpush3.msra.mxu1 %v4460_v44  ;;  %v1843_v44 = vld [vmem:[#allocation7 + $0x148] sm:$0xff] }
 0x5c9   : > { %1642 = vmatprep.subr.mxu0 %v4319_v58  ;;  %3507 = vmatprep.subr.mxu1 %v5332_v16  ;;  %v1607_v58 = vrot.slane %v1444_v39, 4 }
 0x5ca   : > { %1643 = vmatpush1.msra.mxu0 %v4323_v59  ;;  %3508 = vmatpush3.msra.mxu1 %v4464_v45  ;;  %v1838_v45 = vld [vmem:[#allocation7 + $0x120] sm:$0xff] }
 0x5cb   : > { %1644 = vmatprep.subr.mxu0 %v4327_v61  ;;  %3509 = vmatprep.subr.mxu1 %v5332_v16 }
 0x5cc   : > { %1645 = vmatpush1.msra.mxu0 %v4331_v62  ;;  %3510 = vmatpush3.msra.mxu1 %v4468_v46  ;;  %v1836_v46 = vld [vmem:[#allocation7 + $0x110] sm:$0xff] }
 0x5cd   : > { %1646 = vmatprep.subr.mxu0 %v4334_v9  ;;  %3511 = vmatprep.subr.mxu1 %v5332_v16 }
 0x5ce   : > { %1647 = vmatpush1.msra.mxu0 %v4337_v63  ;;  %3512 = vmatpush3.msra.mxu1 %v4472_v49  ;;  %v1840_v49 = vld [vmem:[#allocation7 + $0x130] sm:$0xff] }
 0x5cf   : > { %1648 = vmatprep.subr.mxu0 %v4341_v2  ;;  %3513 = vmatprep.subr.mxu1 %v5332_v16 }
 0x5d0   : > { %1649 = vmatpush1.msra.mxu0 %v4344_v3  ;;  %3514 = vmatpush3.msra.mxu1 %v4476_v50  ;;  %v1835_v50 = vld [vmem:[#allocation7 + $0x108] sm:$0xff] }
 0x5d1   : > { %1650 = vmatprep.subr.mxu0 %v5333_v13  ;;  %3515 = vmatprep.subr.mxu1 %v5332_v16  ;;  %v1837_v13 = vld [vmem:[#allocation7 + $0x118] sm:$0xff] }
 0x5d2   : > { %1651 = vmatpush1.msra.mxu0 %v5340_v8  ;;  %3516 = vmatpush3.msra.mxu1 %v5341_v10  ;;  %v1814_v8 = vld [vmem:[#allocation7 + $0x60] sm:$0xff]  ;;  %v1812_v10 = vld [vmem:[#allocation7 + $0x50] sm:$0xff] }
 0x5d3   : > { %1652 = vmatprep.subr.mxu0 %v5342_v14  ;;  %3517 = vmatprep.subr.mxu1 %v5332_v16  ;;  %v1816_v14 = vld [vmem:[#allocation7 + $0x70] sm:$0xff] }
 0x5d4   : > { %1653 = vmatpush1.msra.mxu0 %v5343_v17  ;;  %1686 = vmatprep.mubr.f32.mxu0 %v5332_v16  ;;  %v1811_v17 = vld [vmem:[#allocation7 + $0x48] sm:$0xff] }
 0x5d5   : > { %3518 = vmatpush3.msra.mxu1 %v5344_v18  ;;  %3519 = vmatprep.mubr.msk.f32.mxu1 %vm3965_vm0, %v5332_v16  ;;  %v1809_v18 = vld [vmem:[#allocation7 + $0x38] sm:$0xff] }
 0x5d6   : > { %3522 = vmatprep.subr.mxu1 %v5332_v16  ;;  %1890 = vmatprep.subr.mxu0 %v1848_v19 }
 0x675   : > { %v1511_v20 = vpop.f32.mrf.mxu0  ;;  %v1582_v23 = vpop.f32.mrf.mxu1 }
 0x676   : > { %v1604_v48 = vadd.f32 %v4545_v6, %v1582_v23  ;;  %v1808_v23 = vld [vmem:[#allocation7 + $0x30] sm:$0xff] }
 0x677   : > { %v1513_v27 = vpop.f32.mrf.mxu0  ;;  %v3486_v29 = vpop.f32.mrf.mxu1 }
 0x678   : > { %v1588_v32 = vcombine.low %v1511_v20, %v1513_v27  ;;  %v1813_v20 = vld [vmem:[#allocation7 + $0x58] sm:$0xff]  ;;  %v1806_v27 = vld [vmem:[#allocation7 + $0x20] sm:$0xff] }
 0x679   : > { %v1810_v29 = vld [vmem:[#allocation7 + $0x40] sm:$0xff] }
 0x67a   : > { %v1595_v36 = vrot.slane %v1588_v32, %v4413_v12  ;;  %v1805_v32 = vld [vmem:[#allocation7 + $0x18] sm:$0xff] }
 0x67c   : > { %v1597_v41 = vadd.f32 %v1595_v36, %v1444_v39  ;;  %v1803_v36 = vld [vmem:[#allocation7 + $0x8] sm:$0xff] }
 0x67d   : > { %v1807_v39 = vld [vmem:[#allocation7 + $0x28] sm:$0xff] }
 0x67e   : > { %v3190_v43 = vmul.f32 -1.442695, %v1597_v41  ;;  %v1802_v41 = vld [vmem:[#allocation7] sm:$0xff] }
 0x680   : > { %3830 = vpow2.f32 %v3190_v43  ;;  %v1804_v43 = vld [vmem:[#allocation7 + $0x10] sm:$0xff] }
 0x68d   : > { %v3831_v47 = vpop.eup %3830 }
 0x68e   : > { %v1601_v5 = vadd.f32 1.0, %v3831_v47  ;;  %v4720_v47 = vld [vmem:[#allocation9 + $0x2f0] sm:$0xff] }
 0x68f   : > { %5345 = vst [vmem:[#allocation14_spill] sm:$0xff] %v4720_v47 }
 0x690   : > { %3832 = vrcp.f32 %v1601_v5 }
 0x69d   : > { %v3833_v54 = vpop.eup %3832 }
 0x69e   : > { %v1605_v4 = vmul.f32 %v3833_v54, %v1604_v48  ;;  %v1612_v61 = vrot.slane %v3833_v54, 2 }
 0x6a0   : > { %v1609_v59 = vadd.f32 %v1607_v58, %v1605_v4  ;;  %v1614_v62 = vsub.f32 1.0, %v1612_v61  ;;  %v1616_v2 = vmul.f32 %v1612_v61, %v4624_v15  ;;  %v1819_v15 = vld [vmem:[#allocation7 + $0x88] sm:$0xff]  ;;  %v1621_v61 = vld [vmem:[#allocation3 + $0x12] sm:$0x3f] }
 0x6a2   : > { %3834 = vtanh.f32 %v1609_v59 }
 0x6af   : > { %v3835_v9 = vpop.eup %3834 }
 0x6b0   : > { %v1615_v63 = vmul.f32 %v3835_v9, %v1614_v62 }
 0x6b2   : > { %v4698_v3 = vadd.f32 %v1616_v2, %v1615_v63 }
 0x6b4   : > { %1619 = vst [vmem:[#allocation2 + $0x4] sm:$0x3] %v4698_v3  ;;  %1687 = vmatmul.mubr.f32.vlgmr.msra.gmra.mxu0 %v4698_v3  ;;  %3520 = vmatmul.mubr.f32.vlgmr.msra.gmra.mxu1 %v4698_v3 }
 0x6b5   : > { %1954 = vmatprep.mubr.f32.mxu0 %v5332_v16  ;;  %3554 = vmatprep.mubr.msk.f32.mxu1 %vm3965_vm0, %v5332_v16 }
 0x6b6   : > { %1891 = vmatpush1.msra.mxu0 %v1847_v21  ;;  %3523 = vmatpush3.msra.mxu1 %v1849_v35  ;;  %v1784_v35 = vrot.slane %v1621_v61, 4 }
 0x6b7   : > { %1892 = vmatprep.subr.mxu0 %v1845_v34  ;;  %3524 = vmatprep.subr.mxu1 %v5332_v16 }
 0x6b8   : > { %1893 = vmatpush1.msra.mxu0 %v1844_v33  ;;  %3525 = vmatpush3.msra.mxu1 %v1846_v38 }
 0x6b9   : > { %1894 = vmatprep.subr.mxu0 %v1842_v37  ;;  %3526 = vmatprep.subr.mxu1 %v5332_v16 }
 0x6ba   : > { %1895 = vmatpush1.msra.mxu0 %v1841_v40  ;;  %3527 = vmatpush3.msra.mxu1 %v1843_v44 }
 0x6bb   : > { %1896 = vmatprep.subr.mxu0 %v1839_v42  ;;  %3528 = vmatprep.subr.mxu1 %v5332_v16 }
 0x6bc   : > { %1897 = vmatpush1.msra.mxu0 %v1838_v45  ;;  %3529 = vmatpush3.msra.mxu1 %v1840_v49  ;;  %v1798_v49 = vld [vmem:[#allocation2] sm:$0x3] }
 0x6bd   : > { %1898 = vmatprep.subr.mxu0 %v1836_v46  ;;  %3530 = vmatprep.subr.mxu1 %v5332_v16  ;;  %v1799_v46 = vld [vmem:[#allocation2 + $0x2] sm:$0x3] }
 0x6be   : > { %1899 = vmatpush1.msra.mxu0 %v1835_v50  ;;  %3531 = vmatpush3.msra.mxu1 %v1837_v13  ;;  %v1872_v50 = vcombine.low %v1798_v49, %v1799_v46 }
 0x6bf   : > { %1900 = vmatprep.subr.mxu0 %v1833_v24  ;;  %3532 = vmatprep.subr.mxu1 %v5332_v16  ;;  %v1800_v24 = vld [vmem:[#allocation2 + $0x4] sm:$0x3] }
 0x6c0   : > { %1901 = vmatpush1.msra.mxu0 %v1832_v25  ;;  %3533 = vmatpush3.msra.mxu1 %v1834_v28  ;;  %v1880_v25 = vrot.slane %v1872_v50, %v4413_v12 }
 0x6c1   : > { %1902 = vmatprep.subr.mxu0 %v1830_v57  ;;  %3534 = vmatprep.subr.mxu1 %v5332_v16 }
 0x6c2   : > { %1903 = vmatpush1.msra.mxu0 %v1829_v30  ;;  %3535 = vmatpush3.msra.mxu1 %v1831_v11  ;;  %v4730_v30 = vld [vmem:[#allocation9 + $0x2e8] sm:$0xff]  ;;  %v4734_v11 = vld [vmem:[#allocation9 + $0x2f8] sm:$0xff] }
 0x6c3   : > { %1904 = vmatprep.subr.mxu0 %v1827_v1  ;;  %3536 = vmatprep.subr.mxu1 %v5332_v16  ;;  %v4732_v1 = vld [vmem:[#allocation9 + $0x2d8] sm:$0xff] }
 0x6c4   : > { %1905 = vmatpush1.msra.mxu0 %v1826_v51  ;;  %3537 = vmatpush3.msra.mxu1 %v1828_v60  ;;  %v4739_v51 = vld [vmem:[#allocation9 + $0x2c0] sm:$0xff]  ;;  %v4745_v60 = vld [vmem:[#allocation9 + $0x2b8] sm:$0xff] }
 0x6c5   : > { %1906 = vmatprep.subr.mxu0 %v1824_v56  ;;  %3538 = vmatprep.subr.mxu1 %v5332_v16  ;;  %v4742_v56 = vld [vmem:[#allocation9 + $0x2e0] sm:$0xff] }
 0x6c6   : > { %1907 = vmatpush1.msra.mxu0 %v1823_v53  ;;  %3539 = vmatpush3.msra.mxu1 %v1825_v55  ;;  %v4749_v53 = vld [vmem:[#allocation9 + $0x2a8] sm:$0xff]  ;;  %v4755_v55 = vld [vmem:[#allocation9 + $0x2a0] sm:$0xff] }
 0x6c7   : > { %1908 = vmatprep.subr.mxu0 %v1821_v26  ;;  %3540 = vmatprep.subr.mxu1 %v5332_v16  ;;  %v4752_v26 = vld [vmem:[#allocation9 + $0x2c8] sm:$0xff] }
 0x6c8   : > { %1909 = vmatpush1.msra.mxu0 %v1820_v22  ;;  %3541 = vmatpush3.msra.mxu1 %v1822_v0  ;;  %v4759_v22 = vld [vmem:[#allocation9 + $0x290] sm:$0xff]  ;;  %v4765_v0 = vld [vmem:[#allocation9 + $0x288] sm:$0xff] }
 0x6c9   : > { %1910 = vmatprep.subr.mxu0 %v1818_v7  ;;  %3542 = vmatprep.subr.mxu1 %v5332_v16  ;;  %v4762_v7 = vld [vmem:[#allocation9 + $0x2b0] sm:$0xff] }
 0x6ca   : > { %1911 = vmatpush1.msra.mxu0 %v1817_v31  ;;  %3543 = vmatpush3.msra.mxu1 %v1819_v15  ;;  %v4769_v31 = vld [vmem:[#allocation9 + $0x278] sm:$0xff]  ;;  %v4775_v15 = vld [vmem:[#allocation9 + $0x270] sm:$0xff] }
 0x6cb   : > { %1912 = vmatprep.subr.mxu0 %v1815_v52  ;;  %3544 = vmatprep.subr.mxu1 %v5332_v16  ;;  %v4772_v52 = vld [vmem:[#allocation9 + $0x298] sm:$0xff] }
 0x6cc   : > { %1913 = vmatpush1.msra.mxu0 %v1814_v8  ;;  %3545 = vmatpush3.msra.mxu1 %v1816_v14  ;;  %v4779_v8 = vld [vmem:[#allocation9 + $0x260] sm:$0xff]  ;;  %v4785_v14 = vld [vmem:[#allocation9 + $0x258] sm:$0xff] }
 0x6cd   : > { %1914 = vmatprep.subr.mxu0 %v1812_v10  ;;  %3546 = vmatprep.subr.mxu1 %v5332_v16  ;;  %v4782_v10 = vld [vmem:[#allocation9 + $0x280] sm:$0xff] }
 0x6ce   : > { %1915 = vmatpush1.msra.mxu0 %v1811_v17  ;;  %3547 = vmatpush3.msra.mxu1 %v1813_v20  ;;  %v4789_v17 = vld [vmem:[#allocation9 + $0x248] sm:$0xff]  ;;  %v4795_v20 = vld [vmem:[#allocation9 + $0x240] sm:$0xff] }
 0x6cf   : > { %1916 = vmatprep.subr.mxu0 %v1809_v18  ;;  %3548 = vmatprep.subr.mxu1 %v5332_v16  ;;  %v4792_v18 = vld [vmem:[#allocation9 + $0x268] sm:$0xff] }
 0x6d0   : > { %1917 = vmatpush1.msra.mxu0 %v1808_v23  ;;  %3549 = vmatpush3.msra.mxu1 %v1810_v29  ;;  %v4799_v23 = vld [vmem:[#allocation9 + $0x230] sm:$0xff]  ;;  %v4805_v29 = vld [vmem:[#allocation9 + $0x228] sm:$0xff] }
 0x6d1   : > { %1918 = vmatprep.subr.mxu0 %v1806_v27  ;;  %3550 = vmatprep.subr.mxu1 %v5332_v16  ;;  %v4802_v27 = vld [vmem:[#allocation9 + $0x250] sm:$0xff] }
 0x6d2   : > { %1919 = vmatpush1.msra.mxu0 %v1805_v32  ;;  %3551 = vmatpush3.msra.mxu1 %v1807_v39  ;;  %v4809_v32 = vld [vmem:[#allocation9 + $0x218] sm:$0xff]  ;;  %v4815_v39 = vld [vmem:[#allocation9 + $0x210] sm:$0xff] }
 0x6d3   : > { %1920 = vmatprep.subr.mxu0 %v1803_v36  ;;  %3552 = vmatprep.subr.mxu1 %v5332_v16  ;;  %v4812_v36 = vld [vmem:[#allocation9 + $0x238] sm:$0xff] }
 0x6d4   : > { %1921 = vmatpush1.msra.mxu0 %v1802_v41  ;;  %3553 = vmatpush3.msra.mxu1 %v1804_v43  ;;  %v4819_v41 = vld [vmem:[#allocation9 + $0x200] sm:$0xff] }
 0x6d5   : > { %2131 = vmatprep.subr.mxu0 %v4720_v47  ;;  %3557 = vmatprep.subr.mxu1 %v5332_v16  ;;  %v4822_v43 = vld [vmem:[#allocation9 + $0x220] sm:$0xff] }
 0x774   : > { %v1688_v5 = vpop.f32.mrf.mxu0  ;;  %v1759_v48 = vpop.f32.mrf.mxu1 }
 0x775   : > { %v1781_v19 = vadd.f32 %v4545_v6, %v1759_v48  ;;  %v4829_v48 = vld [vmem:[#allocation9 + $0x1e8] sm:$0xff] }
 0x776   : > { %v1690_v54 = vpop.f32.mrf.mxu0  ;;  %v3521_v4 = vpop.f32.mrf.mxu1 }
 0x777   : > { %v1765_v58 = vcombine.low %v1688_v5, %v1690_v54  ;;  %v4825_v5 = vld [vmem:[#allocation9 + $0x1f8] sm:$0xff]  ;;  %v4832_v54 = vld [vmem:[#allocation9 + $0x208] sm:$0xff]  ;;  %v4835_v4 = vld [vmem:[#allocation9 + $0x1e0] sm:$0xff] }
 0x779   : > { %v1772_v59 = vrot.slane %v1765_v58, %v4413_v12  ;;  %v4839_v58 = vld [vmem:[#allocation9 + $0x1d0] sm:$0xff] }
 0x77b   : > { %v1774_v62 = vadd.f32 %v1772_v59, %v1621_v61  ;;  %v4842_v59 = vld [vmem:[#allocation9 + $0x1f0] sm:$0xff]  ;;  %v4845_v61 = vld [vmem:[#allocation9 + $0x1c8] sm:$0xff] }
 0x77d   : > { %v3191_v9 = vmul.f32 -1.442695, %v1774_v62  ;;  %v4849_v62 = vld [vmem:[#allocation9 + $0x1b8] sm:$0xff] }
 0x77f   : > { %3836 = vpow2.f32 %v3191_v9  ;;  %v4852_v9 = vld [vmem:[#allocation9 + $0x1d8] sm:$0xff] }
 0x78c   : > { %v3837_v63 = vpop.eup %3836 }
 0x78d   : > { %v1778_v2 = vadd.f32 1.0, %v3837_v63  ;;  %v4855_v63 = vld [vmem:[#allocation9 + $0x1b0] sm:$0xff] }
 0x78f   : > { %3838 = vrcp.f32 %v1778_v2  ;;  %v4859_v2 = vld [vmem:[#allocation9 + $0x1a0] sm:$0xff] }
 0x790   : > { %5346 = vst [vmem:[#allocation13_spill] sm:$0xff] %v4859_v2 }
 0x79c   : > { %v3839_v21 = vpop.eup %3838 }
 0x79d   : > { %v1782_v34 = vmul.f32 %v3839_v21, %v1781_v19  ;;  %v1789_v37 = vrot.slane %v3839_v21, 2  ;;  %v4862_v19 = vld [vmem:[#allocation9 + $0x1c0] sm:$0xff]  ;;  %v4865_v21 = vld [vmem:[#allocation9 + $0x198] sm:$0xff] }
 0x79e   : > { %5347 = vst [vmem:[#allocation15_spill] sm:$0xff] %v4862_v19  ;;  %5348 = vst [vmem:[#allocation19_spill] sm:$0xff] %v4865_v21 }
 0x79f   : > { %v1786_v33 = vadd.f32 %v1784_v35, %v1782_v34  ;;  %v1791_v38 = vsub.f32 1.0, %v1789_v37  ;;  %v1793_v44 = vmul.f32 %v1789_v37, %v4698_v3  ;;  %v4736_v3 = vld [vmem:[#allocation9 + $0x2d0] sm:$0xff]  ;;  %v4869_v34 = vld [vmem:[#allocation9 + $0x188] sm:$0xff] }
 0x7a0   : > { %5349 = vst [vmem:[#allocation16_spill] sm:$0xff] %v4869_v34  ;;  %v4872_v35 = vld [vmem:[#allocation9 + $0x1a8] sm:$0xff] }
 0x7a1   : > { %3840 = vtanh.f32 %v1786_v33  ;;  %5350 = vst [vmem:[#allocation17_spill] sm:$0xff] %v4872_v35  ;;  %v4875_v33 = vld [vmem:[#allocation9 + $0x180] sm:$0xff]  ;;  %v4879_v37 = vld [vmem:[#allocation4 + $0x2] sm:$0x3] }
 0x7a2   : > { %5351 = vst [vmem:[#allocation20_spill] sm:$0xff] %v4875_v33 }
 0x7ae   : > { %v3841_v40 = vpop.eup %3840 }
 0x7af   : > { %v1792_v42 = vmul.f32 %v3841_v40, %v1791_v38  ;;  %v4882_v38 = vld [vmem:[#allocation9 + $0x190] sm:$0xff]  ;;  %v3192_v40 = vld [vmem:[%s5280_s4 + $0x3] sm:$0x7] }
 0x7b0   : > { %5352 = vst [vmem:[#allocation21_spill] sm:$0xff] %v4882_v38 }
 0x7b1   : > { %v1794_v45 = vadd.f32 %v1793_v44, %v1792_v42  ;;  %v5353_v42 = vld [vmem:[#allocation18_spill] sm:$0xff] }
 0x7b2   : > { %v5354_v44 = vsub.s32 2, %v5353_v42  ;;  %v5355_v46 = vsub.s32 0, %v5353_v42  ;;  %v5356_v50 = vsub.s32 1, %v5353_v42 }
 0x7b3   : > { %1796 = vst [vmem:[#allocation2 + $0x6] sm:$0x3] %v1794_v45  ;;  %1797 = vst [vmem:[#allocation4] sm:$0x3] %v1794_v45 }
 0x7b4   : > { %v1864_v45 = vrot.slane %v3192_v40, %v5354_v44  ;;  %v1856_v49 = vrot.slane %v3192_v40, %v5355_v46 }
 0x7ba   : > { %v1801_v13 = vld [vmem:[#allocation2 + $0x6] sm:$0x3] }
 0x7bb   : > { %v1873_v6 = vcombine.low %v1800_v24, %v1801_v13  ;;  %v1860_v24 = vrot.slane %v3192_v40, %v5356_v50 }
 0x7bd   : > { %v1887_v57 = vrot.slane %v1873_v6, %v4413_v12 }
 0x7bf   : > { %v1888_v28 = vcombine.low %v1880_v25, %v1887_v57 }
 0x7c1   : > { %1955 = vmatmul.mubr.f32.vlgmr.msra.gmra.mxu0 %v1888_v28  ;;  %3555 = vmatmul.mubr.f32.vlgmr.msra.gmra.mxu1 %v1888_v28 }
 0x7c2   : > { %2132 = vmatpush1.msra.mxu0 %v4730_v30  ;;  %2195 = vmatprep.mubr.f32.mxu0 %v5332_v16 }
 0x7c3   : > { %2133 = vmatprep.subr.mxu0 %v4732_v1  ;;  %3558 = vmatpush3.msra.mxu1 %v4734_v11 }
 0x7c4   : > { %2134 = vmatpush1.msra.mxu0 %v4736_v3  ;;  %3559 = vmatprep.subr.mxu1 %v5332_v16 }
 0x7c5   : > { %2135 = vmatprep.subr.mxu0 %v4739_v51  ;;  %3560 = vmatpush3.msra.mxu1 %v4742_v56 }
 0x7c6   : > { %2136 = vmatpush1.msra.mxu0 %v4745_v60  ;;  %3561 = vmatprep.subr.mxu1 %v5332_v16 }
 0x7c7   : > { %2137 = vmatprep.subr.mxu0 %v4749_v53  ;;  %3562 = vmatpush3.msra.mxu1 %v4752_v26 }
 0x7c8   : > { %2138 = vmatpush1.msra.mxu0 %v4755_v55  ;;  %3563 = vmatprep.subr.mxu1 %v5332_v16 }
 0x7c9   : > { %2139 = vmatprep.subr.mxu0 %v4759_v22  ;;  %3564 = vmatpush3.msra.mxu1 %v4762_v7 }
 0x7ca   : > { %2140 = vmatpush1.msra.mxu0 %v4765_v0  ;;  %3565 = vmatprep.subr.mxu1 %v5332_v16 }
 0x7cb   : > { %2141 = vmatprep.subr.mxu0 %v4769_v31  ;;  %3566 = vmatpush3.msra.mxu1 %v4772_v52 }
 0x7cc   : > { %2142 = vmatpush1.msra.mxu0 %v4775_v15  ;;  %3567 = vmatprep.subr.mxu1 %v5332_v16 }
 0x7cd   : > { %2143 = vmatprep.subr.mxu0 %v4779_v8  ;;  %3568 = vmatpush3.msra.mxu1 %v4782_v10 }
 0x7ce   : > { %2144 = vmatpush1.msra.mxu0 %v4785_v14  ;;  %3569 = vmatprep.subr.mxu1 %v5332_v16 }
 0x7cf   : > { %2145 = vmatprep.subr.mxu0 %v4789_v17  ;;  %3570 = vmatpush3.msra.mxu1 %v4792_v18 }
 0x7d0   : > { %2146 = vmatpush1.msra.mxu0 %v4795_v20  ;;  %3571 = vmatprep.subr.mxu1 %v5332_v16 }
 0x7d1   : > { %2147 = vmatprep.subr.mxu0 %v4799_v23  ;;  %3572 = vmatpush3.msra.mxu1 %v4802_v27 }
 0x7d2   : > { %2148 = vmatpush1.msra.mxu0 %v4805_v29  ;;  %3573 = vmatprep.subr.mxu1 %v5332_v16 }
 0x7d3   : > { %2149 = vmatprep.subr.mxu0 %v4809_v32  ;;  %3574 = vmatpush3.msra.mxu1 %v4812_v36 }
 0x7d4   : > { %2150 = vmatpush1.msra.mxu0 %v4815_v39  ;;  %3575 = vmatprep.subr.mxu1 %v5332_v16 }
 0x7d5   : > { %2151 = vmatprep.subr.mxu0 %v4819_v41  ;;  %3576 = vmatpush3.msra.mxu1 %v4822_v43 }
 0x7d6   : > { %2152 = vmatpush1.msra.mxu0 %v4825_v5  ;;  %3577 = vmatprep.subr.mxu1 %v5332_v16 }
 0x7d7   : > { %2153 = vmatprep.subr.mxu0 %v4829_v48  ;;  %3578 = vmatpush3.msra.mxu1 %v4832_v54 }
 0x7d8   : > { %2154 = vmatpush1.msra.mxu0 %v4835_v4  ;;  %3579 = vmatprep.subr.mxu1 %v5332_v16 }
 0x7d9   : > { %2155 = vmatprep.subr.mxu0 %v4839_v58  ;;  %3580 = vmatpush3.msra.mxu1 %v4842_v59 }
 0x7da   : > { %2156 = vmatpush1.msra.mxu0 %v4845_v61  ;;  %3581 = vmatprep.subr.mxu1 %v5332_v16 }
 0x7db   : > { %2157 = vmatprep.subr.mxu0 %v4849_v62  ;;  %3582 = vmatpush3.msra.mxu1 %v4852_v9 }
 0x7dc   : > { %2158 = vmatpush1.msra.mxu0 %v4855_v63  ;;  %3583 = vmatprep.subr.mxu1 %v5332_v16 }
 0x7dd   : > { %2159 = vmatprep.subr.mxu0 %v4859_v2  ;;  %3584 = vmatpush3.msra.mxu1 %v4862_v19 }
 0x7de   : > { %2160 = vmatpush1.msra.mxu0 %v4865_v21  ;;  %3585 = vmatprep.subr.mxu1 %v5332_v16 }
 0x7df   : > { %2161 = vmatprep.subr.mxu0 %v4869_v34  ;;  %3586 = vmatpush3.msra.mxu1 %v4872_v35 }
 0x7e0   : > { %2162 = vmatpush1.msra.mxu0 %v4875_v33  ;;  %3587 = vmatprep.subr.mxu1 %v5332_v16 }
 0x7e1   : > { %2196 = vmatmul.mubr.f32.vlgmr.msra.gmra.mxu0 %v4879_v37  ;;  %3588 = vmatpush3.msra.mxu1 %v4882_v38 }
 0x7e2   : > { %3589 = vmatprep.mubr.msk.f32.mxu1 %vm3965_vm0, %v5332_v16  ;;  %2312 = vmatprep.subr.mxu0 %v4720_v47 }
 0x7e3   : > { %3590 = vmatmul.mubr.f32.vlgmr.msra.gmra.mxu1 %v4879_v37  ;;  %3592 = vmatprep.subr.mxu1 %v5332_v16 }
 0x7e4   : > { %2313 = vmatpush1.msra.mxu0 %v4730_v30  ;;  %3593 = vmatpush3.msra.mxu1 %v4734_v11 }
 0x7e5   : > { %2314 = vmatprep.subr.mxu0 %v4732_v1  ;;  %3594 = vmatprep.subr.mxu1 %v5332_v16 }
 0x7e6   : > { %2315 = vmatpush1.msra.mxu0 %v4736_v3  ;;  %3595 = vmatpush3.msra.mxu1 %v4742_v56 }
 0x7e7   : > { %2316 = vmatprep.subr.mxu0 %v4739_v51  ;;  %3596 = vmatprep.subr.mxu1 %v5332_v16 }
 0x7e8   : > { %2317 = vmatpush1.msra.mxu0 %v4745_v60  ;;  %3597 = vmatpush3.msra.mxu1 %v4752_v26 }
 0x7e9   : > { %2318 = vmatprep.subr.mxu0 %v4749_v53  ;;  %3598 = vmatprep.subr.mxu1 %v5332_v16 }
 0x7ea   : > { %2319 = vmatpush1.msra.mxu0 %v4755_v55  ;;  %3599 = vmatpush3.msra.mxu1 %v4762_v7 }
 0x7eb   : > { %2320 = vmatprep.subr.mxu0 %v4759_v22  ;;  %3600 = vmatprep.subr.mxu1 %v5332_v16 }
 0x7ec   : > { %2321 = vmatpush1.msra.mxu0 %v4765_v0  ;;  %3601 = vmatpush3.msra.mxu1 %v4772_v52 }
 0x7ed   : > { %2322 = vmatprep.subr.mxu0 %v4769_v31  ;;  %3602 = vmatprep.subr.mxu1 %v5332_v16 }
 0x7ee   : > { %2323 = vmatpush1.msra.mxu0 %v4775_v15  ;;  %3603 = vmatpush3.msra.mxu1 %v4782_v10 }
 0x7ef   : > { %2324 = vmatprep.subr.mxu0 %v4779_v8  ;;  %3604 = vmatprep.subr.mxu1 %v5332_v16 }
 0x7f0   : > { %2325 = vmatpush1.msra.mxu0 %v4785_v14  ;;  %3605 = vmatpush3.msra.mxu1 %v4792_v18 }
 0x7f1   : > { %2326 = vmatprep.subr.mxu0 %v4789_v17  ;;  %3606 = vmatprep.subr.mxu1 %v5332_v16 }
 0x7f2   : > { %2327 = vmatpush1.msra.mxu0 %v4795_v20  ;;  %3607 = vmatpush3.msra.mxu1 %v4802_v27 }
 0x7f3   : > { %2328 = vmatprep.subr.mxu0 %v4799_v23  ;;  %3608 = vmatprep.subr.mxu1 %v5332_v16 }
 0x7f4   : > { %2329 = vmatpush1.msra.mxu0 %v4805_v29  ;;  %3609 = vmatpush3.msra.mxu1 %v4812_v36 }
 0x7f5   : > { %2330 = vmatprep.subr.mxu0 %v4809_v32  ;;  %3610 = vmatprep.subr.mxu1 %v5332_v16 }
 0x7f6   : > { %2331 = vmatpush1.msra.mxu0 %v4815_v39  ;;  %3611 = vmatpush3.msra.mxu1 %v4822_v43 }
 0x7f7   : > { %2332 = vmatprep.subr.mxu0 %v4819_v41  ;;  %3612 = vmatprep.subr.mxu1 %v5332_v16 }
 0x7f8   : > { %2333 = vmatpush1.msra.mxu0 %v4825_v5  ;;  %3613 = vmatpush3.msra.mxu1 %v4832_v54 }
 0x7f9   : > { %2334 = vmatprep.subr.mxu0 %v4829_v48  ;;  %3614 = vmatprep.subr.mxu1 %v5332_v16 }
 0x7fa   : > { %2335 = vmatpush1.msra.mxu0 %v4835_v4  ;;  %3615 = vmatpush3.msra.mxu1 %v4842_v59 }
 0x7fb   : > { %2336 = vmatprep.subr.mxu0 %v4839_v58  ;;  %3616 = vmatprep.subr.mxu1 %v5332_v16 }
 0x7fc   : > { %2337 = vmatpush1.msra.mxu0 %v4845_v61  ;;  %3617 = vmatpush3.msra.mxu1 %v4852_v9 }
 0x7fd   : > { %2338 = vmatprep.subr.mxu0 %v4849_v62  ;;  %3618 = vmatprep.subr.mxu1 %v5332_v16 }
 0x7fe   : > { %2339 = vmatpush1.msra.mxu0 %v4855_v63  ;;  %3619 = vmatpush3.msra.mxu1 %v4862_v19 }
 0x7ff   : > { %2340 = vmatprep.subr.mxu0 %v4859_v2  ;;  %3620 = vmatprep.subr.mxu1 %v5332_v16 }
 0x800   : > { %2341 = vmatpush1.msra.mxu0 %v4865_v21  ;;  %3621 = vmatpush3.msra.mxu1 %v4872_v35 }
 0x801   : > { %2342 = vmatprep.subr.mxu0 %v4869_v34  ;;  %3622 = vmatprep.subr.mxu1 %v5332_v16 }
 0x802   : > { %2343 = vmatpush1.msra.mxu0 %v4875_v33  ;;  %2376 = vmatprep.mubr.f32.mxu0 %v5332_v16 }
 0x803   : > { %3623 = vmatpush3.msra.mxu1 %v4882_v38  ;;  %3624 = vmatprep.mubr.msk.f32.mxu1 %vm3965_vm0, %v5332_v16 }
 0x804   : > { %2487 = vmatprep.subr.mxu0 %v4720_v47  ;;  %3627 = vmatprep.subr.mxu1 %v5332_v16 }
 0x881   : > { %v1956_v13 = vpop.f32.mrf.mxu0  ;;  %v2027_v6 = vpop.f32.mrf.mxu1 }
 0x882   : > { %v2028_v25 = vadd.f32 %v2027_v6, %v1864_v45  ;;  %v1957_v47 = vadd.f32 %v1956_v13, %v1856_v49 }
 0x883   : > { %v1958_v57 = vpop.f32.mrf.mxu0  ;;  %v3556_v28 = vpop.f32.mrf.mxu1 }
 0x884   : > { %v2036_v38 = vcombine.high %v2028_v25, %v2028_v25  ;;  %v1959_v33 = vadd.f32 %v1958_v57, %v1860_v24  ;;  %v2057_v21 = vrot.slane %v2028_v25, %v4413_v12 }
 0x886   : > { %v2034_v34 = vcombine.low %v1957_v47, %v1959_v33  ;;  %v2035_v35 = vcombine.high %v1957_v47, %v1959_v33  ;;  %v2064_v44 = vrot.slane %v2036_v38, %v4413_v12 }
 0x888   : > { %v2043_v2 = vrot.slane %v2034_v34, %v4413_v12  ;;  %v2050_v46 = vrot.slane %v2035_v35, %v4413_v12 }
 0x88a   : > { %v2065_v42 = vcombine.low %v2043_v2, %v2057_v21  ;;  %v2066_v40 = vcombine.high %v2043_v2, %v2057_v21  ;;  %v2067_v50 = vcombine.low %v2050_v46, %v2064_v44  ;;  %v2068_v19 = vcombine.high %v2050_v46, %v2064_v44  ;;  %v4979_v2 = vld [vmem:[%s5282_s6 + $0x1] ss:$0 sm:$0xff] }
 0x88c   : > { %2073 = vst [vmem:[#allocation3] sm:$0x3f] %v2065_v42  ;;  %2074 = vst [vmem:[#allocation3 + $0x6] sm:$0x3f] %v2066_v40 }
 0x88d   : > { %2075 = vst [vmem:[#allocation3 + $0xc] sm:$0x3f] %v2067_v50  ;;  %2076 = vst [vmem:[#allocation3 + $0x12] sm:$0x3f] %v2068_v19 }
 0x893   : > { %v2130_v38 = vld [vmem:[#allocation3] sm:$0x3f] }
 0x894   : > { %v2299_v28 = vrot.slane %v2130_v38, 4 }
 0x8a1   : > { %v2197_v45 = vpop.f32.mrf.mxu0 }
 0x8a3   : > { %v2199_v49 = vpop.f32.mrf.mxu0  ;;  %v2268_v24 = vpop.f32.mrf.mxu1 }
 0x8a4   : > { %v2274_v47 = vcombine.low %v2197_v45, %v2199_v49  ;;  %v2296_v19 = vadd.f32 %v4979_v2, %v2268_v24  ;;  %v5358_v24 = vld [vmem:[#allocation13_spill] sm:$0xff] }
 0x8a5   : > { %v3591_v33 = vpop.f32.mrf.mxu1 }
 0x8a6   : > { %v2281_v13 = vrot.slane %v2274_v47, %v4413_v12  ;;  %v5359_v47 = vld [vmem:[#allocation19_spill] sm:$0xff]  ;;  %v5360_v33 = vld [vmem:[#allocation17_spill] sm:$0xff] }
 0x8a8   : > { %v2283_v6 = vadd.f32 %v2281_v13, %v2130_v38  ;;  %v5361_v13 = vld [vmem:[#allocation16_spill] sm:$0xff] }
 0x8a9   : > { %v5362_v38 = vld [vmem:[#allocation20_spill] sm:$0xff] }
 0x8aa   : > { %v3194_v34 = vmul.f32 -1.442695, %v2283_v6  ;;  %v5363_v6 = vld [vmem:[#allocation21_spill] sm:$0xff] }
 0x8ac   : > { %3842 = vpow2.f32 %v3194_v34  ;;  %v5364_v34 = vld [vmem:[#allocation14_spill] sm:$0xff] }
 0x8b9   : > { %v3843_v35 = vpop.eup %3842 }
 0x8ba   : > { %v2287_v25 = vadd.f32 1.0, %v3843_v35 }
 0x8bc   : > { %3844 = vrcp.f32 %v2287_v25 }
 0x8c9   : > { %v3845_v21 = vpop.eup %3844 }
 0x8ca   : > { %v2297_v57 = vmul.f32 %v3845_v21, %v2296_v19  ;;  %v2304_v46 = vrot.slane %v3845_v21, 2 }
 0x8cc   : > { %v2301_v44 = vadd.f32 %v2299_v28, %v2297_v57  ;;  %v2306_v42 = vsub.f32 1.0, %v2304_v46  ;;  %v2308_v45 = vmul.f32 %v2304_v46, %v4879_v37  ;;  %v5357_v37 = vld [vmem:[#allocation15_spill] sm:$0xff] }
 0x8ce   : > { %3846 = vtanh.f32 %v2301_v44  ;;  %v2311_v44 = vld [vmem:[#allocation3 + $0x6] sm:$0x3f] }
 0x8db   : > { %v3847_v40 = vpop.eup %3846 }
 0x8dc   : > { %v2307_v50 = vmul.f32 %v3847_v40, %v2306_v42 }
 0x8de   : > { %v4983_v49 = vadd.f32 %v2308_v45, %v2307_v50 }
 0x8e0   : > { %2310 = vst [vmem:[#allocation2] sm:$0x3] %v4983_v49  ;;  %2377 = vmatmul.mubr.f32.vlgmr.msra.gmra.mxu0 %v4983_v49  ;;  %3625 = vmatmul.mubr.f32.vlgmr.msra.gmra.mxu1 %v4983_v49 }
 0x8e1   : > { %2488 = vmatpush1.msra.mxu0 %v4730_v30  ;;  %3628 = vmatpush3.msra.mxu1 %v4734_v11 }
 0x8e2   : > { %2489 = vmatprep.subr.mxu0 %v4732_v1  ;;  %3629 = vmatprep.subr.mxu1 %v5332_v16 }
 0x8e3   : > { %2490 = vmatpush1.msra.mxu0 %v4736_v3  ;;  %3630 = vmatpush3.msra.mxu1 %v4742_v56 }
 0x8e4   : > { %2491 = vmatprep.subr.mxu0 %v4739_v51  ;;  %3631 = vmatprep.subr.mxu1 %v5332_v16 }
 0x8e5   : > { %2492 = vmatpush1.msra.mxu0 %v4745_v60  ;;  %3632 = vmatpush3.msra.mxu1 %v4752_v26 }
 0x8e6   : > { %2493 = vmatprep.subr.mxu0 %v4749_v53  ;;  %3633 = vmatprep.subr.mxu1 %v5332_v16 }
 0x8e7   : > { %2494 = vmatpush1.msra.mxu0 %v4755_v55  ;;  %3634 = vmatpush3.msra.mxu1 %v4762_v7 }
 0x8e8   : > { %2495 = vmatprep.subr.mxu0 %v4759_v22  ;;  %3635 = vmatprep.subr.mxu1 %v5332_v16 }
 0x8e9   : > { %2496 = vmatpush1.msra.mxu0 %v4765_v0  ;;  %3636 = vmatpush3.msra.mxu1 %v4772_v52 }
 0x8ea   : > { %2497 = vmatprep.subr.mxu0 %v4769_v31  ;;  %3637 = vmatprep.subr.mxu1 %v5332_v16 }
 0x8eb   : > { %2498 = vmatpush1.msra.mxu0 %v4775_v15  ;;  %3638 = vmatpush3.msra.mxu1 %v4782_v10 }
 0x8ec   : > { %2499 = vmatprep.subr.mxu0 %v4779_v8  ;;  %3639 = vmatprep.subr.mxu1 %v5332_v16 }
 0x8ed   : > { %2500 = vmatpush1.msra.mxu0 %v4785_v14  ;;  %3640 = vmatpush3.msra.mxu1 %v4792_v18 }
 0x8ee   : > { %2501 = vmatprep.subr.mxu0 %v4789_v17  ;;  %3641 = vmatprep.subr.mxu1 %v5332_v16 }
 0x8ef   : > { %2502 = vmatpush1.msra.mxu0 %v4795_v20  ;;  %3642 = vmatpush3.msra.mxu1 %v4802_v27 }
 0x8f0   : > { %2503 = vmatprep.subr.mxu0 %v4799_v23  ;;  %3643 = vmatprep.subr.mxu1 %v5332_v16 }
 0x8f1   : > { %2504 = vmatpush1.msra.mxu0 %v4805_v29  ;;  %3644 = vmatpush3.msra.mxu1 %v4812_v36 }
 0x8f2   : > { %2505 = vmatprep.subr.mxu0 %v4809_v32  ;;  %3645 = vmatprep.subr.mxu1 %v5332_v16 }
 0x8f3   : > { %2506 = vmatpush1.msra.mxu0 %v4815_v39  ;;  %3646 = vmatpush3.msra.mxu1 %v4822_v43 }
 0x8f4   : > { %2507 = vmatprep.subr.mxu0 %v4819_v41  ;;  %3647 = vmatprep.subr.mxu1 %v5332_v16 }
 0x8f5   : > { %2508 = vmatpush1.msra.mxu0 %v4825_v5  ;;  %3648 = vmatpush3.msra.mxu1 %v4832_v54 }
 0x8f6   : > { %2509 = vmatprep.subr.mxu0 %v4829_v48  ;;  %3649 = vmatprep.subr.mxu1 %v5332_v16 }
 0x8f7   : > { %2510 = vmatpush1.msra.mxu0 %v4835_v4  ;;  %3650 = vmatpush3.msra.mxu1 %v4842_v59 }
 0x8f8   : > { %2511 = vmatprep.subr.mxu0 %v4839_v58  ;;  %3651 = vmatprep.subr.mxu1 %v5332_v16 }
 0x8f9   : > { %2512 = vmatpush1.msra.mxu0 %v4845_v61  ;;  %3652 = vmatpush3.msra.mxu1 %v4852_v9 }
 0x8fa   : > { %2513 = vmatprep.subr.mxu0 %v4849_v62  ;;  %3653 = vmatprep.subr.mxu1 %v5332_v16 }
 0x8fb   : > { %2514 = vmatpush1.msra.mxu0 %v4855_v63  ;;  %3654 = vmatpush3.msra.mxu1 %v5357_v37 }
 0x8fc   : > { %2515 = vmatprep.subr.mxu0 %v5358_v24  ;;  %3655 = vmatprep.subr.mxu1 %v5332_v16 }
 0x8fd   : > { %2516 = vmatpush1.msra.mxu0 %v5359_v47  ;;  %3656 = vmatpush3.msra.mxu1 %v5360_v33 }
 0x8fe   : > { %2517 = vmatprep.subr.mxu0 %v5361_v13  ;;  %3657 = vmatprep.subr.mxu1 %v5332_v16 }
 0x8ff   : > { %2518 = vmatpush1.msra.mxu0 %v5362_v38  ;;  %2551 = vmatprep.mubr.f32.mxu0 %v5332_v16  ;;  %v2474_v38 = vrot.slane %v2311_v44, 4 }
 0x900   : > { %3658 = vmatpush3.msra.mxu1 %v5363_v6  ;;  %3659 = vmatprep.mubr.msk.f32.mxu1 %vm3965_vm0, %v5332_v16 }
 0x901   : > { %2662 = vmatprep.subr.mxu0 %v5364_v34  ;;  %3662 = vmatprep.subr.mxu1 %v5332_v16 }
 0x9a0   : > { %v2378_v35 = vpop.f32.mrf.mxu0  ;;  %v2449_v25 = vpop.f32.mrf.mxu1 }
 0x9a1   : > { %v2471_v45 = vadd.f32 %v4979_v2, %v2449_v25 }
 0x9a2   : > { %v2380_v19 = vpop.f32.mrf.mxu0  ;;  %v3626_v21 = vpop.f32.mrf.mxu1 }
 0x9a3   : > { %v2455_v57 = vcombine.low %v2378_v35, %v2380_v19 }
 0x9a5   : > { %v2462_v28 = vrot.slane %v2455_v57, %v4413_v12 }
 0x9a7   : > { %v2464_v46 = vadd.f32 %v2462_v28, %v2311_v44  ;;  %v2661_v28 = vld [vmem:[#allocation3 + $0x12] sm:$0x3f] }
 0x9a9   : > { %v3196_v42 = vmul.f32 -1.442695, %v2464_v46 }
 0x9ab   : > { %3848 = vpow2.f32 %v3196_v42 }
 0x9b8   : > { %v3849_v40 = vpop.eup %3848 }
 0x9b9   : > { %v2468_v50 = vadd.f32 1.0, %v3849_v40 }
 0x9bb   : > { %3850 = vrcp.f32 %v2468_v50 }
 0x9c8   : > { %v3851_v6 = vpop.eup %3850 }
 0x9c9   : > { %v2472_v34 = vmul.f32 %v3851_v6, %v2471_v45  ;;  %v2479_v33 = vrot.slane %v3851_v6, 2 }
 0x9cb   : > { %v2476_v13 = vadd.f32 %v2474_v38, %v2472_v34  ;;  %v2481_v47 = vsub.f32 1.0, %v2479_v33  ;;  %v2483_v19 = vmul.f32 %v2479_v33, %v4983_v49  ;;  %v2843_v49 = vld [vmem:[%s5283_s7 + $0x10] sm:$0xff] }
 0x9cd   : > { %3852 = vtanh.f32 %v2476_v13 }
 0x9da   : > { %v3853_v21 = vpop.eup %3852 }
 0x9db   : > { %v2482_v35 = vmul.f32 %v3853_v21, %v2481_v47 }
 0x9dd   : > { %v5058_v57 = vadd.f32 %v2483_v19, %v2482_v35 }
 0x9df   : > { %2485 = vst [vmem:[#allocation2 + $0x2] sm:$0x3] %v5058_v57  ;;  %2552 = vmatmul.mubr.f32.vlgmr.msra.gmra.mxu0 %v5058_v57  ;;  %3660 = vmatmul.mubr.f32.vlgmr.msra.gmra.mxu1 %v5058_v57 }
 0x9e0   : > { %2663 = vmatpush1.msra.mxu0 %v4730_v30  ;;  %3663 = vmatpush3.msra.mxu1 %v4734_v11  ;;  %v5365_v30 = vld [vmem:[#allocation19_spill] sm:$0xff]  ;;  %v5367_v11 = vld [vmem:[#allocation16_spill] sm:$0xff] }
 0x9e1   : > { %2664 = vmatprep.subr.mxu0 %v4732_v1  ;;  %3664 = vmatprep.subr.mxu1 %v5332_v16  ;;  %v5366_v1 = vld [vmem:[#allocation17_spill] sm:$0xff] }
 0x9e2   : > { %2665 = vmatpush1.msra.mxu0 %v4736_v3  ;;  %3665 = vmatpush3.msra.mxu1 %v4742_v56  ;;  %v5368_v3 = vld [vmem:[#allocation20_spill] sm:$0xff] }
 0x9e3   : > { %2666 = vmatprep.subr.mxu0 %v4739_v51  ;;  %3666 = vmatprep.subr.mxu1 %v5332_v16  ;;  %v5369_v51 = vld [vmem:[#allocation21_spill] sm:$0xff] }
 0x9e4   : > { %2667 = vmatpush1.msra.mxu0 %v4745_v60  ;;  %3667 = vmatpush3.msra.mxu1 %v4752_v26 }
 0x9e5   : > { %2668 = vmatprep.subr.mxu0 %v4749_v53  ;;  %3668 = vmatprep.subr.mxu1 %v5332_v16 }
 0x9e6   : > { %2669 = vmatpush1.msra.mxu0 %v4755_v55  ;;  %3669 = vmatpush3.msra.mxu1 %v4762_v7  ;;  %v2486_v7 = vld [vmem:[#allocation3 + $0xc] sm:$0x3f] }
 0x9e7   : > { %2670 = vmatprep.subr.mxu0 %v4759_v22  ;;  %3670 = vmatprep.subr.mxu1 %v5332_v16 }
 0x9e8   : > { %2671 = vmatpush1.msra.mxu0 %v4765_v0  ;;  %3671 = vmatpush3.msra.mxu1 %v4772_v52 }
 0x9e9   : > { %2672 = vmatprep.subr.mxu0 %v4769_v31  ;;  %3672 = vmatprep.subr.mxu1 %v5332_v16 }
 0x9ea   : > { %2673 = vmatpush1.msra.mxu0 %v4775_v15  ;;  %3673 = vmatpush3.msra.mxu1 %v4782_v10 }
 0x9eb   : > { %2674 = vmatprep.subr.mxu0 %v4779_v8  ;;  %3674 = vmatprep.subr.mxu1 %v5332_v16 }
 0x9ec   : > { %2675 = vmatpush1.msra.mxu0 %v4785_v14  ;;  %3675 = vmatpush3.msra.mxu1 %v4792_v18 }
 0x9ed   : > { %2676 = vmatprep.subr.mxu0 %v4789_v17  ;;  %3676 = vmatprep.subr.mxu1 %v5332_v16  ;;  %v2649_v17 = vrot.slane %v2486_v7, 4 }
 0x9ee   : > { %2677 = vmatpush1.msra.mxu0 %v4795_v20  ;;  %3677 = vmatpush3.msra.mxu1 %v4802_v27 }
 0x9ef   : > { %2678 = vmatprep.subr.mxu0 %v4799_v23  ;;  %3678 = vmatprep.subr.mxu1 %v5332_v16 }
 0x9f0   : > { %2679 = vmatpush1.msra.mxu0 %v4805_v29  ;;  %3679 = vmatpush3.msra.mxu1 %v4812_v36 }
 0x9f1   : > { %2680 = vmatprep.subr.mxu0 %v4809_v32  ;;  %3680 = vmatprep.subr.mxu1 %v5332_v16 }
 0x9f2   : > { %2681 = vmatpush1.msra.mxu0 %v4815_v39  ;;  %3681 = vmatpush3.msra.mxu1 %v4822_v43  ;;  %v2856_v39 = vld [vmem:[%s5283_s7 + $0x78] sm:$0xff]  ;;  %v2854_v43 = vld [vmem:[%s5283_s7 + $0x68] sm:$0xff] }
 0x9f3   : > { %2682 = vmatprep.subr.mxu0 %v4819_v41  ;;  %3682 = vmatprep.subr.mxu1 %v5332_v16  ;;  %v2855_v41 = vld [vmem:[%s5283_s7 + $0x70] sm:$0xff] }
 0x9f4   : > { %2683 = vmatpush1.msra.mxu0 %v4825_v5  ;;  %3683 = vmatpush3.msra.mxu1 %v4832_v54  ;;  %v2853_v5 = vld [vmem:[%s5283_s7 + $0x60] sm:$0xff]  ;;  %v2851_v54 = vld [vmem:[%s5283_s7 + $0x50] sm:$0xff] }
 0x9f5   : > { %2684 = vmatprep.subr.mxu0 %v4829_v48  ;;  %3684 = vmatprep.subr.mxu1 %v5332_v16  ;;  %v2852_v48 = vld [vmem:[%s5283_s7 + $0x58] sm:$0xff] }
 0x9f6   : > { %2685 = vmatpush1.msra.mxu0 %v4835_v4  ;;  %3685 = vmatpush3.msra.mxu1 %v4842_v59  ;;  %v2850_v4 = vld [vmem:[%s5283_s7 + $0x48] sm:$0xff]  ;;  %v2848_v59 = vld [vmem:[%s5283_s7 + $0x38] sm:$0xff] }
 0x9f7   : > { %2686 = vmatprep.subr.mxu0 %v4839_v58  ;;  %3686 = vmatprep.subr.mxu1 %v5332_v16  ;;  %v2849_v58 = vld [vmem:[%s5283_s7 + $0x40] sm:$0xff] }
 0x9f8   : > { %2687 = vmatpush1.msra.mxu0 %v4845_v61  ;;  %3687 = vmatpush3.msra.mxu1 %v4852_v9  ;;  %v2847_v61 = vld [vmem:[%s5283_s7 + $0x30] sm:$0xff]  ;;  %v2845_v9 = vld [vmem:[%s5283_s7 + $0x20] sm:$0xff] }
 0x9f9   : > { %2688 = vmatprep.subr.mxu0 %v4849_v62  ;;  %3688 = vmatprep.subr.mxu1 %v5332_v16  ;;  %v2846_v62 = vld [vmem:[%s5283_s7 + $0x28] sm:$0xff] }
 0x9fa   : > { %2689 = vmatpush1.msra.mxu0 %v4855_v63  ;;  %3689 = vmatpush3.msra.mxu1 %v5357_v37  ;;  %v2844_v63 = vld [vmem:[%s5283_s7 + $0x18] sm:$0xff]  ;;  %v2842_v37 = vld [vmem:[%s5283_s7 + $0x8] sm:$0xff] }
 0x9fb   : > { %2690 = vmatprep.subr.mxu0 %v5358_v24  ;;  %3690 = vmatprep.subr.mxu1 %v5332_v16  ;;  %v2841_v24 = vld [vmem:[%s5283_s7] sm:$0xff] }
 0x9fc   : > { %2691 = vmatpush1.msra.mxu0 %v5365_v30  ;;  %3691 = vmatpush3.msra.mxu1 %v5366_v1 }
 0x9fd   : > { %2692 = vmatprep.subr.mxu0 %v5367_v11  ;;  %3692 = vmatprep.subr.mxu1 %v5332_v16 }
 0x9fe   : > { %2693 = vmatpush1.msra.mxu0 %v5368_v3  ;;  %2726 = vmatprep.mubr.f32.mxu0 %v5332_v16  ;;  %v2838_v3 = vld [vmem:[#allocation2 + $0x2] sm:$0x3] }
 0x9ff   : > { %3693 = vmatpush3.msra.mxu1 %v5369_v51  ;;  %3694 = vmatprep.mubr.msk.f32.mxu1 %vm3965_vm0, %v5332_v16  ;;  %v2837_v51 = vld [vmem:[#allocation2] sm:$0x3] }
 0xa00   : > { %3697 = vmatprep.subr.mxu0 %v5332_v16 }
 0xa9f   : > { %v2553_v56 = vpop.f32.mrf.mxu0  ;;  %v2624_v60 = vpop.f32.mrf.mxu1 }
 0xaa0   : > { %v2646_v8 = vadd.f32 %v4979_v2, %v2624_v60 }
 0xaa1   : > { %v2555_v53 = vpop.f32.mrf.mxu0  ;;  %v3661_v26 = vpop.f32.mrf.mxu1 }
 0xaa2   : > { %v2630_v55 = vcombine.low %v2553_v56, %v2555_v53  ;;  %v2868_v56 = vcombine.low %v2837_v51, %v2838_v3 }
 0xaa4   : > { %v2637_v22 = vrot.slane %v2630_v55, %v4413_v12  ;;  %v2876_v26 = vrot.slane %v2868_v56, %v4413_v12 }
 0xaa6   : > { %v2639_v0 = vadd.f32 %v2637_v22, %v2486_v7  ;;  %v3199_v7 = vld [vmem:[%s5284_s8] ss:$0 sm:$0xff] }
 0xaa8   : > { %v3197_v31 = vmul.f32 -1.442695, %v2639_v0 }
 0xaaa   : > { %3854 = vpow2.f32 %v3197_v31 }
 0xab7   : > { %v3855_v52 = vpop.eup %3854 }
 0xab8   : > { %v2643_v15 = vadd.f32 1.0, %v3855_v52 }
 0xaba   : > { %3856 = vrcp.f32 %v2643_v15 }
 0xac7   : > { %v3857_v10 = vpop.eup %3856 }
 0xac8   : > { %v2647_v14 = vmul.f32 %v3857_v10, %v2646_v8  ;;  %v2654_v20 = vrot.slane %v3857_v10, 2 }
 0xaca   : > { %v2651_v18 = vadd.f32 %v2649_v17, %v2647_v14  ;;  %v2656_v23 = vsub.f32 1.0, %v2654_v20  ;;  %v2658_v32 = vmul.f32 %v2654_v20, %v5058_v57 }
 0xacc   : > { %3858 = vtanh.f32 %v2651_v18 }
 0xad9   : > { %v3859_v27 = vpop.eup %3858 }
 0xada   : > { %v2657_v29 = vmul.f32 %v3859_v27, %v2656_v23 }
 0xadc   : > { %v5132_v36 = vadd.f32 %v2658_v32, %v2657_v29 }
 0xade   : > { %2660 = vst [vmem:[#allocation2 + $0x4] sm:$0x3] %v5132_v36  ;;  %2727 = vmatmul.mubr.f32.vlgmr.msra.gmra.mxu0 %v5132_v36  ;;  %3695 = vmatmul.mubr.f32.vlgmr.msra.gmra.mxu1 %v5132_v36 }
 0xadf   : > { %3729 = vmatprep.mubr.msk.f32.mxu0 %vm3965_vm0, %v5332_v16  ;;  %3698 = vmatpush3.msra.mxu0 %v2856_v39 }
 0xae0   : > { %3699 = vmatprep.subr.mxu0 %v5332_v16 }
 0xae1   : > { %3700 = vmatpush3.msra.mxu0 %v2855_v41 }
 0xae2   : > { %3701 = vmatprep.subr.mxu0 %v5332_v16 }
 0xae3   : > { %3702 = vmatpush3.msra.mxu0 %v2854_v43 }
 0xae4   : > { %3703 = vmatprep.subr.mxu0 %v5332_v16 }
 0xae5   : > { %3704 = vmatpush3.msra.mxu0 %v2853_v5  ;;  %v2839_v60 = vld [vmem:[#allocation2 + $0x4] sm:$0x3] }
 0xae6   : > { %3705 = vmatprep.subr.mxu0 %v5332_v16 }
 0xae7   : > { %3706 = vmatpush3.msra.mxu0 %v2852_v48 }
 0xae8   : > { %3707 = vmatprep.subr.mxu0 %v5332_v16 }
 0xae9   : > { %3708 = vmatpush3.msra.mxu0 %v2851_v54 }
 0xaea   : > { %3709 = vmatprep.subr.mxu0 %v5332_v16 }
 0xaeb   : > { %3710 = vmatpush3.msra.mxu0 %v2850_v4 }
 0xaec   : > { %3711 = vmatprep.subr.mxu0 %v5332_v16 }
 0xaed   : > { %3712 = vmatpush3.msra.mxu0 %v2849_v58 }
 0xaee   : > { %3713 = vmatprep.subr.mxu0 %v5332_v16 }
 0xaef   : > { %3714 = vmatpush3.msra.mxu0 %v2848_v59 }
 0xaf0   : > { %3715 = vmatprep.subr.mxu0 %v5332_v16 }
 0xaf1   : > { %3716 = vmatpush3.msra.mxu0 %v2847_v61 }
 0xaf2   : > { %3717 = vmatprep.subr.mxu0 %v5332_v16 }
 0xaf3   : > { %3718 = vmatpush3.msra.mxu0 %v2846_v62 }
 0xaf4   : > { %3719 = vmatprep.subr.mxu0 %v5332_v16 }
 0xaf5   : > { %3720 = vmatpush3.msra.mxu0 %v2845_v9 }
 0xaf6   : > { %3721 = vmatprep.subr.mxu0 %v5332_v16 }
 0xaf7   : > { %3722 = vmatpush3.msra.mxu0 %v2844_v63 }
 0xaf8   : > { %3723 = vmatprep.subr.mxu0 %v5332_v16 }
 0xaf9   : > { %3724 = vmatpush3.msra.mxu0 %v2843_v49 }
 0xafa   : > { %3725 = vmatprep.subr.mxu0 %v5332_v16 }
 0xafb   : > { %3726 = vmatpush3.msra.mxu0 %v2842_v37 }
 0xafc   : > { %3727 = vmatprep.subr.mxu0 %v5332_v16  ;;  %v2824_v16 = vrot.slane %v2661_v28, 4 }
 0xafd   : > { %3728 = vmatpush3.msra.mxu0 %v2841_v24 }
 0xb9e   : > { %v2728_v47 = vpop.f32.mrf.mxu0  ;;  %v2799_v33 = vpop.f32.mrf.mxu1 }
 0xb9f   : > { %v2821_v50 = vadd.f32 %v4979_v2, %v2799_v33 }
 0xba0   : > { %v2730_v13 = vpop.f32.mrf.mxu0  ;;  %v3696_v38 = vpop.f32.mrf.mxu1 }
 0xba1   : > { %v2805_v6 = vcombine.low %v2728_v47, %v2730_v13 }
 0xba3   : > { %v2812_v25 = vrot.slane %v2805_v6, %v4413_v12 }
 0xba5   : > { %v2814_v44 = vadd.f32 %v2812_v25, %v2661_v28 }
 0xba7   : > { %v3198_v46 = vmul.f32 -1.442695, %v2814_v44 }
 0xba9   : > { %3860 = vpow2.f32 %v3198_v46 }
 0xbb6   : > { %v3861_v42 = vpop.eup %3860 }
 0xbb7   : > { %v2818_v40 = vadd.f32 1.0, %v3861_v42 }
 0xbb9   : > { %3862 = vrcp.f32 %v2818_v40 }
 0xbc6   : > { %v3863_v45 = vpop.eup %3862 }
 0xbc7   : > { %v2822_v34 = vmul.f32 %v3863_v45, %v2821_v50  ;;  %v2829_v35 = vrot.slane %v3863_v45, 2 }
 0xbc9   : > { %v2826_v21 = vadd.f32 %v2824_v16, %v2822_v34  ;;  %v2831_v19 = vsub.f32 1.0, %v2829_v35  ;;  %v2833_v1 = vmul.f32 %v2829_v35, %v5132_v36 }
 0xbcb   : > { %3864 = vtanh.f32 %v2826_v21 }
 0xbd8   : > { %v3865_v57 = vpop.eup %3864 }
 0xbd9   : > { %v2832_v30 = vmul.f32 %v3865_v57, %v2831_v19 }
 0xbdb   : > { %v2834_v11 = vadd.f32 %v2833_v1, %v2832_v30 }
 0xbdd   : > { %2835 = vst [vmem:[#allocation2 + $0x6] sm:$0x3] %v2834_v11  ;;  %2836 = vst [vmem:[#allocation4 + $0x2] sm:$0x3] %v2834_v11 }
 0xbe4   : > { %v2840_v2 = vld [vmem:[#allocation2 + $0x6] sm:$0x3] }
 0xbe5   : > { %v2869_v53 = vcombine.low %v2839_v60, %v2840_v2 }
 0xbe7   : > { %v2883_v55 = vrot.slane %v2869_v53, %v4413_v12 }
 0xbe9   : > { %v2884_v22 = vcombine.low %v2876_v26, %v2883_v55 }
 0xbeb   : > { %3730 = vmatmul.mubr.f32.vlgmr.msra.gmra.mxu0 %v2884_v22 }
 0xcab   : > { %v2952_v0 = vpop.f32.mrf.mxu0 }
 0xcac   : > { %v2953_v31 = vadd.f32 %v3199_v7, %v2952_v0 }
 0xcad   : > { %v3731_v52 = vpop.f32.mrf.mxu0 }
 0xcae   : > { %v2957_v15 = vcombine.high %v2953_v31, %v2953_v31  ;;  %v2964_v8 = vrot.slane %v2953_v31, %v4413_v12 }
 0xcb0   : > { %v2971_v10 = vrot.slane %v2957_v15, %v4413_v12  ;;  %v2972_v14 = vcombine.high %v2964_v8, %v2964_v8  ;;  %2980 = vst.msk [vmem:[%s2978_s21] sm:$0x3] %vm2979_vm1, %v2964_v8  ;;  %2987 = sbr.rel (%p3200_p3) target bundleno = 3596 (0xe0c), region = 72 }
 0xcb2   : > { %v2973_v17 = vcombine.high %v2971_v10, %v2971_v10  ;;  %2981 = vst.msk [vmem:[%s2978_s21 + $0x2] sm:$0x3] %vm2979_vm1, %v2972_v14  ;;  %2982 = vst.msk [vmem:[%s2978_s21 + $0x4] sm:$0x3] %vm2979_vm1, %v2971_v10 }
 0xcb4   : > { %2983 = vst.msk [vmem:[%s2978_s21 + $0x6] sm:$0x3] %vm2979_vm1, %v2973_v17 }
 0xcbb   : > { %v2988_v18 = vld [vmem:[#allocation6] sm:$0x3]  ;;  %v2989_v20 = vld [vmem:[#allocation6 + $0x2] sm:$0x3]  ;;  %v2990_v23 = vld [vmem:[#allocation6 + $0x4] sm:$0x3] }
 0xcbc   : > { %v2991_v27 = vld [vmem:[#allocation6 + $0x6] sm:$0x3]  ;;  %v2996_v12 = vsel %vm2979_vm1, %v2988_v18, 0.0  ;;  %v2997_v29 = vsel %vm2979_vm1, %v2989_v20, 0.0  ;;  %v2992_v32 = vld [vmem:[#allocation6 + $0x8] sm:$0x3] }
 0xcbd   : > { %v2998_v36 = vadd.f32 %v2997_v29, %v2996_v12  ;;  %v2999_v39 = vsel %vm2979_vm1, %v2990_v23, 0.0  ;;  %v3001_v41 = vsel %vm2979_vm1, %v2991_v27, 0.0  ;;  %v2993_v43 = vld [vmem:[#allocation6 + $0xa] sm:$0x3]  ;;  %v3003_v48 = vsel %vm2979_vm1, %v2992_v32, 0.0 }
 0xcbe   : > { %v2994_v54 = vld [vmem:[#allocation6 + $0xc] sm:$0x3]  ;;  %v3005_v58 = vsel %vm2979_vm1, %v2993_v43, 0.0  ;;  %v2995_v59 = vld [vmem:[#allocation6 + $0xe] sm:$0x3] }
 0xcbf   : > { %v3000_v5 = vadd.f32 %v2999_v39, %v2998_v36  ;;  %v3007_v62 = vsel %vm2979_vm1, %v2994_v54, 0.0  ;;  %v3009_v63 = vsel %vm2979_vm1, %v2995_v59, 0.0 }
 0xcc1   : > { %v3002_v4 = vadd.f32 %v3001_v41, %v3000_v5 }
 0xcc3   : > { %v3004_v61 = vadd.f32 %v3003_v48, %v3002_v4 }
 0xcc5   : > { %v3006_v9 = vadd.f32 %v3005_v58, %v3004_v61 }
 0xcc7   : > { %v3008_v49 = vadd.f32 %v3007_v62, %v3006_v9 }
 0xcc9   : > { %v3010_v37 = vadd.f32 %v3009_v63, %v3008_v49 }
 0xccb   : > { %3011 = vadd.xlane.f32.xlu0 %v3010_v37 }
 0xd54   : > { %v3012_v24 = vpop.xlane.xlu0 %3011 }
 0xd55   : > { %v3014_v47 = vmul.f32 0.03125, %v3012_v24 }
 0xd57   : > { %v3015_v33 = vsub.f32 %v2988_v18, %v3014_v47  ;;  %v3016_v13 = vsub.f32 %v2989_v20, %v3014_v47  ;;  %v3017_v38 = vsub.f32 %v2990_v23, %v3014_v47  ;;  %v3018_v6 = vsub.f32 %v2991_v27, %v3014_v47 }
 0xd58   : > { %v3019_v25 = vsub.f32 %v2992_v32, %v3014_v47  ;;  %v3020_v42 = vsub.f32 %v2993_v43, %v3014_v47  ;;  %v3021_v16 = vsub.f32 %v2994_v54, %v3014_v47  ;;  %v3022_v57 = vsub.f32 %v2995_v59, %v3014_v47 }
 0xd59   : > { %v3023_v28 = vmul.f32 %v3015_v33, %v3015_v33  ;;  %v3024_v44 = vmul.f32 %v3016_v13, %v3016_v13  ;;  %v3025_v46 = vmul.f32 %v3017_v38, %v3017_v38  ;;  %v3026_v40 = vmul.f32 %v3018_v6, %v3018_v6 }
 0xd5a   : > { %v3027_v21 = vmul.f32 %v3019_v25, %v3019_v25  ;;  %v3028_v30 = vmul.f32 %v3020_v42, %v3020_v42  ;;  %v3029_v3 = vmul.f32 %v3021_v16, %v3021_v16  ;;  %v3030_v60 = vmul.f32 %v3022_v57, %v3022_v57 }
 0xd5b   : > { %v3031_v50 = vsel %vm2979_vm1, %v3023_v28, 0.0  ;;  %v3032_v45 = vsel %vm2979_vm1, %v3024_v44, 0.0  ;;  %v3034_v35 = vsel %vm2979_vm1, %v3025_v46, 0.0  ;;  %v3036_v1 = vsel %vm2979_vm1, %v3026_v40, 0.0 }
 0xd5c   : > { %v3033_v34 = vadd.f32 %v3032_v45, %v3031_v50  ;;  %v3038_v51 = vsel %vm2979_vm1, %v3027_v21, 0.0  ;;  %v3040_v2 = vsel %vm2979_vm1, %v3028_v30, 0.0  ;;  %v3042_v26 = vsel %vm2979_vm1, %v3029_v3, 0.0 }
 0xd5d   : > { %v3044_v22 = vsel %vm2979_vm1, %v3030_v60, 0.0 }
 0xd5e   : > { %v3035_v19 = vadd.f32 %v3034_v35, %v3033_v34 }
 0xd60   : > { %v3037_v11 = vadd.f32 %v3036_v1, %v3035_v19 }
 0xd62   : > { %v3039_v56 = vadd.f32 %v3038_v51, %v3037_v11 }
 0xd64   : > { %v3041_v53 = vadd.f32 %v3040_v2, %v3039_v56 }
 0xd66   : > { %v3043_v55 = vadd.f32 %v3042_v26, %v3041_v53 }
 0xd68   : > { %v3045_v7 = vadd.f32 %v3044_v22, %v3043_v55 }
 0xd6a   : > { %3046 = vadd.xlane.f32.xlu0 %v3045_v7 }
 0xdf3   : > { %v3047_v0 = vpop.xlane.xlu0 %3046 }
 0xdf4   : > { %v3048_v31 = vmul.f32 0.03125, %v3047_v0 }
 0xdf6   : > { %v3049_v52 = vadd.f32 1e-05, %v3048_v31 }
 0xdf8   : > { %3866 = vrsqrt.f32 %v3049_v52 }
 0xe05   : > { %v3867_v15 = vpop.eup %3866 }
 0xe06   : > { %v3051_v8 = vmul.f32 %v3867_v15, %v3015_v33  ;;  %v3052_v10 = vmul.f32 %v3867_v15, %v3016_v13  ;;  %v3053_v14 = vmul.f32 %v3867_v15, %v3017_v38  ;;  %v3054_v17 = vmul.f32 %v3867_v15, %v3018_v6 }
 0xe07   : > { %v3055_v18 = vmul.f32 %v3867_v15, %v3019_v25  ;;  %v3056_v20 = vmul.f32 %v3867_v15, %v3020_v42  ;;  %v3057_v23 = vmul.f32 %v3867_v15, %v3021_v16  ;;  %v3058_v27 = vmul.f32 %v3867_v15, %v3022_v57 }
 0xe08   : > { %3059 = vst.msk [vmem:[%s5285_s9] sm:$0x3] %vm2979_vm1, %v3051_v8  ;;  %3060 = vst.msk [vmem:[%s5285_s9 + $0x2] sm:$0x3] %vm2979_vm1, %v3052_v10 }
 0xe09   : > { %3061 = vst.msk [vmem:[%s5285_s9 + $0x4] sm:$0x3] %vm2979_vm1, %v3053_v14  ;;  %3062 = vst.msk [vmem:[%s5285_s9 + $0x6] sm:$0x3] %vm2979_vm1, %v3054_v17 }
 0xe0a   : > { %3063 = vst.msk [vmem:[%s5285_s9 + $0x8] sm:$0x3] %vm2979_vm1, %v3055_v18  ;;  %3064 = vst.msk [vmem:[%s5285_s9 + $0xa] sm:$0x3] %vm2979_vm1, %v3056_v20 }
 0xe0b   : > { %3065 = vst.msk [vmem:[%s5285_s9 + $0xc] sm:$0x3] %vm2979_vm1, %v3057_v23  ;;  %3066 = vst.msk [vmem:[%s5285_s9 + $0xe] sm:$0x3] %vm2979_vm1, %v3058_v27 }
 0xe0c PF: > { %s21_s11 = sadd.s32 1, %s3950_s11   ;;  %s5370_s30 = smov %s3946_s10 }
 0xe0d   : > { %p18_p4 = scmp.ge.s32.totalorder %s21_s11, 4   ;;  %s5371_s10 = smov %s5373_s13 }
 0xe0f   :  { %20 = sbr.rel (!%p18_p4) target bundleno = 3 (0x3), region = 120 }
 0xe14   :  { %3086 = vsyncpa [#allocation8], 1 }
 0xe15   :  { %3088 = vsyncpa [#allocation8 + $0x1], 1 }
 0xe16   :  { %3089 = vsyncpa [#allocation10], 1 }

</bundles_post_ra>
